<compile_context>
chip_gen: v6e
topology: v6e:2x2x1
jax: 0.10.0
libtpu: 0.0.40
codegen_flags: <defaults>
</compile_context>

<pallas_src>
import functools

import jax
import jax.numpy as jnp
from jax.experimental import pallas as pl
from jax.experimental.pallas import tpu as pltpu


def _reward_pair_kernel(c_ids_ref, r_ids_ref, c_h_ref, r_h_ref, w_ref, out_ref,
                        *, pad_id, npad):
    pb, seq = c_ids_ref.shape
    hidden = w_ref.shape[-1]

    c_ids = c_ids_ref[...]                      # (PB, seq) int32
    r_ids = r_ids_ref[...]                      # (PB, seq) int32
    pos = jax.lax.broadcasted_iota(jnp.int32, (pb, seq), 1)

    def kth_true_index(mask, k):
        # per-row index of the (k+1)-th True along the sequence, else seq (static k).
        idx = jnp.where(mask, pos, seq)
        for _ in range(k):
            cur = jnp.min(idx, axis=1, keepdims=True)
            idx = jnp.where(idx == cur, seq, idx)
        return jnp.min(idx, axis=1, keepdims=True)      # (PB, 1)

    # position of the (npad+1)-th PAD token, else seq.
    c_ind = kth_true_index(c_ids == pad_id, npad)        # (PB, 1)
    r_ind_pad = kth_true_index(r_ids == pad_id, npad)    # (PB, 1)

    # first index where chosen != rejected (seq if identical).
    first_div = jnp.min(jnp.where(c_ids != r_ids, pos, seq), axis=1, keepdims=True)
    any_div = first_div < seq

    end_ind = jnp.where(any_div, jnp.maximum(c_ind, r_ind_pad), seq)
    div_ind = jnp.where(any_div, first_div, seq - 1)
    r_ind = jnp.where(any_div, r_ind_pad, c_ind)

    # v_head on the MXU: per-pair batched matvec, bf16 operands / f32 accumulation.
    # Result (PB, 1, seq) is already lane-major in seq -> trivial reshape, no relayout.
    w_b = jnp.broadcast_to(w_ref[...].astype(jnp.bfloat16)[None], (pb, 1, hidden))
    c_rew = jnp.einsum('pqh,psh->pqs', w_b, c_h_ref[...].astype(jnp.bfloat16),
                       preferred_element_type=jnp.float32).reshape(pb, seq)
    r_rew = jnp.einsum('pqh,psh->pqs', w_b, r_h_ref[...].astype(jnp.bfloat16),
                       preferred_element_type=jnp.float32).reshape(pb, seq)

    # end-score gathers: reward[ind - 1]; wrap to seq-1 when ind == 0 (torch's reward[-1]).
    c_gather = jnp.where(c_ind > 0, c_ind - 1, seq - 1)
    r_gather = jnp.where(r_ind > 0, r_ind - 1, seq - 1)
    c_score = jnp.sum(jnp.where(pos == c_gather, c_rew, 0.0), axis=1, keepdims=True)  # (PB, 1)
    r_score = jnp.sum(jnp.where(pos == r_gather, r_rew, 0.0), axis=1, keepdims=True)  # (PB, 1)

    # loss_i = -logsigmoid(c - r).mean() over [div_ind, end_ind); empty/negative range guarded
    # with count >= 1 (masked sum is already 0 there) instead of the reference's NaN mean.
    diff = c_rew - r_rew
    neg_logsig = jnp.maximum(-diff, 0.0) + jnp.log(1.0 + jnp.exp(-jnp.abs(diff)))
    lmask = (pos >= div_ind) & (pos < end_ind)
    count = jnp.maximum(end_ind - div_ind, 1).astype(jnp.float32)
    loss = jnp.sum(jnp.where(lmask, neg_logsig, 0.0), axis=1, keepdims=True) / count  # (PB, 1)

    # Single lane-dense output block: col 0 = loss_i, col 1 = chosen score, col 2 = rejected.
    col = jax.lax.broadcasted_iota(jnp.int32, out_ref.shape, 1)          # (PB, 128)
    out = jnp.where(col == 0, loss, 0.0)
    out = jnp.where(col == 1, c_score, out)
    out = jnp.where(col == 2, r_score, out)
    out_ref[...] = out


def _select_pair_block(bs, pair_block):
    """Largest multiple-of-8 divisor of bs that is <= pair_block, preferring >= 2 grid steps
    (so v7x can shard the pair axis across its two TensorCores); falls back to one
    full-batch step when no such divisor exists (small / ragged batches)."""
    cands = [pb for pb in range(8, min(bs, pair_block) + 1, 8) if bs % pb == 0]
    if not cands:
        return bs
    multi = [pb for pb in cands if bs // pb >= 2]
    return max(multi) if multi else max(cands)


def reward_model_forward(input_ids, hidden_states, v_head_w,
                         pad_id=0, num_padding_at_beginning=0, pair_block=32):
    """Pallas implementation of RewardModel.forward (given base-model hidden_states)."""
    B, seq = input_ids.shape
    assert B % 2 == 0, "input_ids must stack chosen and rejected sequences"
    bs = B // 2
    assert hidden_states.shape[:2] == (B, seq)
    hidden = hidden_states.shape[-1]

    PB = _select_pair_block(bs, pair_block)
    n_blocks = bs // PB

    # Only the tiny id arrays are sliced host-side; hidden_states is fed to the kernel as-is
    # (passed twice, halves selected by block index_maps) -> no HBM copy / cast / pad of it.
    c_ids = input_ids[:bs].astype(jnp.int32)
    r_ids = input_ids[bs:].astype(jnp.int32)
    w = v_head_w.reshape(1, hidden).astype(jnp.float32)

    kernel = functools.partial(
        _reward_pair_kernel, pad_id=pad_id, npad=num_padding_at_beginning)

    # Per-step VMEM at PB=32, seq=hidden=128, f32 input: 2 sides x 2 pipeline buffers x 2 MiB
    # blocks + ~2 MiB in-kernel bf16 temps ~= 11 MiB; a 32 MiB scoped limit leaves headroom on
    # all generations (v7x default is already 32 MiB; v5e/v6e physical VMEM is 128 MiB).
    slab = pl.pallas_call(
        kernel,
        grid_spec=pltpu.PrefetchScalarGridSpec(
            num_scalar_prefetch=0,
            grid=(n_blocks,),
            in_specs=[
                pl.BlockSpec((PB, seq), lambda i: (i, 0)),                  # chosen ids
                pl.BlockSpec((PB, seq), lambda i: (i, 0)),                  # rejected ids
                pl.BlockSpec((PB, seq, hidden), lambda i: (i, 0, 0)),       # chosen hidden
                pl.BlockSpec((PB, seq, hidden),
                             lambda i, nb=n_blocks: (i + nb, 0, 0)),        # rejected hidden
                pl.BlockSpec((1, hidden), lambda i: (0, 0)),                # v_head weight
            ],
            out_specs=pl.BlockSpec((PB, 128), lambda i: (i, 0)),            # lane-dense slab
        ),
        out_shape=jax.ShapeDtypeStruct((bs, 128), jnp.float32),
        compiler_params=pltpu.CompilerParams(
            dimension_semantics=("parallel",),
            vmem_limit_bytes=32 * 1024 * 1024),
    )(c_ids, r_ids, hidden_states, hidden_states, w)

    loss = jnp.sum(slab[:, 0]) / bs
    return {
        "loss": loss,
        "chosen_mean_scores": slab[:, 1],
        "rejected_mean_scores": slab[:, 2],
    }


def _reference_forward(input_ids, hidden_states, v_head_w, pad_id, npad):
    """Pure-JAX reference mirroring RewardModel.forward semantics (full f32 matmul)."""
    B, seq = input_ids.shape
    bs = B // 2
    rewards = jnp.einsum("bsh,h->bs", hidden_states.astype(jnp.float32),
                         v_head_w.reshape(-1).astype(jnp.float32),
                         precision=jax.lax.Precision.HIGHEST)
    c_ids, r_ids = input_ids[:bs], input_ids[bs:]
    c_rew, r_rew = rewards[:bs], rewards[bs:]
    pos = jnp.arange(seq)[None, :]

    def kth(mask, k):
        idx = jnp.where(mask, pos, seq)
        for _ in range(k):
            cur = jnp.min(idx, axis=1, keepdims=True)
            idx = jnp.where(idx == cur, seq, idx)
        return jnp.min(idx, axis=1, keepdims=True)

    c_ind = kth(c_ids == pad_id, npad)
    r_ind_pad = kth(r_ids == pad_id, npad)
    first_div = jnp.min(jnp.where(c_ids != r_ids, pos, seq), axis=1, keepdims=True)
    any_div = first_div < seq
    end_ind = jnp.where(any_div, jnp.maximum(c_ind, r_ind_pad), seq)
    div_ind = jnp.where(any_div, first_div, seq - 1)
    r_ind = jnp.where(any_div, r_ind_pad, c_ind)

    c_score = jnp.take_along_axis(c_rew, (c_ind - 1) % seq, axis=1)[:, 0]
    r_score = jnp.take_along_axis(r_rew, (r_ind - 1) % seq, axis=1)[:, 0]

    diff = c_rew - r_rew
    nls = jnp.maximum(-diff, 0.0) + jnp.log(1.0 + jnp.exp(-jnp.abs(diff)))
    lmask = (pos >= div_ind) & (pos < end_ind)
    count = jnp.maximum(end_ind - div_ind, 1).astype(jnp.float32)[:, 0]
    loss_i = jnp.sum(jnp.where(lmask, nls, 0.0), axis=1) / count
    return {"loss": jnp.mean(loss_i),
            "chosen_mean_scores": c_score,
            "rejected_mean_scores": r_score}


if __name__ == "__main__":
    PAD_ID = 0
    bs = 48          # input batch 2*bs = 96; divisor selection gives PB=24 -> grid=(2,)
    seq = 128
    hidden = 128
    prompt_len = 20

    key = jax.random.PRNGKey(0)
    k_prompt, k_cresp, k_rresp, k_w, k_h = jax.random.split(key, 5)

    # Shared prompt, diverging responses, different pad positions.
    prompt = jax.random.randint(k_prompt, (bs, prompt_len), 5, 1000, dtype=jnp.int32)
    c_resp = jax.random.randint(k_cresp, (bs, seq - prompt_len), 5, 1000, dtype=jnp.int32)
    r_resp = jax.random.randint(k_rresp, (bs, seq - prompt_len), 5, 1000, dtype=jnp.int32)
    chosen = jnp.concatenate([prompt, c_resp], axis=1)
    rejected = jnp.concatenate([prompt, r_resp], axis=1)
    pos = jnp.arange(seq)[None, :]
    chosen = jnp.where(pos >= 90, PAD_ID, chosen)
    rejected = jnp.where(pos >= 100, PAD_ID, rejected)
    input_ids = jnp.concatenate([chosen, rejected], axis=0).astype(jnp.int32)

    # Synthetic base-model output (stand-in for rwtransformer(...)[0]).
    hidden_states = 0.1 * jax.random.normal(k_h, (2 * bs, seq, hidden), dtype=jnp.float32)

    # nn.Linear(hidden, 1, bias=False) weight, deterministic uniform init.
    bound = 1.0 / (hidden ** 0.5)
    v_head_w = jax.random.uniform(k_w, (hidden, 1), minval=-bound, maxval=bound,
                                  dtype=jnp.float32)

    out = reward_model_forward(input_ids, hidden_states, v_head_w,
                               pad_id=PAD_ID, num_padding_at_beginning=0)
    jax.block_until_ready(out)

    assert out["loss"].shape == ()
    assert out["chosen_mean_scores"].shape == (bs,)
    assert out["rejected_mean_scores"].shape == (bs,)
    assert bool(jnp.isfinite(out["loss"]))

    # (1) Apples-to-apples: reference fed the same bf16-quantized hidden/weight the MXU sees.
    h_q = hidden_states.astype(jnp.bfloat16).astype(jnp.float32)
    w_q = v_head_w.astype(jnp.bfloat16).astype(jnp.float32)
    ref_q = _reference_forward(input_ids, h_q, w_q, PAD_ID, 0)
    assert jnp.allclose(out["loss"], ref_q["loss"], atol=5e-4, rtol=5e-4)
    assert jnp.allclose(out["chosen_mean_scores"], ref_q["chosen_mean_scores"],
                        atol=5e-4, rtol=5e-4)
    assert jnp.allclose(out["rejected_mean_scores"], ref_q["rejected_mean_scores"],
                        atol=5e-4, rtol=5e-4)

    # (2) True f32 reference: bounds the bf16 input-quantization error of the MXU path.
    ref = _reference_forward(input_ids, hidden_states, v_head_w, PAD_ID, 0)
    assert jnp.allclose(out["loss"], ref["loss"], atol=5e-3, rtol=5e-3)
    assert jnp.allclose(out["chosen_mean_scores"], ref["chosen_mean_scores"],
                        atol=5e-3, rtol=5e-3)
    assert jnp.allclose(out["rejected_mean_scores"], ref["rejected_mean_scores"],
                        atol=5e-3, rtol=5e-3)

    print("KERNEL_OK")
</pallas_src>

<mosaic_0001>
module attributes {stable_mosaic.version = 11 : i64} {
  func.func @_reward_pair_kernel(%arg0: i32, %arg1: memref<24x128xi32, #tpu.memory_space<vmem>>, %arg2: memref<24x128xi32, #tpu.memory_space<vmem>>, %arg3: memref<24x128x128xf32, #tpu.memory_space<vmem>>, %arg4: memref<24x128x128xf32, #tpu.memory_space<vmem>>, %arg5: memref<1x128xf32, #tpu.memory_space<vmem>>, %arg6: memref<24x128xf32, #tpu.memory_space<vmem>>) attributes {dimension_semantics = [#tpu.dimension_semantics<parallel>], iteration_bounds = array<i64: 2>, scalar_prefetch = 0 : i64, scratch_operands = 0 : i64, tpu.core_type = #tpu.core_type<tc>, window_params = [{transform_indices = @transform_0, window_bounds = array<i64: 24, 128>}, {transform_indices = @transform_1, window_bounds = array<i64: 24, 128>}, {transform_indices = @transform_2, window_bounds = array<i64: 24, 128, 128>}, {transform_indices = @transform_3, window_bounds = array<i64: 24, 128, 128>}, {pipeline_mode = #tpu.pipeline_mode<synchronous>, transform_indices = @transform_4, window_bounds = array<i64: 1, 128>}, {transform_indices = @transform_5, window_bounds = array<i64: 24, 128>}]} {
    %c0 = arith.constant 0 : index
    %c0_0 = arith.constant 0 : index
    %0 = vector.load %arg1[%c0, %c0_0] : memref<24x128xi32, #tpu.memory_space<vmem>>, vector<24x128xi32>
    %c0_1 = arith.constant 0 : index
    %c0_2 = arith.constant 0 : index
    %1 = vector.load %arg2[%c0_1, %c0_2] : memref<24x128xi32, #tpu.memory_space<vmem>>, vector<24x128xi32>
    %2 = tpu.iota {dimensions = array<i32: 1>} : vector<24x128xi32>
    %c0_i32 = arith.constant 0 : i32
    %3 = vector.broadcast %c0_i32 : i32 to vector<24x128xi32>
    %4 = arith.cmpi eq, %0, %3 : vector<24x128xi32>
    %c128_i32 = arith.constant 128 : i32
    %5 = vector.broadcast %c128_i32 : i32 to vector<24x128xi32>
    %6 = arith.select %4, %2, %5 : vector<24x128xi1>, vector<24x128xi32>
    %cst = arith.constant dense<2147483647> : vector<24xi32>
    %7 = vector.multi_reduction <minsi>, %6, %cst [1] : vector<24x128xi32> to vector<24xi32>
    %8 = vector.shape_cast %7 : vector<24xi32> to vector<24x1xi32>
    %c0_i32_3 = arith.constant 0 : i32
    %9 = vector.broadcast %c0_i32_3 : i32 to vector<24x128xi32>
    %10 = arith.cmpi eq, %1, %9 : vector<24x128xi32>
    %c128_i32_4 = arith.constant 128 : i32
    %11 = vector.broadcast %c128_i32_4 : i32 to vector<24x128xi32>
    %12 = arith.select %10, %2, %11 : vector<24x128xi1>, vector<24x128xi32>
    %cst_5 = arith.constant dense<2147483647> : vector<24xi32>
    %13 = vector.multi_reduction <minsi>, %12, %cst_5 [1] : vector<24x128xi32> to vector<24xi32>
    %14 = vector.shape_cast %13 : vector<24xi32> to vector<24x1xi32>
    %15 = arith.cmpi ne, %0, %1 : vector<24x128xi32>
    %c128_i32_6 = arith.constant 128 : i32
    %16 = vector.broadcast %c128_i32_6 : i32 to vector<24x128xi32>
    %17 = arith.select %15, %2, %16 : vector<24x128xi1>, vector<24x128xi32>
    %cst_7 = arith.constant dense<2147483647> : vector<24xi32>
    %18 = vector.multi_reduction <minsi>, %17, %cst_7 [1] : vector<24x128xi32> to vector<24xi32>
    %19 = vector.shape_cast %18 : vector<24xi32> to vector<24x1xi32>
    %c128_i32_8 = arith.constant 128 : i32
    %20 = vector.broadcast %c128_i32_8 : i32 to vector<24x1xi32>
    %21 = arith.cmpi slt, %19, %20 : vector<24x1xi32>
    %22 = arith.maxsi %8, %14 : vector<24x1xi32>
    %c128_i32_9 = arith.constant 128 : i32
    %23 = vector.broadcast %c128_i32_9 : i32 to vector<24x1xi32>
    %24 = arith.select %21, %22, %23 : vector<24x1xi1>, vector<24x1xi32>
    %c127_i32 = arith.constant 127 : i32
    %25 = vector.broadcast %c127_i32 : i32 to vector<24x1xi32>
    %26 = arith.select %21, %19, %25 : vector<24x1xi1>, vector<24x1xi32>
    %27 = arith.select %21, %14, %8 : vector<24x1xi1>, vector<24x1xi32>
    %c0_10 = arith.constant 0 : index
    %c0_11 = arith.constant 0 : index
    %28 = vector.load %arg5[%c0_10, %c0_11] : memref<1x128xf32, #tpu.memory_space<vmem>>, vector<1x128xf32>
    %29 = arith.truncf %28 : vector<1x128xf32> to vector<1x128xbf16>
    %30 = vector.shape_cast %29 : vector<1x128xbf16> to vector<1x1x128xbf16>
    %31 = vector.shape_cast %30 : vector<1x1x128xbf16> to vector<1x1x128xbf16>
    %32 = vector.broadcast %31 : vector<1x1x128xbf16> to vector<24x1x128xbf16>
    %c0_12 = arith.constant 0 : index
    %c0_13 = arith.constant 0 : index
    %c0_14 = arith.constant 0 : index
    %33 = vector.load %arg3[%c0_12, %c0_13, %c0_14] : memref<24x128x128xf32, #tpu.memory_space<vmem>>, vector<24x128x128xf32>
    %34 = arith.truncf %33 : vector<24x128x128xf32> to vector<24x128x128xbf16>
    "tpu.trace_start"() <{level = 10 : i32, message = "pqh,psh->pqs"}> : () -> ()
    %cst_15 = arith.constant dense<0.000000e+00> : vector<24x1x128xf32>
    %35 = tpu.matmul %32, %34, %cst_15 {dimension_numbers = #tpu.dot_dimension_numbers<[2], [2], [1], [1], [0, 0, 0, 1, 1, 1], [0], [0]>} : vector<24x1x128xbf16>, vector<24x128x128xbf16>, vector<24x1x128xf32> -> vector<24x1x128xf32>
    "tpu.trace_stop"() : () -> ()
    %36 = vector.shape_cast %35 : vector<24x1x128xf32> to vector<24x128xf32>
    %c0_16 = arith.constant 0 : index
    %c0_17 = arith.constant 0 : index
    %c0_18 = arith.constant 0 : index
    %37 = vector.load %arg4[%c0_16, %c0_17, %c0_18] : memref<24x128x128xf32, #tpu.memory_space<vmem>>, vector<24x128x128xf32>
    %38 = arith.truncf %37 : vector<24x128x128xf32> to vector<24x128x128xbf16>
    "tpu.trace_start"() <{level = 10 : i32, message = "pqh,psh->pqs"}> : () -> ()
    %cst_19 = arith.constant dense<0.000000e+00> : vector<24x1x128xf32>
    %39 = tpu.matmul %32, %38, %cst_19 {dimension_numbers = #tpu.dot_dimension_numbers<[2], [2], [1], [1], [0, 0, 0, 1, 1, 1], [0], [0]>} : vector<24x1x128xbf16>, vector<24x128x128xbf16>, vector<24x1x128xf32> -> vector<24x1x128xf32>
    "tpu.trace_stop"() : () -> ()
    %40 = vector.shape_cast %39 : vector<24x1x128xf32> to vector<24x128xf32>
    %c0_i32_20 = arith.constant 0 : i32
    %41 = vector.broadcast %c0_i32_20 : i32 to vector<24x1xi32>
    %42 = arith.cmpi sgt, %8, %41 : vector<24x1xi32>
    %c1_i32 = arith.constant 1 : i32
    %43 = vector.broadcast %c1_i32 : i32 to vector<24x1xi32>
    %44 = arith.subi %8, %43 : vector<24x1xi32>
    %c127_i32_21 = arith.constant 127 : i32
    %45 = vector.broadcast %c127_i32_21 : i32 to vector<24x1xi32>
    %46 = arith.select %42, %44, %45 : vector<24x1xi1>, vector<24x1xi32>
    %c0_i32_22 = arith.constant 0 : i32
    %47 = vector.broadcast %c0_i32_22 : i32 to vector<24x1xi32>
    %48 = arith.cmpi sgt, %27, %47 : vector<24x1xi32>
    %c1_i32_23 = arith.constant 1 : i32
    %49 = vector.broadcast %c1_i32_23 : i32 to vector<24x1xi32>
    %50 = arith.subi %27, %49 : vector<24x1xi32>
    %c127_i32_24 = arith.constant 127 : i32
    %51 = vector.broadcast %c127_i32_24 : i32 to vector<24x1xi32>
    %52 = arith.select %48, %50, %51 : vector<24x1xi1>, vector<24x1xi32>
    %53 = vector.broadcast %46 : vector<24x1xi32> to vector<24x128xi32>
    %54 = arith.cmpi eq, %2, %53 : vector<24x128xi32>
    %cst_25 = arith.constant 0.000000e+00 : f32
    %55 = vector.broadcast %cst_25 : f32 to vector<24x128xf32>
    %56 = arith.select %54, %36, %55 : vector<24x128xi1>, vector<24x128xf32>
    %cst_26 = arith.constant dense<0.000000e+00> : vector<24xf32>
    %57 = vector.multi_reduction <add>, %56, %cst_26 [1] : vector<24x128xf32> to vector<24xf32>
    %58 = vector.shape_cast %57 : vector<24xf32> to vector<24x1xf32>
    %59 = vector.broadcast %52 : vector<24x1xi32> to vector<24x128xi32>
    %60 = arith.cmpi eq, %2, %59 : vector<24x128xi32>
    %cst_27 = arith.constant 0.000000e+00 : f32
    %61 = vector.broadcast %cst_27 : f32 to vector<24x128xf32>
    %62 = arith.select %60, %40, %61 : vector<24x128xi1>, vector<24x128xf32>
    %cst_28 = arith.constant dense<0.000000e+00> : vector<24xf32>
    %63 = vector.multi_reduction <add>, %62, %cst_28 [1] : vector<24x128xf32> to vector<24xf32>
    %64 = vector.shape_cast %63 : vector<24xf32> to vector<24x1xf32>
    %65 = arith.subf %36, %40 : vector<24x128xf32>
    %cst_29 = arith.constant 0.000000e+00 : f32
    %66 = vector.broadcast %cst_29 : f32 to vector<24x128xf32>
    %67 = arith.subf %66, %65 : vector<24x128xf32>
    %cst_30 = arith.constant 0.000000e+00 : f32
    %68 = vector.broadcast %cst_30 : f32 to vector<24x128xf32>
    %69 = arith.maximumf %67, %68 : vector<24x128xf32>
    %70 = math.absf %65 : vector<24x128xf32>
    %cst_31 = arith.constant 0.000000e+00 : f32
    %71 = vector.broadcast %cst_31 : f32 to vector<24x128xf32>
    %72 = arith.subf %71, %70 : vector<24x128xf32>
    %73 = math.exp %72 : vector<24x128xf32>
    %cst_32 = arith.constant 1.000000e+00 : f32
    %74 = vector.broadcast %cst_32 : f32 to vector<24x128xf32>
    %75 = arith.addf %74, %73 : vector<24x128xf32>
    %76 = math.log %75 : vector<24x128xf32>
    %77 = arith.addf %69, %76 : vector<24x128xf32>
    %78 = vector.broadcast %26 : vector<24x1xi32> to vector<24x128xi32>
    %79 = arith.cmpi sge, %2, %78 : vector<24x128xi32>
    %80 = vector.broadcast %24 : vector<24x1xi32> to vector<24x128xi32>
    %81 = arith.cmpi slt, %2, %80 : vector<24x128xi32>
    %82 = arith.andi %79, %81 : vector<24x128xi1>
    %83 = arith.subi %24, %26 : vector<24x1xi32>
    %c1_i32_33 = arith.constant 1 : i32
    %84 = vector.broadcast %c1_i32_33 : i32 to vector<24x1xi32>
    %85 = arith.maxsi %83, %84 : vector<24x1xi32>
    %86 = arith.sitofp %85 : vector<24x1xi32> to vector<24x1xf32>
    %cst_34 = arith.constant 0.000000e+00 : f32
    %87 = vector.broadcast %cst_34 : f32 to vector<24x128xf32>
    %88 = arith.select %82, %77, %87 : vector<24x128xi1>, vector<24x128xf32>
    %cst_35 = arith.constant dense<0.000000e+00> : vector<24xf32>
    %89 = vector.multi_reduction <add>, %88, %cst_35 [1] : vector<24x128xf32> to vector<24xf32>
    %90 = vector.shape_cast %89 : vector<24xf32> to vector<24x1xf32>
    %91 = arith.divf %90, %86 : vector<24x1xf32>
    %92 = tpu.iota {dimensions = array<i32: 1>} : vector<24x128xi32>
    %c0_i32_36 = arith.constant 0 : i32
    %93 = vector.broadcast %c0_i32_36 : i32 to vector<24x128xi32>
    %94 = arith.cmpi eq, %92, %93 : vector<24x128xi32>
    %cst_37 = arith.constant 0.000000e+00 : f32
    %95 = vector.shape_cast %91 : vector<24x1xf32> to vector<24x1xf32>
    %96 = vector.broadcast %95 : vector<24x1xf32> to vector<24x128xf32>
    %97 = vector.broadcast %cst_37 : f32 to vector<24x128xf32>
    %98 = arith.select %94, %96, %97 : vector<24x128xi1>, vector<24x128xf32>
    %c1_i32_38 = arith.constant 1 : i32
    %99 = vector.broadcast %c1_i32_38 : i32 to vector<24x128xi32>
    %100 = arith.cmpi eq, %92, %99 : vector<24x128xi32>
    %101 = vector.shape_cast %58 : vector<24x1xf32> to vector<24x1xf32>
    %102 = vector.broadcast %101 : vector<24x1xf32> to vector<24x128xf32>
    %103 = arith.select %100, %102, %98 : vector<24x128xi1>, vector<24x128xf32>
    %c2_i32 = arith.constant 2 : i32
    %104 = vector.broadcast %c2_i32 : i32 to vector<24x128xi32>
    %105 = arith.cmpi eq, %92, %104 : vector<24x128xi32>
    %106 = vector.shape_cast %64 : vector<24x1xf32> to vector<24x1xf32>
    %107 = vector.broadcast %106 : vector<24x1xf32> to vector<24x128xf32>
    %108 = arith.select %105, %107, %103 : vector<24x128xi1>, vector<24x128xf32>
    %c0_39 = arith.constant 0 : index
    %c0_40 = arith.constant 0 : index
    %109 = vector.load %arg6[%c0_39, %c0_40] : memref<24x128xf32, #tpu.memory_space<vmem>>, vector<24x128xf32>
    tpu.vector_store %arg6[%c0_39, %c0_40], %108 {strides = array<i32>} : memref<24x128xf32, #tpu.memory_space<vmem>>, vector<24x128xf32>,
    return
  }
  func.func @transform_0(%arg0: i32) -> (i32, i32) {
    %c0_i32 = arith.constant 0 : i32
    %c0_i32_0 = arith.constant 0 : i32
    return %arg0, %c0_i32 : i32, i32
  }
  func.func @transform_1(%arg0: i32) -> (i32, i32) {
    %c0_i32 = arith.constant 0 : i32
    %c0_i32_0 = arith.constant 0 : i32
    return %arg0, %c0_i32 : i32, i32
  }
  func.func @transform_2(%arg0: i32) -> (i32, i32, i32) {
    %c0_i32 = arith.constant 0 : i32
    %c0_i32_0 = arith.constant 0 : i32
    %c0_i32_1 = arith.constant 0 : i32
    return %arg0, %c0_i32, %c0_i32_0 : i32, i32, i32
  }
  func.func @transform_3(%arg0: i32) -> (i32, i32, i32) {
    %c2_i32 = arith.constant 2 : i32
    %0 = arith.addi %arg0, %c2_i32 : i32
    %c0_i32 = arith.constant 0 : i32
    %c0_i32_0 = arith.constant 0 : i32
    %c0_i32_1 = arith.constant 0 : i32
    return %0, %c0_i32, %c0_i32_0 : i32, i32, i32
  }
  func.func @transform_4(%arg0: i32) -> (i32, i32) {
    %c0_i32 = arith.constant 0 : i32
    %c0_i32_0 = arith.constant 0 : i32
    %c0_i32_1 = arith.constant 0 : i32
    return %c0_i32, %c0_i32_0 : i32, i32
  }
  func.func @transform_5(%arg0: i32) -> (i32, i32) {
    %c0_i32 = arith.constant 0 : i32
    %c0_i32_0 = arith.constant 0 : i32
    return %arg0, %c0_i32 : i32, i32
  }
}

</mosaic_0001>

<bundles_post_ra>
// kernel: tpu_custom_call.1
= control target key start
LH: loop header
LB: loop body
LE: loop exit
PB: predicated region body
PF: predicated region fallthrough
CT: control target
= control target key end

     0   :  { %s8540_s0 = inlined_call_operand.hbm [shape: s32[48,128], index: 0, kind: input, shape index: {}]   ;;  %s8541_s1 = inlined_call_operand.hbm [shape: s32[48,128], index: 1, kind: input, shape index: {}]   ;;  %s8542_s2 = inlined_call_operand.hbm [shape: f32[96,128,128], index: 2, kind: input, shape index: {}]   ;;  %s8543_s3 = inlined_call_operand.hbm [shape: f32[96,128,128], index: 3, kind: input, shape index: {}]   ;;  %s8544_s4 = inlined_call_operand.hbm [shape: f32[1,128], index: 4, kind: input, shape index: {}]   ;;  %s8545_s5 = inlined_call_operand.hbm [shape: f32[48,128], index: 5, kind: output, shape index: {}]  }
   0x1   :  { %8563 = sst [smem:[#allocation24_spill]] %s8541_s1 }
   0x2   :  { %8564 = sst [smem:[#allocation25_spill]] %s8544_s4 }
   0x3   :  { %8565 = sst [smem:[#allocation26_spill]] %s8545_s5 }
   0x4   :  { %10 = vsyncpa [#allocation3], 0 }
   0x5   :  { %12 = vsyncpa [#allocation3 + $0x1], 0 }
   0x6   :  { %13 = vsyncpa [#allocation6], 0 }
   0x7   :  { %15 = vsyncpa [#allocation6 + $0x1], 0 }
   0x8   :  { %16 = vsyncpa [#allocation9], 0 }
   0x9   :  { %18 = vsyncpa [#allocation9 + $0x1], 0 }
   0xa   :  { %19 = vsyncpa [#allocation4], 0 }
   0xb   :  { %21 = vsyncpa [#allocation4 + $0x1], 0  ;;  %s6273_s18 = smov 0   ;;  %s6275_s19 = smov 0  }
   0xc   :  { %s6277_s20 = smov 0   ;;  %s6279_s21 = smov 0  }
   0xd   :  { %s6281_s22 = smov 0   ;;  %s6283_s23 = smov 0  }
   0xe   :  { %s6285_s24 = smov 0  }
   0xf LB: > { %8566 = sst [smem:[#allocation17_spill]] %s6217_s21  ;;  %s6309_s25 = sadd.s32 4294967295, %s6229_s24   ;;  %s6229_s24 = sphi %s6285_s24, %s8605_s24   ;;  %s6225_s23 = sphi %s6283_s23, %s8614_s23   ;;  %s6221_s22 = sphi %s6281_s22, %s8613_s22   ;;  %s6217_s21 = sphi %s6279_s21, %s8612_s21   ;;  %s6213_s20 = sphi %s6277_s20, %s8611_s20   ;;  %s6209_s19 = sphi %s6275_s19, %s8610_s19   ;;  %s6205_s18 = sphi %s6273_s18, %s8609_s18  }
  0x10   : > { %8567 = sst [smem:[#allocation18_spill]] %s6225_s23  ;;  %s4362_s26 = sadd.s32 4294967294, %s6229_s24  }
  0x11   : > { %s6313_s27 = sadd.s32 1, %s6229_s24   ;;  %s34_s28 = sadd.s32 1, %s6225_s23 }
  0x12   : > { %8568 = sst [smem:[#allocation19_spill]] %s6313_s27  ;;  %s31_s29 = ssub.s32 %s6229_s24, %s6313_s27 }
  0x13   : > { %p41_p0 = scmp.ne.s32.totalorder %s6225_s23, %s6221_s22  ;;  %p32_p1 = scmp.eq.s32.totalorder %s31_s29, 0 }
  0x14   : > { %p42_p2 = scmp.eq.s32.totalorder %s6229_s24, 0  ;;  %p8546_p3 = scmp.ne.s32.totalorder %s6221_s22, %s6217_s21 }
  0x15   : > { %p8547_p4 = scmp.eq.s32.totalorder %s6309_s25, 0  ;;  %s109_s8 = sadd.s32 2, %s6229_s24 }
  0x16   : > { %s6325_s30 = scalar_select %p32_p1, %s6225_s23, %s34_s28  }
  0x17   : > { %p6332_p5 = por %p42_p2, %p41_p0  ;;  %p6341_p6 = por %p8547_p4, %p8546_p3 }
  0x18   : > { %8569 = sst [smem:[#allocation20_spill]] %s6325_s30  ;;  %s110_s9 = sadd.s32 2, %s6313_s27 }
  0x19   : > { %s8571_s7 = scalar_select %p6341_p6, 1, 0 }
  0x1a   : > { %s111_s10 = ssub.s32 %s109_s8, %s110_s9  ;;  %s114_s11 = sadd.s32 1, %s6213_s20 }
  0x1b   : > { %p112_p7 = scmp.eq.s32.totalorder %s111_s10, 0  ;;  %p121_p8 = scmp.ne.s32.totalorder %s6213_s20, %s6209_s19 }
  0x1c   : > { %p127_p9 = scmp.ne.s32.totalorder %s6209_s19, %s6205_s18  ;;  %p172_p10 = scmp.eq.s32.totalorder %s6309_s25, 1 }
  0x1d   : > { %s6354_s12 = scalar_select %p112_p7, %s6213_s20, %s114_s11  }
  0x1e   : > { %p6358_p11 = por %p121_p8, %p42_p2  ;;  %p6364_p12 = por %p127_p9, %p8547_p4 }
  0x1f   : > { %8572 = sst [smem:[#allocation21_spill]] %s6354_s12  ;;  %p6371_p13 = por %p172_p10, %p41_p0 }
  0x20   : > { %s8574_s14 = scalar_select %p6364_p12, 1, 0 }
  0x21   : > { %s8575_s15 = scalar_select %p6371_p13, 1, 0 }
  0x22   : > { %p178_p1 = scmp.eq.s32.totalorder %s4362_s26, 1  ;;  %p4363_p7 = scmp.ge.s32.totalorder %s6229_s24, 1 }
  0x23   : > { %8576 = sst [smem:[#allocation22_spill]] %s8575_s15  ;;  %p185_p3 = scmp.lt.s32.totalorder %s6229_s24, 3 }
  0x24   : > { %p8577_p2 = scmp.ne.s32.totalorder %s6221_s22, %s6217_s21  ;;  %s6231_s18 = smov [#allocation10]  }
  0x25   : > { %p6384_p9 = pnand %p4363_p7, %p185_p3  ;;  %s198_s28 = sshll.u32 %s6231_s18, 4  ;;  %s199_s28 = int_to_ptr.vmem [resolvable:$true] %s198_s28 }
  0x26   : > { %p6380_p8 = por %p178_p1, %p8577_p2  ;;  %p5822_p4 = scmp.lt.s32.totalorder %s6229_s24, 2 }
  0x27   : > { %s8580_s17 = scalar_select %p6384_p9, 1, 0 }
  0x28   : > { %s8578_s16 = scalar_select %p6380_p8, 1, 0 }
  0x29   : > { %p5800_p10 = pneg %p6384_p9  ;;  %s6393_s26 = sand.u32 1, %s6225_s23  }
  0x2a   : > { %8579 = sst [smem:[#allocation23_spill]] %s8578_s16  ;;  %p8581_p13 = scmp.eq.s32.totalorder %s6309_s25, 0 }
  0x2b   : > { %p6404_p3 = pnand %p5822_p4, %p6358_p11  ;;  %s8554_s10 = smul.u32 384, %s6229_s24 }
  0x2c   : > { %p6397_p1 = pnand %p5800_p10, %p8581_p13  ;;  %p6411_p7 = pnand %p5822_p4, %p6332_p5 }
  0x2d   : > { %s8583_s9 = scalar_select %p6404_p3, 1, 0 }
  0x2e   : > { %p5992_p2 = pneg %p6397_p1  ;;  %s6001_s18 = scalar_lea.vmem %s199_s28, 16 }
  0x2f   : > { %p6002_p13 = scmp.ne.s32.totalorder %s199_s28, %s6001_s18  ;;  %s6008_s30 = scalar_lea.vmem %s199_s28, 32 }
  0x30   : > { %p6009_p8 = scmp.lt.s32.totalorder %s199_s28, %s199_s28  ;;  %p6010_p12 = scmp.lt.s32.totalorder %s6008_s30, %s6001_s18 }
  0x31   : > { %p6004_p10 = pnand %p6002_p13, %p5992_p2 }
  0x32   : > { %p6011_p6 = por %p6010_p12, %p6009_p8 }
  0x33   : > { %p6005_p0 = pneg %p6004_p10 }
  0x35   : > { %p6012_p11 = pnand %p6011_p6, %p6005_p0 }
  0x37   : > { %6015 = shalt.err (!%p6012_p11)
}
  0x38   : > { %s8585_s4 = sld [smem:[#allocation25_spill]]  ;;  %s8555_s8 = sand.u32 1, %s6229_s24  }
  0x39   : > { %s8586_s1 = sld [smem:[#allocation24_spill]]  ;;  %s8587_s18 = smul.u32 24, %s6393_s26 }
  0x3a   : > { %s6436_s13 = scalar_lea.sflag [#allocation6], %s8555_s8  ;;  %p6442_p5 = pneg %p6411_p7 }
  0x3b   : > { %s234_s29 = scalar_lea.vmem [#allocation5], %s8587_s18 }
  0x3c   : > { %s241_s27 = sshll.u32 %s234_s29, 4  ;;  %s6432_s27 = int_to_ptr.vmem [resolvable:$true] %s241_s27 }
  0x3e   : > { %5803 = dma.hbm_to_vmem [thread:$0]  (!%p6397_p1), %s8585_s4, 16, %s199_s28, [#allocation9]  }
  0x3f   : > { %s6428_s30 = scalar_lea.hbm %s8586_s1, %s8554_s10  ;;  %s6021_s18 = scalar_lea.hbm %s8586_s1, 768 }
  0x40   : > { %s6016_s6 = scalar_lea.hbm %s6428_s30, 384  ;;  %p6022_p8 = scmp.lt.s32.totalorder %s6428_s30, %s8586_s1 }
  0x41   : > { %p6017_p4 = scmp.ne.s32.totalorder %s6428_s30, %s6016_s6  ;;  %p6023_p0 = scmp.lt.s32.totalorder %s6021_s18, %s6016_s6 }
  0x43   : > { %p6019_p6 = pnand %p6442_p5, %p6017_p4  ;;  %p6024_p1 = por %p6023_p0, %p6022_p8 }
  0x45   : > { %p6020_p12 = pneg %p6019_p6 }
  0x47   : > { %p6025_p2 = pnand %p6024_p1, %p6020_p12 }
  0x49   : > { %6028 = shalt.err (!%p6025_p2)
}
  0x4a   : > { %s6029_s8 = scalar_lea.vmem %s6432_s27, 384  ;;  %s6232_s4 = smov [#allocation5]  }
  0x4b   : > { %p6030_p13 = scmp.ne.s32.totalorder %s6432_s27, %s6029_s8  ;;  %s6034_s23 = sshll.u32 %s6232_s4, 4  ;;  %s6035_s23 = int_to_ptr.vmem [resolvable:$false] %s6034_s23 }
  0x4c   : > { %s6036_s12 = scalar_lea.vmem %s6035_s23, 768  ;;  %p6037_p4 = scmp.lt.s32.totalorder %s6432_s27, %s6035_s23 }
  0x4d   : > { %p6032_p10 = pnand %p6030_p13, %p6442_p5  ;;  %p6038_p6 = scmp.lt.s32.totalorder %s6036_s12, %s6029_s8 }
  0x4f   : > { %p6033_p11 = pneg %p6032_p10  ;;  %p6039_p9 = por %p6038_p6, %p6037_p4 }
  0x51   : > { %p6040_p3 = pnand %p6039_p9, %p6033_p11 }
  0x53   : > { %6043 = shalt.err (!%p6040_p3)
}
  0x54   : > { %s6233_s10 = smov 128   ;;  %s6234_s6 = smov 8  }
  0x55   : > { %5810 = dma.hbm_to_vmem [thread:$0]  (!%p6411_p7), %s6428_s30, 384, %s6432_s27, %s6436_s13, %s6233_s10, %s6233_s10, %s6234_s6  }
  0x56   : > { %s8589_s4 = smul.u32 384, %s6229_s24  ;;  %s210_s5 = scalar_lea.sflag [#allocation3], %s6393_s26 }
  0x57   : > { %s8590_s23 = smul.u32 24, %s6393_s26 }
  0x58   : > { %s6473_s29 = scalar_lea.hbm %s8540_s0, %s8589_s4  ;;  %s5781_s16 = smul.u32 3072, %s6393_s26 }
  0x59   : > { %s213_s12 = scalar_lea.vmem [#allocation2], %s8590_s23  ;;  %s4386_s21 = smul.u32 49152, %s6229_s24 }
  0x5a   : > { %s220_s1 = sshll.u32 %s213_s12, 4  ;;  %s6044_s15 = scalar_lea.hbm %s6473_s29, 384  ;;  %s6478_s1 = int_to_ptr.vmem [resolvable:$true] %s220_s1 }
  0x5b   : > { %p6045_p9 = scmp.ne.s32.totalorder %s6473_s29, %s6044_s15  ;;  %s6049_s4 = scalar_lea.hbm %s8540_s0, 768 }
  0x5c   : > { %p6050_p8 = scmp.lt.s32.totalorder %s6473_s29, %s8540_s0  ;;  %p6051_p0 = scmp.lt.s32.totalorder %s6049_s4, %s6044_s15 }
  0x5d   : > { %p6047_p3 = pnand %p6045_p9, %p6442_p5 }
  0x5e   : > { %p6052_p1 = por %p6051_p0, %p6050_p8 }
  0x5f   : > { %p6048_p12 = pneg %p6047_p3 }
  0x61   : > { %p6053_p2 = pnand %p6052_p1, %p6048_p12 }
  0x63   : > { %6056 = shalt.err (!%p6053_p2)
}
  0x64   : > { %s6057_s23 = scalar_lea.vmem %s6478_s1, 384  ;;  %s6235_s12 = smov [#allocation2]  }
  0x65   : > { %p6058_p13 = scmp.ne.s32.totalorder %s6478_s1, %s6057_s23  ;;  %s6062_s27 = sshll.u32 %s6235_s12, 4  ;;  %s6063_s27 = int_to_ptr.vmem [resolvable:$false] %s6062_s27 }
  0x66   : > { %s6064_s30 = scalar_lea.vmem %s6063_s27, 768  ;;  %p6065_p4 = scmp.lt.s32.totalorder %s6478_s1, %s6063_s27 }
  0x67   : > { %p6060_p10 = pnand %p6058_p13, %p6442_p5  ;;  %p6066_p6 = scmp.lt.s32.totalorder %s6064_s30, %s6057_s23 }
  0x69   : > { %p6061_p11 = pneg %p6060_p10  ;;  %p6067_p9 = por %p6066_p6, %p6065_p4 }
  0x6b   : > { %p6068_p3 = pnand %p6067_p9, %p6061_p11 }
  0x6d   : > { %6071 = shalt.err (!%p6068_p3)
}
  0x6e   : > { %5807 = dma.hbm_to_vmem [thread:$0]  (!%p6411_p7), %s6473_s29, 384, %s6478_s1, %s210_s5, %s6233_s10, %s6233_s10, %s6234_s6  }
  0x6f   : > { %s6510_s8 = scalar_lea.hbm %s8542_s2, %s4386_s21  ;;  %s255_s18 = scalar_lea.vmem [#allocation7], %s5781_s16 }
  0x70   : > { %s263_s23 = sshll.u32 %s255_s18, 4  ;;  %s275_s12 = sand.u32 1, %s6213_s20   ;;  %s6515_s23 = int_to_ptr.vmem [resolvable:$true] %s263_s23 }
  0x71   : > { %s6517_s27 = smul.u32 3072, %s275_s12  ;;  %s6072_s30 = scalar_lea.hbm %s6510_s8, 49152 }
  0x72   : > { %p6073_p12 = scmp.ne.s32.totalorder %s6510_s8, %s6072_s30  ;;  %s6077_s29 = scalar_lea.hbm %s8542_s2, 196608 }
  0x73   : > { %p6078_p1 = scmp.lt.s32.totalorder %s6510_s8, %s8542_s2  ;;  %p6079_p2 = scmp.lt.s32.totalorder %s6077_s29, %s6072_s30 }
  0x74   : > { %p6075_p8 = pnand %p6073_p12, %p6442_p5 }
  0x75   : > { %p6080_p13 = por %p6079_p2, %p6078_p1 }
  0x76   : > { %p6076_p0 = pneg %p6075_p8 }
  0x78   : > { %p6081_p10 = pnand %p6080_p13, %p6076_p0 }
  0x7a   : > { %6084 = shalt.err (!%p6081_p10)
}
  0x7b   : > { %s6085_s16 = scalar_lea.vmem %s6515_s23, 49152  ;;  %s6236_s4 = smov [#allocation7]  }
  0x7c   : > { %p6086_p11 = scmp.ne.s32.totalorder %s6515_s23, %s6085_s16  ;;  %s6090_s18 = sshll.u32 %s6236_s4, 4  ;;  %s6091_s18 = int_to_ptr.vmem [resolvable:$false] %s6090_s18 }
  0x7d   : > { %s6092_s12 = scalar_lea.vmem %s6091_s18, 98304  ;;  %p6093_p9 = scmp.lt.s32.totalorder %s6515_s23, %s6091_s18 }
  0x7e   : > { %p6088_p4 = pnand %p6086_p11, %p6442_p5  ;;  %p6094_p3 = scmp.lt.s32.totalorder %s6092_s12, %s6085_s16 }
  0x80   : > { %p6089_p6 = pneg %p6088_p4  ;;  %p6095_p12 = por %p6094_p3, %p6093_p9 }
  0x82   : > { %p6096_p8 = pnand %p6095_p12, %p6089_p6 }
  0x84   : > { %6099 = shalt.err (!%p6096_p8)
}
  0x85   : > { %5813 = dma.hbm_to_vmem [thread:$0]  (!%p6411_p7), %s6510_s8, 49152, %s6515_s23, %s6436_s13, %s6233_s10, %s6233_s10, %s6234_s6  }
  0x86   : > { %s4265_s1 = scalar_lea.hbm %s8543_s3, %s4386_s21  ;;  %s277_s11 = scalar_lea.vmem [#allocation8], %s6517_s27 }
  0x87   : > { %s6548_s5 = scalar_lea.hbm %s4265_s1, 98304  ;;  %s286_s29 = sshll.u32 %s277_s11, 4  ;;  %s6551_s29 = int_to_ptr.vmem [resolvable:$true] %s286_s29 }
  0x88   : > { %s8591_s26 = sand.u32 1, %s6229_s24   ;;  %s6128_s16 = scalar_lea.hbm %s4265_s1, 147456 }
  0x89   : > { %s6555_s15 = scalar_lea.sflag [#allocation9], %s8591_s26  ;;  %p6101_p5 = scmp.ne.s32.totalorder %s6548_s5, %s6128_s16 }
  0x8a   : > { %p8592_p0 = scmp.ne.s32.totalorder %s8583_s9, 0  ;;  %s6105_s21 = scalar_lea.hbm %s8543_s3, 196608 }
  0x8b   : > { %p6106_p13 = scmp.lt.s32.totalorder %s6548_s5, %s8543_s3  ;;  %p6107_p10 = scmp.lt.s32.totalorder %s6105_s21, %s6128_s16 }
  0x8c   : > { %p6102_p7 = pneg %p8592_p0 }
  0x8d   : > { %p6108_p11 = por %p6107_p10, %p6106_p13 }
  0x8e   : > { %p6103_p1 = pnand %p6102_p7, %p6101_p5 }
  0x90   : > { %p6104_p2 = pneg %p6103_p1 }
  0x92   : > { %p6109_p4 = pnand %p6108_p11, %p6104_p2 }
  0x94   : > { %6112 = shalt.err (!%p6109_p4)
}
  0x95   : > { %s6113_s27 = scalar_lea.vmem %s6551_s29, 49152  ;;  %s6237_s18 = smov [#allocation8]  }
  0x96   : > { %p6114_p6 = scmp.ne.s32.totalorder %s6551_s29, %s6113_s27  ;;  %s6118_s12 = sshll.u32 %s6237_s18, 4  ;;  %s6119_s12 = int_to_ptr.vmem [resolvable:$false] %s6118_s12 }
  0x97   : > { %s6120_s28 = scalar_lea.vmem %s6119_s12, 98304  ;;  %p6121_p12 = scmp.lt.s32.totalorder %s6551_s29, %s6119_s12 }
  0x98   : > { %p6116_p9 = pnand %p6114_p6, %p6102_p7  ;;  %p6122_p8 = scmp.lt.s32.totalorder %s6120_s28, %s6113_s27 }
  0x9a   : > { %p6117_p3 = pneg %p6116_p9  ;;  %p6123_p5 = por %p6122_p8, %p6121_p12 }
  0x9c   : > { %p6124_p1 = pnand %p6123_p5, %p6117_p3 }
  0x9e   : > { %6127 = shalt.err (!%p6124_p1)
}
  0x9f   : > { %5816 = dma.hbm_to_vmem [thread:$0]  (!%p8592_p0), %s6548_s5, 49152, %s6551_s29, %s6555_s15, %s6233_s10, %s6233_s10, %s6234_s6  }
  0xa0   : > { %p8593_p7 = scmp.ne.s32.totalorder %s8580_s17, 0 }
  0xa1   : > { %s6581_s30 = sand.u32 (!%p8593_p7), 1, %s6221_s22   ;;  %p8594_p2 = scmp.ne.s32.totalorder (!%p8593_p7), %s8571_s7, 0 }
  0xa2   : > { %298 = sbr.rel (%p8593_p7) target bundleno = 2114 (0x842), region = 40  ;;  %s301_s9 = scalar_lea.sflag (!%p8593_p7), [#allocation3], %s6581_s30 }
  0xa3   : > { %s6584_s1 = smul.u32 (!%p8593_p7), 24, %s6581_s30 }
  0xa5   : > { %s6588_s11 = scalar_lea.vmem (!%p8593_p7), [#allocation2], %s6584_s1 }
  0xa7   : > { %6184 = dma.done.wait (%p8594_p2), %s301_s9, 384  }
  0xa8   : > { %6186 = vsyncadd (%p8594_p2), %s301_s9, 4294966912  ;;  %s309_s17 = sand.u32 1, %s6309_s25   ;;  %s6596_s6 = scalar_lea.vmem [#allocation5], %s6584_s1 }
  0xa9   : > { %s310_s10 = scalar_lea.sflag [#allocation6], %s309_s17 }
  0xaa   : > { %6188 = dma.done.wait (%p8594_p2), %s310_s10, 49536  }
  0xab   : > { %6190 = vsyncadd (%p8594_p2), %s310_s10, 4294917760  ;;  %s5784_s5 = smul.u32 3072, %s6581_s30  ;;  %s329_s29 = sand.u32 1, %s6209_s19  }
  0xac   : > { %s5785_s26 = smul.u32 3072, %s329_s29  ;;  %s328_s16 = scalar_lea.sflag [#allocation9], %s309_s17 }
  0xad   : > { %s6604_s15 = scalar_lea.vmem [#allocation7], %s5784_s5  ;;  %p8595_p0 = scmp.ne.s32.totalorder %s8574_s14, 0 }
  0xae   : > { %s6606_s13 = scalar_lea.vmem [#allocation8], %s5785_s26 }
  0xaf   : > { %6192 = dma.done.wait (%p8595_p0), %s328_s16, 49152  }
  0xb0   : > { %6194 = vsyncadd (%p8595_p0), %s328_s16, 4294918144  ;;  %p8596_p13 = scmp.eq.s32.totalorder %s6309_s25, 0 }
  0xb2   : > { %6196 = dma.done.wait (%p8596_p13), [#allocation9], 16   ;;  %p8597_p10 = pmov %p8596_p13 }
  0xb3   : > { %v6238_v0 = vmov 0.0   ;;  %vm6239_vm0 = vmmov 0   ;;  %v570_v1 = vld [vmem:[%s6604_s15 + $0x70] sm:$0xff]  ;;  %v571_v2 = vld [vmem:[%s6604_s15 + $0x78] sm:$0xff]  ;;  %v568_v7 = vld [vmem:[%s6604_s15 + $0x60] sm:$0xff]  ;;  %v390_v31 = vlaneseq  ;;  %s8237_s7 = scalar_lea.vmem [#allocation11], %s6584_s1 }
  0xb4   : > { %6198 = vsyncadd (%p8597_p10), [#allocation9], 4294967280  ;;  %4819 = vmatprep.subr.bf16.mxu0 %v6238_v0  ;;  %4839 = vmatprep.subr.bf16.mxu1 %v6238_v0  ;;  %v586_v3 = vld [vmem:[%s6604_s15 + $0xf0] sm:$0xff]  ;;  %v947_v4 = vpack.c.bf16 %v571_v2, %v570_v1  ;;  %v587_v5 = vld [vmem:[%s6604_s15 + $0xf8] sm:$0xff]  ;;  %s8598_s14 = sld [smem:[#allocation22_spill]]  ;;  %s4213_s8 = sshll.u32 %s8237_s7, 4  ;;  %s8475_s8 = int_to_ptr.vmem [resolvable:$true] %s4213_s8 }
  0xb5   : > { %4835 = vmatprep.mubr.msk.bf16.mxu0 %vm6239_vm0, %v6238_v0  ;;  %4855 = vmatprep.mubr.msk.bf16.mxu1 %vm6239_vm0, %v6238_v0  ;;  %v955_v6 = vpack.c.bf16 %v587_v5, %v586_v3  ;;  %v569_v8 = vld [vmem:[%s6604_s15 + $0x68] sm:$0xff]  ;;  %v584_v9 = vld [vmem:[%s6604_s15 + $0xe0] sm:$0xff]  ;;  %v566_v13 = vld [vmem:[%s6604_s15 + $0x50] sm:$0xff]  ;;  %v6653_v33 = vand.u32 127, %v390_v31  ;;  %s4385_s21 = smul.u32 384, %s6309_s25  ;;  %s8599_s27 = sld [smem:[#allocation26_spill]] }
  0xb6   : > { %4820 = vmatpush3.bf16.xpose.msra.mxu0 %v947_v4  ;;  %v585_v10 = vld [vmem:[%s6604_s15 + $0xe8] sm:$0xff]  ;;  %v946_v11 = vpack.c.bf16 %v569_v8, %v568_v7  ;;  %v567_v14 = vld [vmem:[%s6604_s15 + $0x58] sm:$0xff]  ;;  %v582_v15 = vld [vmem:[%s6604_s15 + $0xd0] sm:$0xff]  ;;  %s4200_s25 = scalar_lea.sflag [#allocation4], %s6581_s30  ;;  %s6129_s12 = scalar_lea.vmem %s8475_s8, 384 }
  0xb7   : > { %4840 = vmatpush3.bf16.xpose.msra.mxu1 %v955_v6  ;;  %4821 = vmatprep.subr.bf16.mxu0 %v6238_v0  ;;  %v954_v12 = vpack.c.bf16 %v585_v10, %v584_v9  ;;  %v583_v16 = vld [vmem:[%s6604_s15 + $0xd8] sm:$0xff]  ;;  %v945_v17 = vpack.c.bf16 %v567_v14, %v566_v13  ;;  %v564_v19 = vld [vmem:[%s6604_s15 + $0x40] sm:$0xff]  ;;  %v565_v20 = vld [vmem:[%s6604_s15 + $0x48] sm:$0xff]  ;;  %p6130_p11 = scmp.ne.s32.totalorder %s8475_s8, %s6129_s12  ;;  %s6240_s28 = smov [#allocation11]  }
  0xb8   : > { %4841 = vmatprep.subr.bf16.mxu1 %v6238_v0  ;;  %v953_v18 = vpack.c.bf16 %v583_v16, %v582_v15  ;;  %v580_v21 = vld [vmem:[%s6604_s15 + $0xc0] sm:$0xff]  ;;  %v581_v22 = vld [vmem:[%s6604_s15 + $0xc8] sm:$0xff]  ;;  %v944_v23 = vpack.c.bf16 %v565_v20, %v564_v19  ;;  %v562_v25 = vld [vmem:[%s6604_s15 + $0x30] sm:$0xff]  ;;  %s6133_s1 = sshll.u32 %s6240_s28, 4  ;;  %s6134_s1 = int_to_ptr.vmem [resolvable:$false] %s6133_s1 }
  0xb9   : > { %v952_v24 = vpack.c.bf16 %v581_v22, %v580_v21  ;;  %v563_v26 = vld [vmem:[%s6604_s15 + $0x38] sm:$0xff]  ;;  %v578_v27 = vld [vmem:[%s6604_s15 + $0xb0] sm:$0xff]  ;;  %v560_v34 = vld [vmem:[%s6604_s15 + $0x20] sm:$0xff]  ;;  %s6135_s9 = scalar_lea.vmem %s6134_s1, 768  ;;  %p6136_p3 = scmp.lt.s32.totalorder %s8475_s8, %s6134_s1 }
  0xba   : > { %v579_v28 = vld [vmem:[%s6604_s15 + $0xb8] sm:$0xff]  ;;  %v943_v29 = vpack.c.bf16 %v563_v26, %v562_v25  ;;  %v561_v35 = vld [vmem:[%s6604_s15 + $0x28] sm:$0xff]  ;;  %v576_v36 = vld [vmem:[%s6604_s15 + $0xa0] sm:$0xff]  ;;  %p8600_p4 = scmp.ne.s32.totalorder %s8598_s14, 0  ;;  %p6137_p12 = scmp.lt.s32.totalorder %s6135_s9, %s6129_s12 }
  0xbb   : > { %v951_v30 = vpack.c.bf16 %v579_v28, %v578_v27  ;;  %v6651_v32 = vld [vmem:[%s6588_s11] sm:$0xff]  ;;  %v577_v37 = vld [vmem:[%s6604_s15 + $0xa8] sm:$0xff]  ;;  %v942_v40 = vpack.c.bf16 %v561_v35, %v560_v34  ;;  %v558_v43 = vld [vmem:[%s6604_s15 + $0x10] sm:$0xff]  ;;  %s8485_s18 = scalar_lea.hbm %s8599_s27, %s4385_s21 }
  0xbc   : > { %vm392_vm1 = vcmp.eq.s32.totalorder %v6651_v32, 0  ;;  %v950_v41 = vpack.c.bf16 %v577_v37, %v576_v36  ;;  %v559_v44 = vld [vmem:[%s6604_s15 + $0x18] sm:$0xff]  ;;  %v574_v45 = vld [vmem:[%s6604_s15 + $0x90] sm:$0xff]  ;;  %v556_v49 = vld [vmem:[%s6604_s15] sm:$0xff]  ;;  %p6131_p6 = pnand %p6130_p11, %p8600_p4  ;;  %p6138_p8 = por %p6137_p12, %p6136_p3 }
  0xbd   : > { %v6663_v38 = vsel %vm392_vm1, %v6653_v33, 128  ;;  %v575_v46 = vld [vmem:[%s6604_s15 + $0x98] sm:$0xff]  ;;  %v941_v47 = vpack.c.bf16 %v559_v44, %v558_v43  ;;  %v557_v50 = vld [vmem:[%s6604_s15 + $0x8] sm:$0xff]  ;;  %v572_v51 = vld [vmem:[%s6604_s15 + $0x80] sm:$0xff]  ;;  %vm3674_vm1 = vcmask 1041409  }
  0xbe   : > { %4822 = vmatpush3.bf16.xpose.msra.mxu0 %v946_v11  ;;  %v399_v39 = vshra.s32 %v6663_v38, 16  ;;  %v949_v48 = vpack.c.bf16 %v575_v46, %v574_v45  ;;  %v573_v52 = vld [vmem:[%s6604_s15 + $0x88] sm:$0xff]  ;;  %v940_v53 = vpack.c.bf16 %v557_v50, %v556_v49  ;;  %v554_v55 = vld [vmem:[#allocation10] sm:$0x1]  ;;  %v602_v56 = vld [vmem:[%s6604_s15 + $0x170] sm:$0xff]  ;;  %p6132_p9 = pneg %p6131_p6 }
  0xbf   : > { %4842 = vmatpush3.bf16.xpose.msra.mxu1 %v954_v12  ;;  %4823 = vmatprep.subr.bf16.mxu0 %v6238_v0  ;;  %v948_v54 = vpack.c.bf16 %v573_v52, %v572_v51  ;;  %v603_v57 = vld [vmem:[%s6604_s15 + $0x178] sm:$0xff]  ;;  %v618_v58 = vld [vmem:[%s6604_s15 + $0x1f0] sm:$0xff]  ;;  %v6687_v60 = vpack.c.bf16 %v554_v55, %v554_v55  ;;  %v600_v63 = vld [vmem:[%s6604_s15 + $0x160] sm:$0xff] }
  0xc0   : > { %4843 = vmatprep.subr.bf16.mxu1 %v6238_v0  ;;  %v6666_v42 = vcvt.s32.f32 %v399_v39  ;;  %v619_v59 = vld [vmem:[%s6604_s15 + $0x1f8] sm:$0xff]  ;;  %v963_v61 = vpack.c.bf16 %v603_v57, %v602_v56  ;;  %v601_v1 = vld [vmem:[%s6604_s15 + $0x168] sm:$0xff]  ;;  %v616_v2 = vld [vmem:[%s6604_s15 + $0x1e0] sm:$0xff]  ;;  %p6139_p5 = pnand %p6138_p8, %p6132_p9 }
  0xc1   : > { %v971_v62 = vpack.c.bf16 %v619_v59, %v618_v58  ;;  %v617_v3 = vld [vmem:[%s6604_s15 + $0x1e8] sm:$0xff]  ;;  %v962_v4 = vpack.c.bf16 %v601_v1, %v600_v63  ;;  %v598_v6 = vld [vmem:[%s6604_s15 + $0x150] sm:$0xff]  ;;  %v599_v7 = vld [vmem:[%s6604_s15 + $0x158] sm:$0xff] }
  0xc2   : > { %402 = vmin.xlane.f32.xlu0 %v6666_v42  ;;  %v970_v5 = vpack.c.bf16 %v617_v3, %v616_v2  ;;  %v614_v8 = vld [vmem:[%s6604_s15 + $0x1d0] sm:$0xff]  ;;  %v615_v9 = vld [vmem:[%s6604_s15 + $0x1d8] sm:$0xff]  ;;  %v961_v10 = vpack.c.bf16 %v599_v7, %v598_v6  ;;  %v596_v12 = vld [vmem:[%s6604_s15 + $0x140] sm:$0xff] }
  0xc3   : > { %v969_v11 = vpack.c.bf16 %v615_v9, %v614_v8  ;;  %v597_v13 = vld [vmem:[%s6604_s15 + $0x148] sm:$0xff]  ;;  %v612_v14 = vld [vmem:[%s6604_s15 + $0x1c0] sm:$0xff]  ;;  %v595_v19 = vld [vmem:[%s6604_s15 + $0x138] sm:$0xff] }
  0xc4   : > { %v613_v15 = vld [vmem:[%s6604_s15 + $0x1c8] sm:$0xff]  ;;  %v960_v16 = vpack.c.bf16 %v597_v13, %v596_v12  ;;  %v610_v20 = vld [vmem:[%s6604_s15 + $0x1b0] sm:$0xff]  ;;  %v611_v21 = vld [vmem:[%s6604_s15 + $0x1b8] sm:$0xff] }
  0xc5   : > { %v593_v25 = vld [vmem:[%s6604_s15 + $0x128] sm:$0xff]  ;;  %v608_v26 = vld [vmem:[%s6604_s15 + $0x1a0] sm:$0xff]  ;;  %v591_v31 = vld [vmem:[%s6604_s15 + $0x118] sm:$0xff] }
  0xc6   : > { %4824 = vmatpush3.bf16.xpose.msra.mxu0 %v945_v17  ;;  %v968_v17 = vpack.c.bf16 %v613_v15, %v612_v14  ;;  %v609_v27 = vld [vmem:[%s6604_s15 + $0x1a8] sm:$0xff]  ;;  %v606_v34 = vld [vmem:[%s6604_s15 + $0x190] sm:$0xff]  ;;  %v607_v35 = vld [vmem:[%s6604_s15 + $0x198] sm:$0xff] }
  0xc7   : > { %4844 = vmatpush3.bf16.xpose.msra.mxu1 %v953_v18  ;;  %4825 = vmatprep.subr.bf16.mxu0 %v6238_v0  ;;  %v594_v18 = vld [vmem:[%s6604_s15 + $0x130] sm:$0xff]  ;;  %v965_v37 = vpack.c.bf16 %v607_v35, %v606_v34  ;;  %v588_v39 = vld [vmem:[%s6604_s15 + $0x100] sm:$0xff]  ;;  %v605_v43 = vld [vmem:[%s6604_s15 + $0x188] sm:$0xff] }
  0xc8   : > { %4845 = vmatprep.subr.bf16.mxu1 %v6238_v0  ;;  %v959_v22 = vpack.c.bf16 %v595_v19, %v594_v18  ;;  %v634_v46 = vld [vmem:[%s6604_s15 + $0x270] sm:$0xff]  ;;  %v651_v49 = vld [vmem:[%s6604_s15 + $0x2f8] sm:$0xff]  ;;  %v632_v52 = vld [vmem:[%s6604_s15 + $0x260] sm:$0xff] }
  0xc9   : > { %v649_v55 = vld [vmem:[%s6604_s15 + $0x2e8] sm:$0xff]  ;;  %v630_v58 = vld [vmem:[%s6604_s15 + $0x250] sm:$0xff]  ;;  %v631_v59 = vld [vmem:[%s6604_s15 + $0x258] sm:$0xff] }
  0xca   : > { %v977_v63 = vpack.c.bf16 %v631_v59, %v630_v58  ;;  %v628_v2 = vld [vmem:[%s6604_s15 + $0x240] sm:$0xff]  ;;  %v629_v3 = vld [vmem:[%s6604_s15 + $0x248] sm:$0xff]  ;;  %v626_v8 = vld [vmem:[%s6604_s15 + $0x230] sm:$0xff] }
  0xcb   : > { %v976_v6 = vpack.c.bf16 %v629_v3, %v628_v2  ;;  %v627_v9 = vld [vmem:[%s6604_s15 + $0x238] sm:$0xff]  ;;  %v6774_v13 = vld [vmem:[%s6588_s11 + $0x10] sm:$0xff]  ;;  %v624_v18 = vld [vmem:[%s6604_s15 + $0x220] sm:$0xff] }
  0xcc   : > { %v975_v12 = vpack.c.bf16 %v627_v9, %v626_v8  ;;  %vm394_vm2 = vcmp.eq.s32.totalorder %v6774_v13, 0  ;;  %v625_v19 = vld [vmem:[%s6604_s15 + $0x228] sm:$0xff]  ;;  %v620_v58 = vld [vmem:[%s6604_s15 + $0x200] sm:$0xff] }
  0xcd   : > { %v6778_v15 = vsel %vm394_vm2, %v6653_v33, 128  ;;  %v621_v59 = vld [vmem:[%s6604_s15 + $0x208] sm:$0xff]  ;;  %vm3677_vm2 = vcmask 1042434  }
  0xce   : > { %4826 = vmatpush3.bf16.xpose.msra.mxu0 %v944_v23  ;;  %v967_v23 = vpack.c.bf16 %v611_v21, %v610_v20  ;;  %v640_v21 = vld [vmem:[%s6604_s15 + $0x2a0] sm:$0xff]  ;;  %v972_v2 = vpack.c.bf16 %v621_v59, %v620_v58  ;;  %v654_v58 = vld [vmem:[%s6604_s15 + $0x310] sm:$0xff]  ;;  %v655_v59 = vld [vmem:[%s6604_s15 + $0x318] sm:$0xff] }
  0xcf   : > { %4846 = vmatpush3.bf16.xpose.msra.mxu1 %v952_v24  ;;  %4827 = vmatprep.subr.bf16.mxu0 %v6238_v0  ;;  %v592_v24 = vld [vmem:[%s6604_s15 + $0x120] sm:$0xff] }
  0xd0   : > { %4847 = vmatprep.subr.bf16.mxu1 %v6238_v0  ;;  %v958_v28 = vpack.c.bf16 %v593_v25, %v592_v24  ;;  %v385_v25 = vld [vmem:[%s6588_s11 + $0x8] sm:$0xff] }
  0xd1   : > { %vm393_vm4 = vcmp.eq.s32.totalorder %v385_v25, 0 }
  0xd6   : > { %4828 = vmatpush3.bf16.xpose.msra.mxu0 %v943_v29  ;;  %v966_v29 = vpack.c.bf16 %v609_v27, %v608_v26  ;;  %v974_v26 = vpack.c.bf16 %v625_v19, %v624_v18  ;;  %v389_v27 = vld [vmem:[%s6596_s6 + $0x10] sm:$0xff]  ;;  %v678_v19 = vld [vmem:[%s6604_s15 + $0x3d0] sm:$0xff] }
  0xd7   : > { %4848 = vmatpush3.bf16.xpose.msra.mxu1 %v951_v30  ;;  %4829 = vmatprep.subr.bf16.mxu0 %v6238_v0  ;;  %v590_v30 = vld [vmem:[%s6604_s15 + $0x110] sm:$0xff]  ;;  %vm442_vm5 = vcmp.eq.s32.totalorder %v389_v27, 0  ;;  %vm490_vm9 = vcmp.ne.s32.totalorder %v6774_v13, %v389_v27  ;;  %v681_v13 = vld [vmem:[%s6604_s15 + $0x3e8] sm:$0xff]  ;;  %v663_v18 = vld [vmem:[%s6604_s15 + $0x358] sm:$0xff] }
  0xd8   : > { %4849 = vmatprep.subr.bf16.mxu1 %v6238_v0  ;;  %v957_v36 = vpack.c.bf16 %v591_v31, %v590_v30  ;;  %v6800_v30 = vsel %vm393_vm4, %v6653_v33, 128  ;;  %v6804_v34 = vsel %vm442_vm5, %v6653_v33, 128  ;;  %v676_v27 = vld [vmem:[%s6604_s15 + $0x3c0] sm:$0xff]  ;;  %vm3683_vm4 = vcmask 1044484  }
  0xd9   : > { %v413_v31 = vshra.s32 %v6800_v30, 16  ;;  %v475_v35 = vshra.s32 %v6804_v34, 16 }
  0xde   : > { %4830 = vmatpush3.bf16.xpose.msra.mxu0 %v942_v40  ;;  %v589_v40 = vld [vmem:[%s6604_s15 + $0x108] sm:$0xff] }
  0xdf   : > { %4850 = vmatpush3.bf16.xpose.msra.mxu1 %v950_v41  ;;  %4831 = vmatprep.subr.bf16.mxu0 %v6238_v0  ;;  %v604_v41 = vld [vmem:[%s6604_s15 + $0x180] sm:$0xff]  ;;  %v956_v44 = vpack.c.bf16 %v589_v40, %v588_v39  ;;  %v622_v39 = vld [vmem:[%s6604_s15 + $0x210] sm:$0xff]  ;;  %v623_v40 = vld [vmem:[%s6604_s15 + $0x218] sm:$0xff] }
  0xe0   : > { %4851 = vmatprep.subr.bf16.mxu1 %v6238_v0  ;;  %v964_v45 = vpack.c.bf16 %v605_v43, %v604_v41  ;;  %v6814_v41 = vcvt.s32.f32 %v475_v35 }
  0xe6   : > { %4832 = vmatpush3.bf16.xpose.msra.mxu0 %v941_v47  ;;  %v635_v47 = vld [vmem:[%s6604_s15 + $0x278] sm:$0xff] }
  0xe7   : > { %4852 = vmatpush3.bf16.xpose.msra.mxu1 %v949_v48  ;;  %4833 = vmatprep.subr.bf16.mxu0 %v6238_v0  ;;  %v650_v48 = vld [vmem:[%s6604_s15 + $0x2f0] sm:$0xff]  ;;  %v979_v50 = vpack.c.bf16 %v635_v47, %v634_v46 }
  0xe8   : > { %4853 = vmatprep.subr.bf16.mxu1 %v6238_v0  ;;  %v987_v51 = vpack.c.bf16 %v651_v49, %v650_v48  ;;  %v973_v49 = vpack.c.bf16 %v623_v40, %v622_v39  ;;  %v659_v39 = vld [vmem:[%s6604_s15 + $0x338] sm:$0xff]  ;;  %v674_v40 = vld [vmem:[%s6604_s15 + $0x3b0] sm:$0xff] }
  0xee   : > { %4834 = vmatpush3.bf16.xpose.msra.mxu0 %v940_v53  ;;  %v633_v53 = vld [vmem:[%s6604_s15 + $0x268] sm:$0xff] }
  0xef   : > { %4854 = vmatpush3.bf16.xpose.msra.mxu1 %v948_v54  ;;  %4859 = vmatprep.subr.bf16.mxu0 %v6238_v0  ;;  %v648_v54 = vld [vmem:[%s6604_s15 + $0x2e0] sm:$0xff]  ;;  %v978_v56 = vpack.c.bf16 %v633_v53, %v632_v52 }
  0xf0   : > { %4879 = vmatprep.subr.bf16.mxu1 %v6238_v0  ;;  %v986_v57 = vpack.c.bf16 %v649_v55, %v648_v54  ;;  %v398_v55 = vand.u32 65535, %v6663_v38  ;;  %v6852_v38 = vsel %vm490_vm9, %v6653_v33, 128 }
  0xf5   : > { %4836 = vmatmul.mubr.bf16.vlgmr.msra.gmra.mxu0 %v6687_v60 }
  0xf6   : > { %4856 = vmatmul.mubr.bf16.vlgmr.msra.gmra.mxu1 %v6687_v60  ;;  %4860 = vmatpush3.bf16.xpose.msra.mxu0 %v963_v61  ;;  %v646_v61 = vld [vmem:[%s6604_s15 + $0x2d0] sm:$0xff] }
  0xf7   : > { %4880 = vmatpush3.bf16.xpose.msra.mxu1 %v971_v62  ;;  %4861 = vmatprep.subr.bf16.mxu0 %v6238_v0  ;;  %v647_v62 = vld [vmem:[%s6604_s15 + $0x2d8] sm:$0xff] }
  0xf8   : > { %4881 = vmatprep.subr.bf16.mxu1 %v6238_v0  ;;  %4875 = vmatprep.mubr.msk.bf16.mxu0 %vm6239_vm0, %v6238_v0  ;;  %v985_v1 = vpack.c.bf16 %v647_v62, %v646_v61  ;;  %v636_v61 = vld [vmem:[%s6604_s15 + $0x280] sm:$0xff]  ;;  %v637_v62 = vld [vmem:[%s6604_s15 + $0x288] sm:$0xff] }
  0xf9   : > { %4895 = vmatprep.mubr.msk.bf16.mxu1 %vm6239_vm0, %v6238_v0 }
  0xfe   : > { %4862 = vmatpush3.bf16.xpose.msra.mxu0 %v962_v4  ;;  %v644_v4 = vld [vmem:[%s6604_s15 + $0x2c0] sm:$0xff] }
  0xff   : > { %4882 = vmatpush3.bf16.xpose.msra.mxu1 %v970_v5  ;;  %4863 = vmatprep.subr.bf16.mxu0 %v6238_v0  ;;  %v645_v5 = vld [vmem:[%s6604_s15 + $0x2c8] sm:$0xff] }
 0x100   : > { %4883 = vmatprep.subr.bf16.mxu1 %v6238_v0  ;;  %v984_v7 = vpack.c.bf16 %v645_v5, %v644_v4  ;;  %v666_v4 = vld [vmem:[%s6604_s15 + $0x370] sm:$0xff]  ;;  %v667_v5 = vld [vmem:[%s6604_s15 + $0x378] sm:$0xff] }
 0x101   : > { %v995_v8 = vpack.c.bf16 %v667_v5, %v666_v4  ;;  %v668_v4 = vld [vmem:[%s6604_s15 + $0x380] sm:$0xff]  ;;  %v669_v5 = vld [vmem:[%s6604_s15 + $0x388] sm:$0xff] }
 0x106   : > { %4864 = vmatpush3.bf16.xpose.msra.mxu0 %v961_v10  ;;  %v642_v10 = vld [vmem:[%s6604_s15 + $0x2b0] sm:$0xff] }
 0x107   : > { %4884 = vmatpush3.bf16.xpose.msra.mxu1 %v969_v11  ;;  %4865 = vmatprep.subr.bf16.mxu0 %v6238_v0  ;;  %v643_v11 = vld [vmem:[%s6604_s15 + $0x2b8] sm:$0xff] }
 0x108   : > { %4885 = vmatprep.subr.bf16.mxu1 %v6238_v0  ;;  %v983_v14 = vpack.c.bf16 %v643_v11, %v642_v10  ;;  %v664_v10 = vld [vmem:[%s6604_s15 + $0x360] sm:$0xff]  ;;  %v665_v11 = vld [vmem:[%s6604_s15 + $0x368] sm:$0xff] }
 0x10e   : > { %4866 = vmatpush3.bf16.xpose.msra.mxu0 %v960_v16  ;;  %v427_v16 = vshra.s32 %v6778_v15, 16 }
 0x10f   : > { %4886 = vmatpush3.bf16.xpose.msra.mxu1 %v968_v17  ;;  %4867 = vmatprep.subr.bf16.mxu0 %v6238_v0  ;;  %v387_v17 = vld [vmem:[%s6596_s6] sm:$0xff] }
 0x110   : > { %4887 = vmatprep.subr.bf16.mxu1 %v6238_v0  ;;  %v6785_v20 = vcvt.s32.f32 %v427_v16  ;;  %vm440_vm3 = vcmp.eq.s32.totalorder %v387_v17, 0  ;;  %vm488_vm8 = vcmp.ne.s32.totalorder %v6651_v32, %v387_v17  ;;  %v662_v17 = vld [vmem:[%s6604_s15 + $0x350] sm:$0xff] }
 0x111   : > { %v6835_v53 = vsel %vm488_vm8, %v6653_v33, 128  ;;  %vm3692_vm8 = vcmask 1047559  }
 0x112   : > { %430 = vmin.xlane.f32.xlu1 %v6785_v20  ;;  %v495_v54 = vshra.s32 %v6835_v53, 16 }
 0x114   : > { %v6843_v32 = vcvt.s32.f32 %v495_v54  ;;  %v673_v54 = vld [vmem:[%s6604_s15 + $0x3a8] sm:$0xff] }
 0x116   : > { %4868 = vmatpush3.bf16.xpose.msra.mxu0 %v959_v22  ;;  %v641_v22 = vld [vmem:[%s6604_s15 + $0x2a8] sm:$0xff] }
 0x117   : > { %4888 = vmatpush3.bf16.xpose.msra.mxu1 %v967_v23  ;;  %4869 = vmatprep.subr.bf16.mxu0 %v6238_v0  ;;  %v6791_v23 = vsel %vm440_vm3, %v6653_v33, 128  ;;  %vm3680_vm3 = vcmask 1043459  }
 0x118   : > { %4889 = vmatprep.subr.bf16.mxu1 %v6238_v0  ;;  %v447_v24 = vshra.s32 %v6791_v23, 16 }
 0x11e   : > { %4870 = vmatpush3.bf16.xpose.msra.mxu0 %v958_v28  ;;  %v982_v28 = vpack.c.bf16 %v641_v22, %v640_v21  ;;  %v679_v21 = vld [vmem:[%s6604_s15 + $0x3d8] sm:$0xff]  ;;  %v993_v22 = vpack.c.bf16 %v663_v18, %v662_v17  ;;  %v696_v18 = vld [vmem:[%s6604_s15 + $0x460] sm:$0xff] }
 0x11f   : > { %4890 = vmatpush3.bf16.xpose.msra.mxu1 %v966_v29  ;;  %4871 = vmatprep.subr.bf16.mxu0 %v6238_v0  ;;  %v6797_v29 = vcvt.s32.f32 %v447_v24  ;;  %v1001_v24 = vpack.c.bf16 %v679_v21, %v678_v19  ;;  %v697_v19 = vld [vmem:[%s6604_s15 + $0x468] sm:$0xff] }
 0x120   : > { %4891 = vmatprep.subr.bf16.mxu1 %v6238_v0 }
 0x121   : > { %450 = vmin.xlane.f32.xlu1 %v6797_v29 }
 0x125   : > { %478 = vmin.xlane.f32.xlu1 %v6814_v41 }
 0x126   : > { %4872 = vmatpush3.bf16.xpose.msra.mxu0 %v957_v36  ;;  %v388_v36 = vld [vmem:[%s6596_s6 + $0x8] sm:$0xff] }
 0x127   : > { %4892 = vmatpush3.bf16.xpose.msra.mxu1 %v965_v37  ;;  %4873 = vmatprep.subr.bf16.mxu0 %v6238_v0  ;;  %v6809_v37 = vcvt.s32.f32 %v413_v31  ;;  %vm441_vm6 = vcmp.eq.s32.totalorder %v388_v36, 0  ;;  %vm489_vm7 = vcmp.ne.s32.totalorder %v385_v25, %v388_v36  ;;  %v660_v25 = vld [vmem:[%s6604_s15 + $0x340] sm:$0xff]  ;;  %v658_v36 = vld [vmem:[%s6604_s15 + $0x330] sm:$0xff] }
 0x128   : > { %4893 = vmatprep.subr.bf16.mxu1 %v6238_v0  ;;  %v6817_v43 = vsel %vm441_vm6, %v6653_v33, 128  ;;  %v6825_v47 = vsel %vm489_vm7, %v6653_v33, 128  ;;  %vm3686_vm6 = vcmask 1045509   ;;  %vm3689_vm7 = vcmask 1046534  }
 0x129   : > { %416 = vmin.xlane.f32.xlu0 %v6809_v37  ;;  %v461_v46 = vshra.s32 %v6817_v43, 16  ;;  %v509_v48 = vshra.s32 %v6825_v47, 16 }
 0x12b   : > { %v6832_v52 = vcvt.s32.f32 %v509_v48  ;;  %v656_v48 = vld [vmem:[%s6604_s15 + $0x320] sm:$0xff] }
 0x12d   : > { %512 = vmin.xlane.f32.xlu1 %v6832_v52 }
 0x12e   : > { %4874 = vmatpush3.bf16.xpose.msra.mxu0 %v956_v44  ;;  %v638_v44 = vld [vmem:[%s6604_s15 + $0x290] sm:$0xff] }
 0x12f   : > { %4894 = vmatpush3.bf16.xpose.msra.mxu1 %v964_v45  ;;  %4899 = vmatprep.subr.bf16.mxu0 %v6238_v0  ;;  %v639_v45 = vld [vmem:[%s6604_s15 + $0x298] sm:$0xff] }
 0x130   : > { %4919 = vmatprep.subr.bf16.mxu1 %v6238_v0 }
 0x135   : > { %4876 = vmatmul.mubr.bf16.vlgmr.msra.gmra.mxu0 %v6687_v60 }
 0x136   : > { %4896 = vmatmul.mubr.bf16.vlgmr.msra.gmra.mxu1 %v6687_v60  ;;  %4900 = vmatpush3.bf16.xpose.msra.mxu0 %v979_v50  ;;  %v6829_v50 = vcvt.s32.f32 %v461_v46 }
 0x137   : > { %4920 = vmatpush3.bf16.xpose.msra.mxu1 %v987_v51  ;;  %4901 = vmatprep.subr.bf16.mxu0 %v6238_v0  ;;  %v981_v51 = vpack.c.bf16 %v639_v45, %v638_v44  ;;  %v675_v44 = vld [vmem:[%s6604_s15 + $0x3b8] sm:$0xff]  ;;  %v991_v45 = vpack.c.bf16 %v659_v39, %v658_v36  ;;  %v694_v36 = vld [vmem:[%s6604_s15 + $0x450] sm:$0xff] }
 0x138   : > { %4921 = vmatprep.subr.bf16.mxu1 %v6238_v0  ;;  %4915 = vmatprep.mubr.msk.bf16.mxu0 %vm6239_vm0, %v6238_v0  ;;  %v999_v46 = vpack.c.bf16 %v675_v44, %v674_v40  ;;  %v695_v39 = vld [vmem:[%s6604_s15 + $0x458] sm:$0xff]  ;;  %v710_v40 = vld [vmem:[%s6604_s15 + $0x4d0] sm:$0xff] }
 0x139   : > { %4935 = vmatprep.mubr.msk.bf16.mxu1 %vm6239_vm0, %v6238_v0  ;;  %464 = vmin.xlane.f32.xlu0 %v6829_v50  ;;  %v711_v44 = vld [vmem:[%s6604_s15 + $0x4d8] sm:$0xff] }
 0x13d   : > { %498 = vmin.xlane.f32.xlu0 %v6843_v32 }
 0x13e   : > { %4902 = vmatpush3.bf16.xpose.msra.mxu0 %v978_v56 }
 0x13f   : > { %4922 = vmatpush3.bf16.xpose.msra.mxu1 %v986_v57  ;;  %4903 = vmatprep.subr.bf16.mxu0 %v6238_v0  ;;  %v400_v57 = vcvt.s32.f32 %v398_v55 }
 0x140   : > { %4923 = vmatprep.subr.bf16.mxu1 %v6238_v0 }
 0x146   : > { %4904 = vmatpush3.bf16.xpose.msra.mxu0 %v977_v63 }
 0x147   : > { %4924 = vmatpush3.bf16.xpose.msra.mxu1 %v985_v1  ;;  %4905 = vmatprep.subr.bf16.mxu0 %v6238_v0  ;;  %v523_v1 = vshra.s32 %v6852_v38, 16 }
 0x148   : > { %4925 = vmatprep.subr.bf16.mxu1 %v6238_v0 }
 0x149   : > { %v6859_v3 = vcvt.s32.f32 %v523_v1 }
 0x14b   : > { %v6841_v56 = vpop.xlane.xlu0 %402  ;;  %526 = vmin.xlane.f32.xlu0 %v6859_v3 }
 0x14c   : > { %vm404_vm10 = vcmp.eq.f32.partialorder %v6666_v42, %v6841_v56  ;;  %v980_v42 = vpack.c.bf16 %v637_v62, %v636_v61  ;;  %v670_v61 = vld [vmem:[%s6604_s15 + $0x390] sm:$0xff]  ;;  %v671_v62 = vld [vmem:[%s6604_s15 + $0x398] sm:$0xff] }
 0x14d   : > { %v405_v63 = vsel %vm404_vm10, %v400_v57, inf  ;;  %v997_v1 = vpack.c.bf16 %v671_v62, %v670_v61  ;;  %v706_v61 = vld [vmem:[%s6604_s15 + $0x4b0] sm:$0xff]  ;;  %v707_v62 = vld [vmem:[%s6604_s15 + $0x4b8] sm:$0xff] }
 0x14e   : > { %4906 = vmatpush3.bf16.xpose.msra.mxu0 %v976_v6  ;;  %406 = vmin.xlane.f32.xlu1 %v405_v63  ;;  %v682_v6 = vld [vmem:[%s6604_s15 + $0x3f0] sm:$0xff]  ;;  %v989_v63 = vpack.c.bf16 %v655_v59, %v654_v58  ;;  %v691_v59 = vld [vmem:[%s6604_s15 + $0x438] sm:$0xff] }
 0x14f   : > { %4926 = vmatpush3.bf16.xpose.msra.mxu1 %v984_v7  ;;  %4907 = vmatprep.subr.bf16.mxu0 %v6238_v0  ;;  %v683_v7 = vld [vmem:[%s6604_s15 + $0x3f8] sm:$0xff]  ;;  %v690_v58 = vld [vmem:[%s6604_s15 + $0x430] sm:$0xff] }
 0x150   : > { %4927 = vmatprep.subr.bf16.mxu1 %v6238_v0  ;;  %v1003_v9 = vpack.c.bf16 %v683_v7, %v682_v6  ;;  %v996_v7 = vpack.c.bf16 %v669_v5, %v668_v4  ;;  %v704_v4 = vld [vmem:[%s6604_s15 + $0x4a0] sm:$0xff]  ;;  %v705_v5 = vld [vmem:[%s6604_s15 + $0x4a8] sm:$0xff] }
 0x156   : > { %4908 = vmatpush3.bf16.xpose.msra.mxu0 %v975_v12  ;;  %v680_v12 = vld [vmem:[%s6604_s15 + $0x3e0] sm:$0xff] }
 0x157   : > { %4928 = vmatpush3.bf16.xpose.msra.mxu1 %v983_v14  ;;  %4909 = vmatprep.subr.bf16.mxu0 %v6238_v0  ;;  %v994_v14 = vpack.c.bf16 %v665_v11, %v664_v10  ;;  %v1002_v16 = vpack.c.bf16 %v681_v13, %v680_v12  ;;  %v714_v10 = vld [vmem:[%s6604_s15 + $0x4f0] sm:$0xff]  ;;  %v715_v11 = vld [vmem:[%s6604_s15 + $0x4f8] sm:$0xff] }
 0x158   : > { %4929 = vmatprep.subr.bf16.mxu1 %v6238_v0  ;;  %v1019_v13 = vpack.c.bf16 %v715_v11, %v714_v10  ;;  %v702_v10 = vld [vmem:[%s6604_s15 + $0x490] sm:$0xff]  ;;  %v703_v11 = vld [vmem:[%s6604_s15 + $0x498] sm:$0xff] }
 0x15e   : > { %4910 = vmatpush3.bf16.xpose.msra.mxu0 %v974_v26  ;;  %v661_v26 = vld [vmem:[%s6604_s15 + $0x348] sm:$0xff] }
 0x15f   : > { %4930 = vmatpush3.bf16.xpose.msra.mxu1 %v982_v28  ;;  %4911 = vmatprep.subr.bf16.mxu0 %v6238_v0  ;;  %v677_v28 = vld [vmem:[%s6604_s15 + $0x3c8] sm:$0xff]  ;;  %v992_v31 = vpack.c.bf16 %v661_v26, %v660_v25 }
 0x160   : > { %4931 = vmatprep.subr.bf16.mxu1 %v6238_v0  ;;  %v1000_v35 = vpack.c.bf16 %v677_v28, %v676_v27  ;;  %v1010_v27 = vpack.c.bf16 %v697_v19, %v696_v18  ;;  %v685_v18 = vld [vmem:[%s6604_s15 + $0x408] sm:$0xff] }
 0x166   : > { %4912 = vmatpush3.bf16.xpose.msra.mxu0 %v973_v49  ;;  %v657_v49 = vld [vmem:[%s6604_s15 + $0x328] sm:$0xff] }
 0x167   : > { %4932 = vmatpush3.bf16.xpose.msra.mxu1 %v981_v51  ;;  %4913 = vmatprep.subr.bf16.mxu0 %v6238_v0  ;;  %v672_v51 = vld [vmem:[%s6604_s15 + $0x3a0] sm:$0xff]  ;;  %v990_v55 = vpack.c.bf16 %v657_v49, %v656_v48  ;;  %v693_v49 = vld [vmem:[%s6604_s15 + $0x448] sm:$0xff] }
 0x168   : > { %4933 = vmatprep.subr.bf16.mxu1 %v6238_v0  ;;  %v998_v57 = vpack.c.bf16 %v673_v54, %v672_v51  ;;  %v692_v48 = vld [vmem:[%s6604_s15 + $0x440] sm:$0xff]  ;;  %v709_v54 = vld [vmem:[%s6604_s15 + $0x4c8] sm:$0xff] }
 0x169   : > { %v708_v51 = vld [vmem:[%s6604_s15 + $0x4c0] sm:$0xff] }
 0x16e   : > { %4914 = vmatpush3.bf16.xpose.msra.mxu0 %v972_v2  ;;  %v652_v2 = vld [vmem:[%s6604_s15 + $0x300] sm:$0xff] }
 0x16f   : > { %4934 = vmatpush3.bf16.xpose.msra.mxu1 %v980_v42  ;;  %4939 = vmatprep.subr.bf16.mxu0 %v6238_v0  ;;  %v653_v42 = vld [vmem:[%s6604_s15 + $0x308] sm:$0xff] }
 0x170   : > { %4959 = vmatprep.subr.bf16.mxu1 %v6238_v0  ;;  %v988_v6 = vpack.c.bf16 %v653_v42, %v652_v2  ;;  %v688_v2 = vld [vmem:[%s6604_s15 + $0x420] sm:$0xff]  ;;  %v689_v42 = vld [vmem:[%s6604_s15 + $0x428] sm:$0xff] }
 0x175   : > { %4916 = vmatmul.mubr.bf16.vlgmr.msra.gmra.mxu0 %v6687_v60 }
 0x176   : > { %4936 = vmatmul.mubr.bf16.vlgmr.msra.gmra.mxu1 %v6687_v60  ;;  %4940 = vmatpush3.bf16.xpose.msra.mxu0 %v995_v8  ;;  %v698_v8 = vld [vmem:[%s6604_s15 + $0x470] sm:$0xff] }
 0x177   : > { %4960 = vmatpush3.bf16.xpose.msra.mxu1 %v1003_v9  ;;  %4941 = vmatprep.subr.bf16.mxu0 %v6238_v0  ;;  %v699_v9 = vld [vmem:[%s6604_s15 + $0x478] sm:$0xff] }
 0x178   : > { %4961 = vmatprep.subr.bf16.mxu1 %v6238_v0  ;;  %4955 = vmatprep.mubr.msk.bf16.mxu0 %vm6239_vm0, %v6238_v0  ;;  %v1011_v12 = vpack.c.bf16 %v699_v9, %v698_v8  ;;  %v686_v8 = vld [vmem:[%s6604_s15 + $0x410] sm:$0xff]  ;;  %v687_v9 = vld [vmem:[%s6604_s15 + $0x418] sm:$0xff] }
 0x179   : > { %4975 = vmatprep.mubr.msk.bf16.mxu1 %vm6239_vm0, %v6238_v0 }
 0x17e   : > { %4942 = vmatpush3.bf16.xpose.msra.mxu0 %v994_v14 }
 0x17f   : > { %4962 = vmatpush3.bf16.xpose.msra.mxu1 %v1002_v16  ;;  %4943 = vmatprep.subr.bf16.mxu0 %v6238_v0 }
 0x180   : > { %4963 = vmatprep.subr.bf16.mxu1 %v6238_v0 }
 0x186   : > { %4944 = vmatpush3.bf16.xpose.msra.mxu0 %v993_v22  ;;  %v712_v22 = vld [vmem:[%s6604_s15 + $0x4e0] sm:$0xff] }
 0x187   : > { %4964 = vmatpush3.bf16.xpose.msra.mxu1 %v1001_v24  ;;  %4945 = vmatprep.subr.bf16.mxu0 %v6238_v0  ;;  %v713_v24 = vld [vmem:[%s6604_s15 + $0x4e8] sm:$0xff] }
 0x188   : > { %4965 = vmatprep.subr.bf16.mxu1 %v6238_v0 }
 0x18e   : > { %4946 = vmatpush3.bf16.xpose.msra.mxu0 %v992_v31  ;;  %v1018_v31 = vpack.c.bf16 %v713_v24, %v712_v22  ;;  %v700_v22 = vld [vmem:[%s6604_s15 + $0x480] sm:$0xff]  ;;  %v701_v24 = vld [vmem:[%s6604_s15 + $0x488] sm:$0xff] }
 0x18f   : > { %4966 = vmatpush3.bf16.xpose.msra.mxu1 %v1000_v35  ;;  %4947 = vmatprep.subr.bf16.mxu0 %v6238_v0 }
 0x190   : > { %4967 = vmatprep.subr.bf16.mxu1 %v6238_v0 }
 0x196   : > { %4948 = vmatpush3.bf16.xpose.msra.mxu0 %v991_v45  ;;  %v1009_v45 = vpack.c.bf16 %v695_v39, %v694_v36  ;;  %v731_v39 = vld [vmem:[%s6604_s15 + $0x578] sm:$0xff] }
 0x197   : > { %4968 = vmatpush3.bf16.xpose.msra.mxu1 %v999_v46  ;;  %4949 = vmatprep.subr.bf16.mxu0 %v6238_v0  ;;  %v1017_v46 = vpack.c.bf16 %v711_v44, %v710_v40  ;;  %v494_v44 = vand.u32 65535, %v6835_v53 }
 0x198   : > { %4969 = vmatprep.subr.bf16.mxu1 %v6238_v0 }
 0x19b   : > { %v6971_v19 = vpop.xlane.xlu1 %430 }
 0x19c   : > { %vm432_vm11 = vcmp.eq.f32.partialorder %v6785_v20, %v6971_v19  ;;  %v730_v20 = vld [vmem:[%s6604_s15 + $0x570] sm:$0xff] }
 0x19e   : > { %4950 = vmatpush3.bf16.xpose.msra.mxu0 %v990_v55  ;;  %v1008_v55 = vpack.c.bf16 %v693_v49, %v692_v48  ;;  %v496_v48 = vcvt.s32.f32 %v494_v44  ;;  %v1027_v49 = vpack.c.bf16 %v731_v39, %v730_v20  ;;  %v720_v20 = vld [vmem:[%s6604_s15 + $0x520] sm:$0xff]  ;;  %v721_v39 = vld [vmem:[%s6604_s15 + $0x528] sm:$0xff] }
 0x19f   : > { %4970 = vmatpush3.bf16.xpose.msra.mxu1 %v998_v57  ;;  %4951 = vmatprep.subr.bf16.mxu0 %v6238_v0  ;;  %v1016_v57 = vpack.c.bf16 %v709_v54, %v708_v51  ;;  %v522_v54 = vand.u32 65535, %v6852_v38  ;;  %v728_v38 = vld [vmem:[%s6604_s15 + $0x560] sm:$0xff]  ;;  %v737_v44 = vld [vmem:[%s6604_s15 + $0x5a8] sm:$0xff] }
 0x1a0   : > { %4971 = vmatprep.subr.bf16.mxu1 %v6238_v0 }
 0x1a6   : > { %4952 = vmatpush3.bf16.xpose.msra.mxu0 %v989_v63  ;;  %v1007_v63 = vpack.c.bf16 %v691_v59, %v690_v58  ;;  %v729_v59 = vld [vmem:[%s6604_s15 + $0x568] sm:$0xff] }
 0x1a7   : > { %4972 = vmatpush3.bf16.xpose.msra.mxu1 %v997_v1  ;;  %4953 = vmatprep.subr.bf16.mxu0 %v6238_v0  ;;  %v1015_v1 = vpack.c.bf16 %v707_v62, %v706_v61 }
 0x1a8   : > { %4973 = vmatprep.subr.bf16.mxu1 %v6238_v0 }
 0x1ae   : > { %4954 = vmatpush3.bf16.xpose.msra.mxu0 %v988_v6  ;;  %v1006_v6 = vpack.c.bf16 %v689_v42, %v688_v2  ;;  %v1026_v42 = vpack.c.bf16 %v729_v59, %v728_v38  ;;  %v717_v38 = vld [vmem:[%s6604_s15 + $0x508] sm:$0xff]  ;;  %v732_v59 = vld [vmem:[%s6604_s15 + $0x580] sm:$0xff] }
 0x1af   : > { %4974 = vmatpush3.bf16.xpose.msra.mxu1 %v996_v7  ;;  %4979 = vmatprep.subr.bf16.mxu0 %v6238_v0  ;;  %v1014_v7 = vpack.c.bf16 %v705_v5, %v704_v4 }
 0x1b0   : > { %4999 = vmatprep.subr.bf16.mxu1 %v6238_v0 }
 0x1b5   : > { %v6922_v14 = vpop.f32.mrf.mxu0  ;;  %4956 = vmatmul.mubr.bf16.vlgmr.msra.gmra.mxu0 %v6687_v60 }
 0x1b6   : > { %v6925_v16 = vpop.f32.mrf.mxu1  ;;  %4976 = vmatmul.mubr.bf16.vlgmr.msra.gmra.mxu1 %v6687_v60  ;;  %4980 = vmatpush3.bf16.xpose.msra.mxu0 %v1011_v12  ;;  %v1005_v12 = vpack.c.bf16 %v687_v9, %v686_v8  ;;  %v727_v8 = vld [vmem:[%s6604_s15 + $0x558] sm:$0xff]  ;;  %v742_v9 = vld [vmem:[%s6604_s15 + $0x5d0] sm:$0xff] }
 0x1b7   : > { %5000 = vmatpush3.bf16.xpose.msra.mxu1 %v1019_v13  ;;  %v4837_v17 = vpop.f32.mrf.mxu0  ;;  %4981 = vmatprep.subr.bf16.mxu0 %v6238_v0  ;;  %v1013_v13 = vpack.c.bf16 %v703_v11, %v702_v10  ;;  %v743_v10 = vld [vmem:[%s6604_s15 + $0x5d8] sm:$0xff] }
 0x1b8   : > { %v4857_v21 = vpop.f32.mrf.mxu1  ;;  %5001 = vmatprep.subr.bf16.mxu1 %v6238_v0  ;;  %4995 = vmatprep.mubr.msk.bf16.mxu0 %vm6239_vm0, %v6238_v0  ;;  %v684_v17 = vld [vmem:[%s6604_s15 + $0x400] sm:$0xff] }
 0x1b9   : > { %v1169_v25 = vpop.f32.mrf.mxu0  ;;  %5015 = vmatprep.mubr.msk.bf16.mxu1 %vm6239_vm0, %v6238_v0  ;;  %v426_v21 = vand.u32 65535, %v6778_v15 }
 0x1ba   : > { %v1209_v26 = vpop.f32.mrf.mxu1  ;;  %v6979_v25 = vpop.xlane.xlu0 %416 }
 0x1bb   : > { %v4838_v28 = vpop.f32.mrf.mxu0  ;;  %v428_v26 = vcvt.s32.f32 %v426_v21  ;;  %v741_v21 = vld [vmem:[%s6604_s15 + $0x5c8] sm:$0xff]  ;;  %vm418_vm15 = vcmp.eq.f32.partialorder %v6809_v37, %v6979_v25 }
 0x1bc   : > { %v4858_v35 = vpop.f32.mrf.mxu1  ;;  %v1012_v28 = vpack.c.bf16 %v701_v24, %v700_v22 }
 0x1bd   : > { %v460_v35 = vand.u32 65535, %v6817_v43  ;;  %v747_v43 = vld [vmem:[%s6604_s15 + $0x5f8] sm:$0xff] }
 0x1be   : > { %4982 = vmatpush3.bf16.xpose.msra.mxu0 %v1010_v27  ;;  %v1004_v27 = vpack.c.bf16 %v685_v18, %v684_v17  ;;  %v725_v17 = vld [vmem:[%s6604_s15 + $0x548] sm:$0xff]  ;;  %v740_v18 = vld [vmem:[%s6604_s15 + $0x5c0] sm:$0xff] }
 0x1bf   : > { %5002 = vmatpush3.bf16.xpose.msra.mxu1 %v1018_v31  ;;  %4983 = vmatprep.subr.bf16.mxu0 %v6238_v0  ;;  %v433_v31 = vsel %vm432_vm11, %v428_v26, inf  ;;  %v462_v36 = vcvt.s32.f32 %v460_v35  ;;  %v1032_v24 = vpack.c.bf16 %v741_v21, %v740_v18  ;;  %v722_v26 = vld [vmem:[%s6604_s15 + $0x530] sm:$0xff] }
 0x1c0   : > { %5003 = vmatprep.subr.bf16.mxu1 %v6238_v0  ;;  %434 = vmin.xlane.f32.xlu1 %v433_v31  ;;  %v739_v31 = vld [vmem:[%s6604_s15 + $0x5b8] sm:$0xff] }
 0x1c2   : > { %v6982_v15 = vpop.xlane.xlu0 %464 }
 0x1c3   : > { %vm466_vm12 = vcmp.eq.f32.partialorder %v6829_v50, %v6982_v15 }
 0x1c4   : > { %v467_v40 = vsel %vm466_vm12, %v462_v36, inf }
 0x1c5   : > { %468 = vmin.xlane.f32.xlu1 %v467_v40  ;;  %v736_v40 = vld [vmem:[%s6604_s15 + $0x5a0] sm:$0xff] }
 0x1c6   : > { %4984 = vmatpush3.bf16.xpose.msra.mxu0 %v1009_v45  ;;  %v746_v45 = vld [vmem:[%s6604_s15 + $0x5f0] sm:$0xff] }
 0x1c7   : > { %5004 = vmatpush3.bf16.xpose.msra.mxu1 %v1017_v46  ;;  %4985 = vmatprep.subr.bf16.mxu0 %v6238_v0  ;;  %v6993_v46 = vpop.xlane.xlu0 %498  ;;  %v1035_v50 = vpack.c.bf16 %v747_v43, %v746_v45  ;;  %v1022_v45 = vpack.c.bf16 %v721_v39, %v720_v20  ;;  %v1030_v43 = vpack.c.bf16 %v737_v44, %v736_v40  ;;  %v756_v39 = vld [vmem:[%s6604_s15 + $0x640] sm:$0xff]  ;;  %v757_v40 = vld [vmem:[%s6604_s15 + $0x648] sm:$0xff] }
 0x1c8   : > { %5005 = vmatprep.subr.bf16.mxu1 %v6238_v0  ;;  %vm500_vm13 = vcmp.eq.f32.partialorder %v6843_v32, %v6993_v46  ;;  %v772_v44 = vld [vmem:[%s6604_s15 + $0x6c0] sm:$0xff] }
 0x1c9   : > { %v501_v51 = vsel %vm500_vm13, %v496_v48, inf  ;;  %v718_v48 = vld [vmem:[%s6604_s15 + $0x510] sm:$0xff] }
 0x1ca   : > { %502 = vmin.xlane.f32.xlu1 %v501_v51  ;;  %v735_v51 = vld [vmem:[%s6604_s15 + $0x598] sm:$0xff] }
 0x1ce   : > { %4986 = vmatpush3.bf16.xpose.msra.mxu0 %v1008_v55 }
 0x1cf   : > { %5006 = vmatpush3.bf16.xpose.msra.mxu1 %v1016_v57  ;;  %4987 = vmatprep.subr.bf16.mxu0 %v6238_v0  ;;  %v524_v57 = vcvt.s32.f32 %v522_v54 }
 0x1d0   : > { %5007 = vmatprep.subr.bf16.mxu1 %v6238_v0 }
 0x1d4   : > { %v7001_v55 = vpop.xlane.xlu0 %526 }
 0x1d5   : > { %vm528_vm14 = vcmp.eq.f32.partialorder %v6859_v3, %v7001_v55 }
 0x1d6   : > { %4988 = vmatpush3.bf16.xpose.msra.mxu0 %v1007_v63  ;;  %v529_v61 = vsel %vm528_vm14, %v524_v57, inf  ;;  %v744_v63 = vld [vmem:[%s6604_s15 + $0x5e0] sm:$0xff] }
 0x1d7   : > { %5008 = vmatpush3.bf16.xpose.msra.mxu1 %v1015_v1  ;;  %4989 = vmatprep.subr.bf16.mxu0 %v6238_v0  ;;  %v745_v1 = vld [vmem:[%s6604_s15 + $0x5e8] sm:$0xff] }
 0x1d8   : > { %5009 = vmatprep.subr.bf16.mxu1 %v6238_v0  ;;  %530 = vmin.xlane.f32.xlu1 %v529_v61  ;;  %v1034_v5 = vpack.c.bf16 %v745_v1, %v744_v63  ;;  %v733_v61 = vld [vmem:[%s6604_s15 + $0x588] sm:$0xff]  ;;  %v762_v1 = vld [vmem:[%s6604_s15 + $0x670] sm:$0xff] }
 0x1d9   : > { %v1028_v63 = vpack.c.bf16 %v733_v61, %v732_v59  ;;  %v752_v59 = vld [vmem:[%s6604_s15 + $0x620] sm:$0xff]  ;;  %v753_v61 = vld [vmem:[%s6604_s15 + $0x628] sm:$0xff] }
 0x1de   : > { %4990 = vmatpush3.bf16.xpose.msra.mxu0 %v1006_v6 }
 0x1df   : > { %5010 = vmatpush3.bf16.xpose.msra.mxu1 %v1014_v7  ;;  %4991 = vmatprep.subr.bf16.mxu0 %v6238_v0  ;;  %v726_v7 = vld [vmem:[%s6604_s15 + $0x550] sm:$0xff] }
 0x1e0   : > { %5011 = vmatprep.subr.bf16.mxu1 %v6238_v0  ;;  %v1025_v11 = vpack.c.bf16 %v727_v8, %v726_v7 }
 0x1e6   : > { %4992 = vmatpush3.bf16.xpose.msra.mxu0 %v1005_v12  ;;  %v1033_v12 = vpack.c.bf16 %v743_v10, %v742_v9  ;;  %v760_v9 = vld [vmem:[%s6604_s15 + $0x660] sm:$0xff]  ;;  %v761_v10 = vld [vmem:[%s6604_s15 + $0x668] sm:$0xff] }
 0x1e7   : > { %5012 = vmatpush3.bf16.xpose.msra.mxu1 %v1013_v13  ;;  %4993 = vmatprep.subr.bf16.mxu0 %v6238_v0  ;;  %v724_v13 = vld [vmem:[%s6604_s15 + $0x540] sm:$0xff]  ;;  %v1042_v21 = vpack.c.bf16 %v761_v10, %v760_v9  ;;  %v767_v9 = vld [vmem:[%s6604_s15 + $0x698] sm:$0xff] }
 0x1e8   : > { %5013 = vmatprep.subr.bf16.mxu1 %v6238_v0  ;;  %v1024_v22 = vpack.c.bf16 %v725_v17, %v724_v13  ;;  %v777_v13 = vld [vmem:[%s6604_s15 + $0x6e8] sm:$0xff] }
 0x1ee   : > { %4994 = vmatpush3.bf16.xpose.msra.mxu0 %v1004_v27  ;;  %v723_v27 = vld [vmem:[%s6604_s15 + $0x538] sm:$0xff] }
 0x1ef   : > { %5014 = vmatpush3.bf16.xpose.msra.mxu1 %v1012_v28  ;;  %5019 = vmatprep.subr.bf16.mxu0 %v6238_v0  ;;  %v738_v28 = vld [vmem:[%s6604_s15 + $0x5b0] sm:$0xff]  ;;  %v1023_v35 = vpack.c.bf16 %v723_v27, %v722_v26 }
 0x1f0   : > { %5039 = vmatprep.subr.bf16.mxu1 %v6238_v0  ;;  %v1031_v36 = vpack.c.bf16 %v739_v31, %v738_v28  ;;  %v758_v27 = vld [vmem:[%s6604_s15 + $0x650] sm:$0xff]  ;;  %v759_v28 = vld [vmem:[%s6604_s15 + $0x658] sm:$0xff] }
 0x1f1   : > { %v774_v31 = vld [vmem:[%s6604_s15 + $0x6d0] sm:$0xff] }
 0x1f5   : > { %v6998_v53 = vpop.f32.mrf.mxu0  ;;  %4996 = vmatmul.mubr.bf16.vlgmr.msra.gmra.mxu0 %v6687_v60 }
 0x1f6   : > { %v7003_v58 = vpop.f32.mrf.mxu1  ;;  %5016 = vmatmul.mubr.bf16.vlgmr.msra.gmra.mxu1 %v6687_v60  ;;  %5020 = vmatpush3.bf16.xpose.msra.mxu0 %v1027_v49  ;;  %v719_v49 = vld [vmem:[%s6604_s15 + $0x518] sm:$0xff] }
 0x1f7   : > { %5040 = vmatpush3.bf16.xpose.msra.mxu1 %v1035_v50  ;;  %v4877_v32 = vpop.f32.mrf.mxu0  ;;  %5021 = vmatprep.subr.bf16.mxu0 %v6238_v0  ;;  %v734_v50 = vld [vmem:[%s6604_s15 + $0x590] sm:$0xff]  ;;  %v1021_v54 = vpack.c.bf16 %v719_v49, %v718_v48 }
 0x1f8   : > { %v4897_v62 = vpop.f32.mrf.mxu1  ;;  %5041 = vmatprep.subr.bf16.mxu1 %v6238_v0  ;;  %5035 = vmatprep.mubr.msk.bf16.mxu0 %vm6239_vm0, %v6238_v0  ;;  %v1029_v57 = vpack.c.bf16 %v735_v51, %v734_v50  ;;  %v716_v32 = vld [vmem:[%s6604_s15 + $0x500] sm:$0xff]  ;;  %v754_v49 = vld [vmem:[%s6604_s15 + $0x630] sm:$0xff]  ;;  %v755_v50 = vld [vmem:[%s6604_s15 + $0x638] sm:$0xff] }
 0x1f9   : > { %v1249_v3 = vpop.f32.mrf.mxu0  ;;  %5055 = vmatprep.mubr.msk.bf16.mxu1 %vm6239_vm0, %v6238_v0  ;;  %v1020_v62 = vpack.c.bf16 %v717_v38, %v716_v32  ;;  %v770_v51 = vld [vmem:[%s6604_s15 + $0x6b0] sm:$0xff]  ;;  %v7094_v38 = vpop.xlane.xlu1 %450 }
 0x1fa   : > { %v1289_v2 = vpop.f32.mrf.mxu1  ;;  %v763_v3 = vld [vmem:[%s6604_s15 + $0x678] sm:$0xff]  ;;  %vm452_vm10 = vcmp.eq.f32.partialorder %v6797_v29, %v7094_v38 }
 0x1fb   : > { %v4878_v4 = vpop.f32.mrf.mxu0  ;;  %v778_v2 = vld [vmem:[%s6604_s15 + $0x6f0] sm:$0xff] }
 0x1fc   : > { %v4898_v6 = vpop.f32.mrf.mxu1  ;;  %v1043_v4 = vpack.c.bf16 %v763_v3, %v762_v1  ;;  %v1038_v3 = vpack.c.bf16 %v753_v61, %v752_v59  ;;  %v471_v61 = vcvt.f32.s32 %v6982_v15 }
 0x1fd   : > { %v7102_v1 = vpop.xlane.xlu1 %478 }
 0x1fe   : > { %5022 = vmatpush3.bf16.xpose.msra.mxu0 %v1026_v42  ;;  %v779_v42 = vld [vmem:[%s6604_s15 + $0x6f8] sm:$0xff]  ;;  %vm480_vm11 = vcmp.eq.f32.partialorder %v6814_v41, %v7102_v1 }
 0x1ff   : > { %5042 = vmatpush3.bf16.xpose.msra.mxu1 %v1034_v5  ;;  %5023 = vmatprep.subr.bf16.mxu0 %v6238_v0  ;;  %v1051_v5 = vpack.c.bf16 %v779_v42, %v778_v2  ;;  %v750_v42 = vld [vmem:[%s6604_s15 + $0x610] sm:$0xff] }
 0x200   : > { %5043 = vmatprep.subr.bf16.mxu1 %v6238_v0 }
 0x206   : > { %5024 = vmatpush3.bf16.xpose.msra.mxu0 %v1025_v11 }
 0x207   : > { %5044 = vmatpush3.bf16.xpose.msra.mxu1 %v1033_v12  ;;  %5025 = vmatprep.subr.bf16.mxu0 %v6238_v0  ;;  %v776_v12 = vld [vmem:[%s6604_s15 + $0x6e0] sm:$0xff] }
 0x208   : > { %5045 = vmatprep.subr.bf16.mxu1 %v6238_v0 }
 0x20e   : > { %5026 = vmatpush3.bf16.xpose.msra.mxu0 %v1024_v22 }
 0x20f   : > { %5046 = vmatpush3.bf16.xpose.msra.mxu1 %v1032_v24  ;;  %5027 = vmatprep.subr.bf16.mxu0 %v6238_v0  ;;  %v1050_v24 = vpack.c.bf16 %v777_v13, %v776_v12  ;;  %v409_v12 = vcvt.f32.s32 %v6841_v56  ;;  %v412_v13 = vand.u32 65535, %v6800_v30 }
 0x210   : > { %5047 = vmatprep.subr.bf16.mxu1 %v6238_v0 }
 0x216   : > { %5028 = vmatpush3.bf16.xpose.msra.mxu0 %v1023_v35  ;;  %v775_v35 = vld [vmem:[%s6604_s15 + $0x6d8] sm:$0xff] }
 0x217   : > { %5048 = vmatpush3.bf16.xpose.msra.mxu1 %v1031_v36  ;;  %5029 = vmatprep.subr.bf16.mxu0 %v6238_v0  ;;  %v1041_v36 = vpack.c.bf16 %v759_v28, %v758_v27  ;;  %v1049_v20 = vpack.c.bf16 %v775_v35, %v774_v31  ;;  %v765_v27 = vld [vmem:[%s6604_s15 + $0x688] sm:$0xff]  ;;  %v3673_v31 = vrot.slane %v6925_v16, 7 }
 0x218   : > { %5049 = vmatprep.subr.bf16.mxu1 %v6238_v0 }
 0x21e   : > { %5030 = vmatpush3.bf16.xpose.msra.mxu0 %v1022_v45  ;;  %v773_v45 = vld [vmem:[%s6604_s15 + $0x6c8] sm:$0xff] }
 0x21f   : > { %5050 = vmatpush3.bf16.xpose.msra.mxu1 %v1030_v43  ;;  %5031 = vmatprep.subr.bf16.mxu0 %v6238_v0  ;;  %v1040_v43 = vpack.c.bf16 %v757_v40, %v756_v39  ;;  %v1048_v48 = vpack.c.bf16 %v773_v45, %v772_v44  ;;  %v3679_v39 = vrot.slane %v7003_v58, 5  ;;  %v794_v40 = vld [vmem:[%s6604_s15 + $0x770] sm:$0xff]  ;;  %v795_v44 = vld [vmem:[%s6604_s15 + $0x778] sm:$0xff] }
 0x220   : > { %5051 = vmatprep.subr.bf16.mxu1 %v6238_v0 }
 0x226   : > { %5032 = vmatpush3.bf16.xpose.msra.mxu0 %v1021_v54  ;;  %v771_v54 = vld [vmem:[%s6604_s15 + $0x6b8] sm:$0xff] }
 0x227   : > { %5052 = vmatpush3.bf16.xpose.msra.mxu1 %v1029_v57  ;;  %5033 = vmatprep.subr.bf16.mxu0 %v6238_v0  ;;  %v1039_v57 = vpack.c.bf16 %v755_v50, %v754_v49  ;;  %v1047_v32 = vpack.c.bf16 %v771_v54, %v770_v51  ;;  %v811_v49 = vld [vmem:[%s6604_s15 + $0x7f8] sm:$0xff]  ;;  %v1059_v51 = vpack.c.bf16 %v795_v44, %v794_v40  ;;  %v806_v40 = vld [vmem:[%s6604_s15 + $0x7d0] sm:$0xff] }
 0x228   : > { %5053 = vmatprep.subr.bf16.mxu1 %v6238_v0  ;;  %v807_v44 = vld [vmem:[%s6604_s15 + $0x7d8] sm:$0xff] }
 0x22e   : > { %5034 = vmatpush3.bf16.xpose.msra.mxu0 %v1020_v62  ;;  %v768_v62 = vld [vmem:[%s6604_s15 + $0x6a0] sm:$0xff] }
 0x22f   : > { %5054 = vmatpush3.bf16.xpose.msra.mxu1 %v1028_v63  ;;  %5059 = vmatprep.subr.bf16.mxu0 %v6238_v0  ;;  %v769_v63 = vld [vmem:[%s6604_s15 + $0x6a8] sm:$0xff] }
 0x230   : > { %5079 = vmatprep.subr.bf16.mxu1 %v6238_v0  ;;  %v1046_v2 = vpack.c.bf16 %v769_v63, %v768_v62 }
 0x235   : > { %v7060_v6 = vpop.f32.mrf.mxu0  ;;  %5036 = vmatmul.mubr.bf16.vlgmr.msra.gmra.mxu0 %v6687_v60 }
 0x236   : > { %v7063_v7 = vpop.f32.mrf.mxu1  ;;  %5056 = vmatmul.mubr.bf16.vlgmr.msra.gmra.mxu1 %v6687_v60  ;;  %5060 = vmatpush3.bf16.xpose.msra.mxu0 %v1043_v4  ;;  %v751_v4 = vld [vmem:[%s6604_s15 + $0x618] sm:$0xff] }
 0x237   : > { %5080 = vmatpush3.bf16.xpose.msra.mxu1 %v1051_v5  ;;  %v4917_v8 = vpop.f32.mrf.mxu0  ;;  %5061 = vmatprep.subr.bf16.mxu0 %v6238_v0  ;;  %v7107_v5 = vpop.xlane.xlu1 %512  ;;  %v1037_v10 = vpack.c.bf16 %v751_v4, %v750_v42 }
 0x238   : > { %v4937_v11 = vpop.f32.mrf.mxu1  ;;  %5081 = vmatprep.subr.bf16.mxu1 %v6238_v0  ;;  %5075 = vmatprep.mubr.msk.bf16.mxu0 %vm6239_vm0, %v6238_v0  ;;  %v766_v8 = vld [vmem:[%s6604_s15 + $0x690] sm:$0xff]  ;;  %vm514_vm12 = vcmp.eq.f32.partialorder %v6832_v52, %v7107_v5 }
 0x239   : > { %v1329_v17 = vpop.f32.mrf.mxu0  ;;  %5095 = vmatprep.mubr.msk.bf16.mxu1 %vm6239_vm0, %v6238_v0  ;;  %v1045_v11 = vpack.c.bf16 %v767_v9, %v766_v8  ;;  %v792_v9 = vld [vmem:[%s6604_s15 + $0x760] sm:$0xff] }
 0x23a   : > { %v1369_v18 = vpop.f32.mrf.mxu1 }
 0x23b   : > { %v4918_v22 = vpop.f32.mrf.mxu0  ;;  %v407_v17 = vpop.xlane.xlu1 %406  ;;  %v414_v18 = vcvt.s32.f32 %v412_v13 }
 0x23c   : > { %v4938_v26 = vpop.f32.mrf.mxu1  ;;  %v749_v22 = vld [vmem:[%s6604_s15 + $0x608] sm:$0xff]  ;;  %v408_v56 = vcvt.f32.s32 %v407_v17  ;;  %v808_v17 = vld [vmem:[%s6604_s15 + $0x7e0] sm:$0xff] }
 0x23d   : > { %v764_v26 = vld [vmem:[%s6604_s15 + $0x680] sm:$0xff]  ;;  %v419_v30 = vsel %vm418_vm15, %v414_v18, inf  ;;  %v809_v18 = vld [vmem:[%s6604_s15 + $0x7e8] sm:$0xff] }
 0x23e   : > { %5062 = vmatpush3.bf16.xpose.msra.mxu0 %v1042_v21  ;;  %v748_v21 = vld [vmem:[%s6604_s15 + $0x600] sm:$0xff]  ;;  %420 = vmin.xlane.f32.xlu0 %v419_v30  ;;  %v1044_v35 = vpack.c.bf16 %v765_v27, %v764_v26 }
 0x23f   : > { %5082 = vmatpush3.bf16.xpose.msra.mxu1 %v1050_v24  ;;  %5063 = vmatprep.subr.bf16.mxu0 %v6238_v0  ;;  %v410_v24 = vshll.u32 %v409_v12, 16  ;;  %v1036_v28 = vpack.c.bf16 %v749_v22, %v748_v21 }
 0x240   : > { %5083 = vmatprep.subr.bf16.mxu1 %v6238_v0 }
 0x241   : > { %v7124_v37 = vadd.s32 %v410_v24, %v408_v56 }
 0x243   : > { %v4372_v50 = vadd.s32 4294967295, %v7124_v37  ;;  %vm3628_vm5 = vcmp.gt.s32.totalorder %v7124_v37, 0 }
 0x245   : > { %v3634_v62 = vsel %vm3628_vm5, %v4372_v50, 127  ;;  %v804_v50 = vld [vmem:[%s6604_s15 + $0x7c0] sm:$0xff] }
 0x246   : > { %5064 = vmatpush3.bf16.xpose.msra.mxu0 %v1041_v36  ;;  %v3676_v36 = vrot.slane %v6998_v53, 6  ;;  %vm3646_vm9 = vcmp.eq.s32.totalorder %v6653_v33, %v3634_v62  ;;  %v803_v62 = vld [vmem:[%s6604_s15 + $0x7b8] sm:$0xff] }
 0x247   : > { %5084 = vmatpush3.bf16.xpose.msra.mxu1 %v1049_v20  ;;  %5065 = vmatprep.subr.bf16.mxu0 %v6238_v0  ;;  %v3675_v20 = vsel %vm3674_vm1, %v3673_v31, %v6922_v14  ;;  %v1066_v31 = vpack.c.bf16 %v809_v18, %v808_v17  ;;  %v783_v17 = vld [vmem:[%s6604_s15 + $0x718] sm:$0xff]  ;;  %v798_v18 = vld [vmem:[%s6604_s15 + $0x790] sm:$0xff] }
 0x248   : > { %5085 = vmatprep.subr.bf16.mxu1 %v6238_v0  ;;  %v3678_v45 = vsel %vm3677_vm2, %v3676_v36, %v3675_v20  ;;  %v790_v20 = vld [vmem:[%s6604_s15 + $0x750] sm:$0xff] }
 0x249   : > { %v3681_v54 = vsel %vm3680_vm3, %v3679_v39, %v3678_v45  ;;  %v791_v39 = vld [vmem:[%s6604_s15 + $0x758] sm:$0xff] }
 0x24a   : > { %v1057_v45 = vpack.c.bf16 %v791_v39, %v790_v20  ;;  %v827_v20 = vld [vmem:[%s6604_s15 + $0x878] sm:$0xff]  ;;  %v842_v39 = vld [vmem:[%s6604_s15 + $0x8f0] sm:$0xff] }
 0x24e   : > { %5066 = vmatpush3.bf16.xpose.msra.mxu0 %v1040_v43  ;;  %v3682_v43 = vrot.slane %v7060_v6, 4 }
 0x24f   : > { %5086 = vmatpush3.bf16.xpose.msra.mxu1 %v1048_v48  ;;  %5067 = vmatprep.subr.bf16.mxu0 %v6238_v0  ;;  %v810_v48 = vld [vmem:[%s6604_s15 + $0x7f0] sm:$0xff] }
 0x250   : > { %5087 = vmatprep.subr.bf16.mxu1 %v6238_v0  ;;  %v3684_v59 = vsel %vm3683_vm4, %v3682_v43, %v3681_v54  ;;  %v1065_v43 = vpack.c.bf16 %v807_v44, %v806_v40  ;;  %v843_v40 = vld [vmem:[%s6604_s15 + $0x8f8] sm:$0xff] }
 0x256   : > { %5068 = vmatpush3.bf16.xpose.msra.mxu0 %v1039_v57  ;;  %v3685_v57 = vrot.slane %v7063_v7, 3 }
 0x257   : > { %5088 = vmatpush3.bf16.xpose.msra.mxu1 %v1047_v32  ;;  %5069 = vmatprep.subr.bf16.mxu0 %v6238_v0  ;;  %v1067_v32 = vpack.c.bf16 %v811_v49, %v810_v48  ;;  %v788_v48 = vld [vmem:[%s6604_s15 + $0x740] sm:$0xff]  ;;  %v789_v49 = vld [vmem:[%s6604_s15 + $0x748] sm:$0xff] }
 0x258   : > { %5089 = vmatprep.subr.bf16.mxu1 %v6238_v0  ;;  %v3687_v8 = vsel %vm3686_vm6, %v3685_v57, %v3684_v59  ;;  %v1056_v54 = vpack.c.bf16 %v789_v49, %v788_v48  ;;  %v787_v59 = vld [vmem:[%s6604_s15 + $0x738] sm:$0xff] }
 0x25e   : > { %5070 = vmatpush3.bf16.xpose.msra.mxu0 %v1038_v3  ;;  %v7146_v3 = vpop.xlane.xlu1 %434 }
 0x25f   : > { %5090 = vmatpush3.bf16.xpose.msra.mxu1 %v1046_v2  ;;  %5071 = vmatprep.subr.bf16.mxu0 %v6238_v0 }
 0x260   : > { %5091 = vmatprep.subr.bf16.mxu1 %v6238_v0 }
 0x262   : > { %v469_v24 = vpop.xlane.xlu1 %468 }
 0x263   : > { %v470_v30 = vcvt.f32.s32 %v469_v24 }
 0x266   : > { %5072 = vmatpush3.bf16.xpose.msra.mxu0 %v1037_v10  ;;  %v793_v10 = vld [vmem:[%s6604_s15 + $0x768] sm:$0xff] }
 0x267   : > { %5092 = vmatpush3.bf16.xpose.msra.mxu1 %v1045_v11  ;;  %5073 = vmatprep.subr.bf16.mxu0 %v6238_v0  ;;  %v472_v11 = vshll.u32 %v471_v61, 16  ;;  %v1058_v56 = vpack.c.bf16 %v793_v10, %v792_v9  ;;  %v802_v61 = vld [vmem:[%s6604_s15 + $0x7b0] sm:$0xff]  ;;  %v800_v9 = vld [vmem:[%s6604_s15 + $0x7a0] sm:$0xff]  ;;  %v801_v10 = vld [vmem:[%s6604_s15 + $0x7a8] sm:$0xff] }
 0x268   : > { %5093 = vmatprep.subr.bf16.mxu1 %v6238_v0 }
 0x269   : > { %v7169_v36 = vadd.s32 %v472_v11, %v470_v30  ;;  %v797_v30 = vld [vmem:[%s6604_s15 + $0x788] sm:$0xff] }
 0x26e   : > { %5074 = vmatpush3.bf16.xpose.msra.mxu0 %v1036_v28 }
 0x26f   : > { %5094 = vmatpush3.bf16.xpose.msra.mxu1 %v1044_v35  ;;  %5099 = vmatprep.subr.bf16.mxu0 %v6238_v0 }
 0x270   : > { %5119 = vmatprep.subr.bf16.mxu1 %v6238_v0 }
 0x275   : > { %v7143_v63 = vpop.f32.mrf.mxu0  ;;  %5076 = vmatmul.mubr.bf16.vlgmr.msra.gmra.mxu0 %v6687_v60 }
 0x276   : > { %v3688_v2 = vrot.slane %v7143_v63, 2  ;;  %v7149_v42 = vpop.f32.mrf.mxu1  ;;  %5096 = vmatmul.mubr.bf16.vlgmr.msra.gmra.mxu1 %v6687_v60  ;;  %5100 = vmatpush3.bf16.xpose.msra.mxu0 %v1059_v51  ;;  %v805_v51 = vld [vmem:[%s6604_s15 + $0x7c8] sm:$0xff] }
 0x277   : > { %v3691_v15 = vrot.slane %v7149_v42, 1  ;;  %5120 = vmatpush3.bf16.xpose.msra.mxu1 %v1067_v32  ;;  %v4957_v4 = vpop.f32.mrf.mxu0  ;;  %5101 = vmatprep.subr.bf16.mxu0 %v6238_v0  ;;  %v1064_v57 = vpack.c.bf16 %v805_v51, %v804_v50  ;;  %v786_v32 = vld [vmem:[%s6604_s15 + $0x730] sm:$0xff]  ;;  %v824_v50 = vld [vmem:[%s6604_s15 + $0x860] sm:$0xff]  ;;  %v825_v51 = vld [vmem:[%s6604_s15 + $0x868] sm:$0xff] }
 0x278   : > { %v4977_v12 = vpop.f32.mrf.mxu1  ;;  %v3690_v13 = vsel %vm3689_vm7, %v3688_v2, %v3687_v8  ;;  %5121 = vmatprep.subr.bf16.mxu1 %v6238_v0  ;;  %5115 = vmatprep.mubr.msk.bf16.mxu0 %vm6239_vm0, %v6238_v0  ;;  %v1055_v2 = vpack.c.bf16 %v787_v59, %v786_v32  ;;  %v784_v4 = vld [vmem:[%s6604_s15 + $0x720] sm:$0xff]  ;;  %v785_v8 = vld [vmem:[%s6604_s15 + $0x728] sm:$0xff] }
 0x279   : > { %v1409_v21 = vpop.f32.mrf.mxu0  ;;  %v3693_v22 = vsel %vm3692_vm8, %v3691_v15, %v3690_v13  ;;  %5135 = vmatprep.mubr.msk.bf16.mxu1 %vm6239_vm0, %v6238_v0  ;;  %v1063_v15 = vpack.c.bf16 %v803_v62, %v802_v61  ;;  %v1054_v11 = vpack.c.bf16 %v785_v8, %v784_v4  ;;  %v1062_v12 = vpack.c.bf16 %v801_v10, %v800_v9  ;;  %v782_v13 = vld [vmem:[%s6604_s15 + $0x710] sm:$0xff]  ;;  %v841_v32 = vld [vmem:[%s6604_s15 + $0x8e8] sm:$0xff]  ;;  %v823_v9 = vld [vmem:[%s6604_s15 + $0x858] sm:$0xff] }
 0x27a   : > { %v1449_v26 = vpop.f32.mrf.mxu1  ;;  %v3725_v27 = vsel %vm3646_vm9, %v3693_v22, 0.0  ;;  %v799_v21 = vld [vmem:[%s6604_s15 + $0x798] sm:$0xff]  ;;  %v1053_v22 = vpack.c.bf16 %v783_v17, %v782_v13  ;;  %v1074_v62 = vpack.c.bf16 %v825_v51, %v824_v50  ;;  %v822_v8 = vld [vmem:[%s6604_s15 + $0x850] sm:$0xff]  ;;  %v820_v17 = vld [vmem:[%s6604_s15 + $0x840] sm:$0xff] }
 0x27b   : > { %v4958_v28 = vpop.f32.mrf.mxu0  ;;  %3728 = vadd.xlane.f32.xlu1 %v3725_v27  ;;  %v1061_v24 = vpack.c.bf16 %v799_v21, %v798_v18  ;;  %v780_v26 = vld [vmem:[%s6604_s15 + $0x700] sm:$0xff]  ;;  %v781_v27 = vld [vmem:[%s6604_s15 + $0x708] sm:$0xff]  ;;  %v838_v10 = vld [vmem:[%s6604_s15 + $0x8d0] sm:$0xff] }
 0x27c   : > { %v4978_v35 = vpop.f32.mrf.mxu1  ;;  %v1052_v28 = vpack.c.bf16 %v781_v27, %v780_v26  ;;  %v821_v18 = vld [vmem:[%s6604_s15 + $0x848] sm:$0xff]  ;;  %v836_v21 = vld [vmem:[%s6604_s15 + $0x8c0] sm:$0xff]  ;;  %v818_v27 = vld [vmem:[%s6604_s15 + $0x830] sm:$0xff] }
 0x27d   : > { %v826_v35 = vld [vmem:[%s6604_s15 + $0x870] sm:$0xff]  ;;  %v815_v51 = vld [vmem:[%s6604_s15 + $0x818] sm:$0xff] }
 0x27e   : > { %5102 = vmatpush3.bf16.xpose.msra.mxu0 %v1058_v56  ;;  %v796_v56 = vld [vmem:[%s6604_s15 + $0x780] sm:$0xff]  ;;  %v1075_v44 = vpack.c.bf16 %v827_v20, %v826_v35  ;;  %v814_v50 = vld [vmem:[%s6604_s15 + $0x810] sm:$0xff] }
 0x27f   : > { %5122 = vmatpush3.bf16.xpose.msra.mxu1 %v1066_v31  ;;  %5103 = vmatprep.subr.bf16.mxu0 %v6238_v0  ;;  %v1060_v31 = vpack.c.bf16 %v797_v30, %v796_v56  ;;  %v819_v56 = vld [vmem:[%s6604_s15 + $0x838] sm:$0xff]  ;;  %v834_v30 = vld [vmem:[%s6604_s15 + $0x8b0] sm:$0xff]  ;;  %v816_v20 = vld [vmem:[%s6604_s15 + $0x820] sm:$0xff] }
 0x280   : > { %5123 = vmatprep.subr.bf16.mxu1 %v6238_v0 }
 0x286   : > { %5104 = vmatpush3.bf16.xpose.msra.mxu0 %v1057_v45  ;;  %v1083_v45 = vpack.c.bf16 %v843_v40, %v842_v39  ;;  %v817_v39 = vld [vmem:[%s6604_s15 + $0x828] sm:$0xff]  ;;  %v832_v40 = vld [vmem:[%s6604_s15 + $0x8a0] sm:$0xff] }
 0x287   : > { %5124 = vmatpush3.bf16.xpose.msra.mxu1 %v1065_v43  ;;  %5105 = vmatprep.subr.bf16.mxu0 %v6238_v0 }
 0x288   : > { %5125 = vmatprep.subr.bf16.mxu1 %v6238_v0 }
 0x28e   : > { %5106 = vmatpush3.bf16.xpose.msra.mxu0 %v1056_v54 }
 0x28f   : > { %5126 = vmatpush3.bf16.xpose.msra.mxu1 %v1064_v57  ;;  %5107 = vmatprep.subr.bf16.mxu0 %v6238_v0  ;;  %v840_v57 = vld [vmem:[%s6604_s15 + $0x8e0] sm:$0xff] }
 0x290   : > { %5127 = vmatprep.subr.bf16.mxu1 %v6238_v0 }
 0x296   : > { %5108 = vmatpush3.bf16.xpose.msra.mxu0 %v1055_v2 }
 0x297   : > { %5128 = vmatpush3.bf16.xpose.msra.mxu1 %v1063_v15  ;;  %5109 = vmatprep.subr.bf16.mxu0 %v6238_v0  ;;  %v1082_v15 = vpack.c.bf16 %v841_v32, %v840_v57  ;;  %v831_v57 = vld [vmem:[%s6604_s15 + $0x898] sm:$0xff]  ;;  %v1069_v32 = vpack.c.bf16 %v815_v51, %v814_v50  ;;  %v854_v50 = vld [vmem:[%s6604_s15 + $0x950] sm:$0xff] }
 0x298   : > { %5129 = vmatprep.subr.bf16.mxu1 %v6238_v0  ;;  %v855_v51 = vld [vmem:[%s6604_s15 + $0x958] sm:$0xff] }
 0x29e   : > { %5110 = vmatpush3.bf16.xpose.msra.mxu0 %v1054_v11  ;;  %v839_v11 = vld [vmem:[%s6604_s15 + $0x8d8] sm:$0xff] }
 0x29f   : > { %5130 = vmatpush3.bf16.xpose.msra.mxu1 %v1062_v12  ;;  %5111 = vmatprep.subr.bf16.mxu0 %v6238_v0  ;;  %v1073_v12 = vpack.c.bf16 %v823_v9, %v822_v8  ;;  %v1081_v13 = vpack.c.bf16 %v839_v11, %v838_v10  ;;  %v446_v9 = vand.u32 65535, %v6791_v23  ;;  %v858_v11 = vld [vmem:[%s6604_s15 + $0x970] sm:$0xff] }
 0x2a0   : > { %5131 = vmatprep.subr.bf16.mxu1 %v6238_v0 }
 0x2a1   : > { %v448_v10 = vcvt.s32.f32 %v446_v9  ;;  %v850_v9 = vld [vmem:[%s6604_s15 + $0x930] sm:$0xff] }
 0x2a6   : > { %5112 = vmatpush3.bf16.xpose.msra.mxu0 %v1053_v22  ;;  %v837_v22 = vld [vmem:[%s6604_s15 + $0x8c8] sm:$0xff] }
 0x2a7   : > { %5132 = vmatpush3.bf16.xpose.msra.mxu1 %v1061_v24  ;;  %5113 = vmatprep.subr.bf16.mxu0 %v6238_v0  ;;  %v1072_v24 = vpack.c.bf16 %v821_v18, %v820_v17  ;;  %v1080_v26 = vpack.c.bf16 %v837_v22, %v836_v21  ;;  %v474_v17 = vand.u32 65535, %v6804_v34  ;;  %v874_v18 = vld [vmem:[%s6604_s15 + $0x9f0] sm:$0xff]  ;;  %v875_v21 = vld [vmem:[%s6604_s15 + $0x9f8] sm:$0xff] }
 0x2a8   : > { %5133 = vmatprep.subr.bf16.mxu1 %v6238_v0  ;;  %v1099_v29 = vpack.c.bf16 %v875_v21, %v874_v18  ;;  %v848_v18 = vld [vmem:[%s6604_s15 + $0x920] sm:$0xff]  ;;  %v849_v21 = vld [vmem:[%s6604_s15 + $0x928] sm:$0xff] }
 0x2a9   : > { %v476_v23 = vcvt.s32.f32 %v474_v17 }
 0x2ae   : > { %5114 = vmatpush3.bf16.xpose.msra.mxu0 %v1052_v28  ;;  %v835_v28 = vld [vmem:[%s6604_s15 + $0x8b8] sm:$0xff] }
 0x2af   : > { %5134 = vmatpush3.bf16.xpose.msra.mxu1 %v1060_v31  ;;  %5139 = vmatprep.subr.bf16.mxu0 %v6238_v0  ;;  %v1071_v31 = vpack.c.bf16 %v819_v56, %v818_v27  ;;  %v1079_v35 = vpack.c.bf16 %v835_v28, %v834_v30  ;;  %v857_v30 = vld [vmem:[%s6604_s15 + $0x968] sm:$0xff] }
 0x2b0   : > { %5159 = vmatprep.subr.bf16.mxu1 %v6238_v0 }
 0x2b5   : > { %v7213_v43 = vpop.f32.mrf.mxu0  ;;  %5116 = vmatmul.mubr.bf16.vlgmr.msra.gmra.mxu0 %v6687_v60 }
 0x2b6   : > { %v7216_v48 = vpop.f32.mrf.mxu1  ;;  %5136 = vmatmul.mubr.bf16.vlgmr.msra.gmra.mxu1 %v6687_v60  ;;  %5140 = vmatpush3.bf16.xpose.msra.mxu0 %v1075_v44  ;;  %v833_v44 = vld [vmem:[%s6604_s15 + $0x8a8] sm:$0xff] }
 0x2b7   : > { %5160 = vmatpush3.bf16.xpose.msra.mxu1 %v1083_v45  ;;  %v4997_v49 = vpop.f32.mrf.mxu0  ;;  %5141 = vmatprep.subr.bf16.mxu0 %v6238_v0  ;;  %v1070_v45 = vpack.c.bf16 %v817_v39, %v816_v20  ;;  %v873_v20 = vld [vmem:[%s6604_s15 + $0x9e8] sm:$0xff] }
 0x2b8   : > { %v5017_v54 = vpop.f32.mrf.mxu1  ;;  %5161 = vmatprep.subr.bf16.mxu1 %v6238_v0  ;;  %5155 = vmatprep.mubr.msk.bf16.mxu0 %vm6239_vm0, %v6238_v0  ;;  %v1078_v49 = vpack.c.bf16 %v833_v44, %v832_v40 }
 0x2b9   : > { %v1489_v59 = vpop.f32.mrf.mxu0  ;;  %5175 = vmatprep.mubr.msk.bf16.mxu1 %vm6239_vm0, %v6238_v0  ;;  %v830_v54 = vld [vmem:[%s6604_s15 + $0x890] sm:$0xff] }
 0x2ba   : > { %v1529_v61 = vpop.f32.mrf.mxu1  ;;  %v1077_v59 = vpack.c.bf16 %v831_v57, %v830_v54  ;;  %v870_v54 = vld [vmem:[%s6604_s15 + $0x9d0] sm:$0xff]  ;;  %v871_v57 = vld [vmem:[%s6604_s15 + $0x9d8] sm:$0xff] }
 0x2bb   : > { %v4998_v2 = vpop.f32.mrf.mxu0  ;;  %v812_v61 = vld [vmem:[%s6604_s15 + $0x800] sm:$0xff] }
 0x2bc   : > { %v5018_v4 = vpop.f32.mrf.mxu1  ;;  %v828_v2 = vld [vmem:[%s6604_s15 + $0x880] sm:$0xff] }
 0x2be   : > { %5142 = vmatpush3.bf16.xpose.msra.mxu0 %v1074_v62  ;;  %v813_v62 = vld [vmem:[%s6604_s15 + $0x808] sm:$0xff] }
 0x2bf   : > { %5162 = vmatpush3.bf16.xpose.msra.mxu1 %v1082_v15  ;;  %5143 = vmatprep.subr.bf16.mxu0 %v6238_v0  ;;  %v829_v15 = vld [vmem:[%s6604_s15 + $0x888] sm:$0xff]  ;;  %v1068_v4 = vpack.c.bf16 %v813_v62, %v812_v61  ;;  %v852_v61 = vld [vmem:[%s6604_s15 + $0x940] sm:$0xff] }
 0x2c0   : > { %5163 = vmatprep.subr.bf16.mxu1 %v6238_v0  ;;  %v1076_v8 = vpack.c.bf16 %v829_v15, %v828_v2  ;;  %v853_v62 = vld [vmem:[%s6604_s15 + $0x948] sm:$0xff]  ;;  %v868_v2 = vld [vmem:[%s6604_s15 + $0x9c0] sm:$0xff] }
 0x2c1   : > { %v869_v15 = vld [vmem:[%s6604_s15 + $0x9c8] sm:$0xff] }
 0x2c6   : > { %5144 = vmatpush3.bf16.xpose.msra.mxu0 %v1073_v12  ;;  %v859_v12 = vld [vmem:[%s6604_s15 + $0x978] sm:$0xff] }
 0x2c7   : > { %5164 = vmatpush3.bf16.xpose.msra.mxu1 %v1081_v13  ;;  %5145 = vmatprep.subr.bf16.mxu0 %v6238_v0  ;;  %v453_v13 = vsel %vm452_vm10, %v448_v10, inf  ;;  %v1091_v22 = vpack.c.bf16 %v859_v12, %v858_v11  ;;  %v851_v10 = vld [vmem:[%s6604_s15 + $0x938] sm:$0xff]  ;;  %v866_v11 = vld [vmem:[%s6604_s15 + $0x9b0] sm:$0xff] }
 0x2c8   : > { %5165 = vmatprep.subr.bf16.mxu1 %v6238_v0  ;;  %454 = vmin.xlane.f32.xlu0 %v453_v13  ;;  %v867_v12 = vld [vmem:[%s6604_s15 + $0x9b8] sm:$0xff]  ;;  %v1087_v13 = vpack.c.bf16 %v851_v10, %v850_v9 }
 0x2c9   : > { %v1095_v17 = vpack.c.bf16 %v867_v12, %v866_v11 }
 0x2ce   : > { %5146 = vmatpush3.bf16.xpose.msra.mxu0 %v1072_v24  ;;  %v481_v24 = vsel %vm480_vm11, %v476_v23, inf  ;;  %v864_v23 = vld [vmem:[%s6604_s15 + $0x9a0] sm:$0xff] }
 0x2cf   : > { %5166 = vmatpush3.bf16.xpose.msra.mxu1 %v1080_v26  ;;  %5147 = vmatprep.subr.bf16.mxu0 %v6238_v0  ;;  %v508_v26 = vand.u32 65535, %v6825_v47  ;;  %v856_v47 = vld [vmem:[%s6604_s15 + $0x960] sm:$0xff] }
 0x2d0   : > { %5167 = vmatprep.subr.bf16.mxu1 %v6238_v0  ;;  %482 = vmin.xlane.f32.xlu0 %v481_v24  ;;  %v1090_v40 = vpack.c.bf16 %v857_v30, %v856_v47  ;;  %v863_v47 = vld [vmem:[%s6604_s15 + $0x998] sm:$0xff] }
 0x2d1   : > { %v510_v34 = vcvt.s32.f32 %v508_v26  ;;  %v846_v26 = vld [vmem:[%s6604_s15 + $0x910] sm:$0xff] }
 0x2d3   : > { %v515_v28 = vsel %vm514_vm12, %v510_v34, inf  ;;  %v847_v34 = vld [vmem:[%s6604_s15 + $0x918] sm:$0xff] }
 0x2d4   : > { %516 = vmin.xlane.f32.xlu0 %v515_v28  ;;  %v1085_v30 = vpack.c.bf16 %v847_v34, %v846_v26  ;;  %v885_v26 = vld [vmem:[%s6604_s15 + $0xa48] sm:$0xff]  ;;  %v900_v34 = vld [vmem:[%s6604_s15 + $0xac0] sm:$0xff] }
 0x2d6   : > { %5148 = vmatpush3.bf16.xpose.msra.mxu0 %v1071_v31 }
 0x2d7   : > { %5168 = vmatpush3.bf16.xpose.msra.mxu1 %v1079_v35  ;;  %5149 = vmatprep.subr.bf16.mxu0 %v6238_v0  ;;  %v872_v35 = vld [vmem:[%s6604_s15 + $0x9e0] sm:$0xff] }
 0x2d8   : > { %5169 = vmatprep.subr.bf16.mxu1 %v6238_v0 }
 0x2de   : > { %5150 = vmatpush3.bf16.xpose.msra.mxu0 %v1070_v45  ;;  %v1098_v45 = vpack.c.bf16 %v873_v20, %v872_v35  ;;  %v845_v35 = vld [vmem:[%s6604_s15 + $0x908] sm:$0xff]  ;;  %v860_v20 = vld [vmem:[%s6604_s15 + $0x980] sm:$0xff] }
 0x2df   : > { %5170 = vmatpush3.bf16.xpose.msra.mxu1 %v1078_v49  ;;  %5151 = vmatprep.subr.bf16.mxu0 %v6238_v0 }
 0x2e0   : > { %5171 = vmatprep.subr.bf16.mxu1 %v6238_v0 }
 0x2e6   : > { %5152 = vmatpush3.bf16.xpose.msra.mxu0 %v1069_v32  ;;  %v1089_v32 = vpack.c.bf16 %v855_v51, %v854_v50  ;;  %v907_v50 = vld [vmem:[%s6604_s15 + $0xaf8] sm:$0xff] }
 0x2e7   : > { %5172 = vmatpush3.bf16.xpose.msra.mxu1 %v1077_v59  ;;  %5153 = vmatprep.subr.bf16.mxu0 %v6238_v0  ;;  %v1097_v59 = vpack.c.bf16 %v871_v57, %v870_v54 }
 0x2e8   : > { %5173 = vmatprep.subr.bf16.mxu1 %v6238_v0 }
 0x2ee   : > { %5154 = vmatpush3.bf16.xpose.msra.mxu0 %v1068_v4  ;;  %v1088_v4 = vpack.c.bf16 %v853_v62, %v852_v61  ;;  %v888_v61 = vld [vmem:[%s6604_s15 + $0xa60] sm:$0xff]  ;;  %v889_v62 = vld [vmem:[%s6604_s15 + $0xa68] sm:$0xff] }
 0x2ef   : > { %5174 = vmatpush3.bf16.xpose.msra.mxu1 %v1076_v8  ;;  %5179 = vmatprep.subr.bf16.mxu0 %v6238_v0  ;;  %v1096_v8 = vpack.c.bf16 %v869_v15, %v868_v2  ;;  %v904_v15 = vld [vmem:[%s6604_s15 + $0xae0] sm:$0xff]  ;;  %v1106_v10 = vpack.c.bf16 %v889_v62, %v888_v61  ;;  %v894_v61 = vld [vmem:[%s6604_s15 + $0xa90] sm:$0xff]  ;;  %v895_v62 = vld [vmem:[%s6604_s15 + $0xa98] sm:$0xff] }
 0x2f0   : > { %5199 = vmatprep.subr.bf16.mxu1 %v6238_v0 }
 0x2f5   : > { %v7278_v27 = vpop.f32.mrf.mxu0  ;;  %5156 = vmatmul.mubr.bf16.vlgmr.msra.gmra.mxu0 %v6687_v60 }
 0x2f6   : > { %v7281_v56 = vpop.f32.mrf.mxu1  ;;  %5176 = vmatmul.mubr.bf16.vlgmr.msra.gmra.mxu1 %v6687_v60  ;;  %5180 = vmatpush3.bf16.xpose.msra.mxu0 %v1091_v22  ;;  %v865_v22 = vld [vmem:[%s6604_s15 + $0x9a8] sm:$0xff] }
 0x2f7   : > { %5200 = vmatpush3.bf16.xpose.msra.mxu1 %v1099_v29  ;;  %v5037_v41 = vpop.f32.mrf.mxu0  ;;  %5181 = vmatprep.subr.bf16.mxu0 %v6238_v0  ;;  %v1086_v29 = vpack.c.bf16 %v849_v21, %v848_v18  ;;  %v1094_v24 = vpack.c.bf16 %v865_v22, %v864_v23  ;;  %v887_v18 = vld [vmem:[%s6604_s15 + $0xa58] sm:$0xff]  ;;  %v902_v21 = vld [vmem:[%s6604_s15 + $0xad0] sm:$0xff] }
 0x2f8   : > { %v5057_v31 = vpop.f32.mrf.mxu1  ;;  %5201 = vmatprep.subr.bf16.mxu1 %v6238_v0  ;;  %5195 = vmatprep.mubr.msk.bf16.mxu0 %vm6239_vm0, %v6238_v0  ;;  %v862_v41 = vld [vmem:[%s6604_s15 + $0x990] sm:$0xff]  ;;  %v903_v23 = vld [vmem:[%s6604_s15 + $0xad8] sm:$0xff] }
 0x2f9   : > { %v1569_v52 = vpop.f32.mrf.mxu0  ;;  %5215 = vmatprep.mubr.msk.bf16.mxu1 %vm6239_vm0, %v6238_v0  ;;  %v1093_v28 = vpack.c.bf16 %v863_v47, %v862_v41  ;;  %v844_v31 = vld [vmem:[%s6604_s15 + $0x900] sm:$0xff]  ;;  %v901_v41 = vld [vmem:[%s6604_s15 + $0xac8] sm:$0xff] }
 0x2fa   : > { %v1609_v39 = vpop.f32.mrf.mxu1  ;;  %v861_v52 = vld [vmem:[%s6604_s15 + $0x988] sm:$0xff] }
 0x2fb   : > { %v5038_v44 = vpop.f32.mrf.mxu0  ;;  %v1084_v39 = vpack.c.bf16 %v845_v35, %v844_v31  ;;  %v883_v31 = vld [vmem:[%s6604_s15 + $0xa38] sm:$0xff]  ;;  %v898_v35 = vld [vmem:[%s6604_s15 + $0xab0] sm:$0xff] }
 0x2fc   : > { %v5058_v49 = vpop.f32.mrf.mxu1  ;;  %v890_v44 = vld [vmem:[%s6604_s15 + $0xa70] sm:$0xff] }
 0x2fd   : > { %v906_v49 = vld [vmem:[%s6604_s15 + $0xaf0] sm:$0xff] }
 0x2fe   : > { %5182 = vmatpush3.bf16.xpose.msra.mxu0 %v1090_v40  ;;  %v1092_v40 = vpack.c.bf16 %v861_v52, %v860_v20  ;;  %v1115_v54 = vpack.c.bf16 %v907_v50, %v906_v49  ;;  %v899_v20 = vld [vmem:[%s6604_s15 + $0xab8] sm:$0xff]  ;;  %v897_v49 = vld [vmem:[%s6604_s15 + $0xaa8] sm:$0xff] }
 0x2ff   : > { %5202 = vmatpush3.bf16.xpose.msra.mxu1 %v1098_v45  ;;  %5183 = vmatprep.subr.bf16.mxu0 %v6238_v0  ;;  %v891_v45 = vld [vmem:[%s6604_s15 + $0xa78] sm:$0xff] }
 0x300   : > { %5203 = vmatprep.subr.bf16.mxu1 %v6238_v0  ;;  %v1107_v51 = vpack.c.bf16 %v891_v45, %v890_v44  ;;  %v881_v44 = vld [vmem:[%s6604_s15 + $0xa28] sm:$0xff]  ;;  %v896_v45 = vld [vmem:[%s6604_s15 + $0xaa0] sm:$0xff] }
 0x306   : > { %5184 = vmatpush3.bf16.xpose.msra.mxu0 %v1089_v32 }
 0x307   : > { %5204 = vmatpush3.bf16.xpose.msra.mxu1 %v1097_v59  ;;  %5185 = vmatprep.subr.bf16.mxu0 %v6238_v0 }
 0x308   : > { %5205 = vmatprep.subr.bf16.mxu1 %v6238_v0 }
 0x30e   : > { %5186 = vmatpush3.bf16.xpose.msra.mxu0 %v1088_v4  ;;  %v905_v4 = vld [vmem:[%s6604_s15 + $0xae8] sm:$0xff] }
 0x30f   : > { %5206 = vmatpush3.bf16.xpose.msra.mxu1 %v1096_v8  ;;  %5187 = vmatprep.subr.bf16.mxu0 %v6238_v0  ;;  %v1114_v12 = vpack.c.bf16 %v905_v4, %v904_v15  ;;  %v1109_v15 = vpack.c.bf16 %v895_v62, %v894_v61  ;;  %v423_v4 = vcvt.f32.s32 %v6979_v25  ;;  %v3694_v25 = vrot.slane %v7216_v48, 7  ;;  %v920_v61 = vld [vmem:[%s6604_s15 + $0xb60] sm:$0xff]  ;;  %v921_v62 = vld [vmem:[%s6604_s15 + $0xb68] sm:$0xff] }
 0x310   : > { %5207 = vmatprep.subr.bf16.mxu1 %v6238_v0 }
 0x316   : > { %5188 = vmatpush3.bf16.xpose.msra.mxu0 %v1087_v13 }
 0x317   : > { %5208 = vmatpush3.bf16.xpose.msra.mxu1 %v1095_v17  ;;  %5189 = vmatprep.subr.bf16.mxu0 %v6238_v0  ;;  %v886_v17 = vld [vmem:[%s6604_s15 + $0xa50] sm:$0xff] }
 0x318   : > { %5209 = vmatprep.subr.bf16.mxu1 %v6238_v0  ;;  %v1105_v22 = vpack.c.bf16 %v887_v18, %v886_v17 }
 0x31e   : > { %5190 = vmatpush3.bf16.xpose.msra.mxu0 %v1086_v29  ;;  %v1113_v29 = vpack.c.bf16 %v903_v23, %v902_v21  ;;  %v3696_v23 = vrot.slane %v7278_v27, 6 }
 0x31f   : > { %5210 = vmatpush3.bf16.xpose.msra.mxu1 %v1094_v24  ;;  %5191 = vmatprep.subr.bf16.mxu0 %v6238_v0  ;;  %v884_v24 = vld [vmem:[%s6604_s15 + $0xa40] sm:$0xff] }
 0x320   : > { %5211 = vmatprep.subr.bf16.mxu1 %v6238_v0  ;;  %v1104_v47 = vpack.c.bf16 %v885_v26, %v884_v24  ;;  %v3698_v24 = vrot.slane %v7281_v56, 5  ;;  %v922_v26 = vld [vmem:[%s6604_s15 + $0xb70] sm:$0xff] }
 0x326   : > { %5192 = vmatpush3.bf16.xpose.msra.mxu0 %v1085_v30  ;;  %v1112_v30 = vpack.c.bf16 %v901_v41, %v900_v34  ;;  %v923_v34 = vld [vmem:[%s6604_s15 + $0xb78] sm:$0xff] }
 0x327   : > { %5212 = vmatpush3.bf16.xpose.msra.mxu1 %v1093_v28  ;;  %5193 = vmatprep.subr.bf16.mxu0 %v6238_v0  ;;  %v882_v28 = vld [vmem:[%s6604_s15 + $0xa30] sm:$0xff] }
 0x328   : > { %5213 = vmatprep.subr.bf16.mxu1 %v6238_v0  ;;  %v1103_v52 = vpack.c.bf16 %v883_v31, %v882_v28  ;;  %v939_v28 = vld [vmem:[%s6604_s15 + $0xbf8] sm:$0xff] }
 0x32e   : > { %5194 = vmatpush3.bf16.xpose.msra.mxu0 %v1084_v39  ;;  %v1111_v39 = vpack.c.bf16 %v899_v20, %v898_v35  ;;  %v1123_v35 = vpack.c.bf16 %v923_v34, %v922_v26 }
 0x32f   : > { %5214 = vmatpush3.bf16.xpose.msra.mxu1 %v1092_v40  ;;  %5219 = vmatprep.subr.bf16.mxu0 %v6238_v0  ;;  %v880_v40 = vld [vmem:[%s6604_s15 + $0xa20] sm:$0xff] }
 0x330   : > { %5239 = vmatprep.subr.bf16.mxu1 %v6238_v0  ;;  %v1102_v50 = vpack.c.bf16 %v881_v44, %v880_v40 }
 0x335   : > { %v7338_v57 = vpop.f32.mrf.mxu0  ;;  %5196 = vmatmul.mubr.bf16.vlgmr.msra.gmra.mxu0 %v6687_v60 }
 0x336   : > { %v7341_v32 = vpop.f32.mrf.mxu1  ;;  %5216 = vmatmul.mubr.bf16.vlgmr.msra.gmra.mxu1 %v6687_v60  ;;  %5220 = vmatpush3.bf16.xpose.msra.mxu0 %v1107_v51  ;;  %v1110_v51 = vpack.c.bf16 %v897_v49, %v896_v45 }
 0x337   : > { %5240 = vmatpush3.bf16.xpose.msra.mxu1 %v1115_v54  ;;  %v5077_v59 = vpop.f32.mrf.mxu0  ;;  %5221 = vmatprep.subr.bf16.mxu0 %v6238_v0  ;;  %v878_v54 = vld [vmem:[%s6604_s15 + $0xa10] sm:$0xff] }
 0x338   : > { %v5097_v2 = vpop.f32.mrf.mxu1  ;;  %5241 = vmatprep.subr.bf16.mxu1 %v6238_v0  ;;  %5235 = vmatprep.mubr.msk.bf16.mxu0 %vm6239_vm0, %v6238_v0  ;;  %v879_v59 = vld [vmem:[%s6604_s15 + $0xa18] sm:$0xff] }
 0x339   : > { %v1649_v8 = vpop.f32.mrf.mxu0  ;;  %5255 = vmatprep.mubr.msk.bf16.mxu1 %vm6239_vm0, %v6238_v0  ;;  %v1101_v2 = vpack.c.bf16 %v879_v59, %v878_v54 }
 0x33a   : > { %v1689_v9 = vpop.f32.mrf.mxu1  ;;  %v421_v8 = vpop.xlane.xlu0 %420 }
 0x33b   : > { %v5078_v11 = vpop.f32.mrf.mxu0  ;;  %v876_v9 = vld [vmem:[%s6604_s15 + $0xa00] sm:$0xff]  ;;  %v422_v17 = vcvt.f32.s32 %v421_v8  ;;  %v937_v8 = vld [vmem:[%s6604_s15 + $0xbe8] sm:$0xff] }
 0x33c   : > { %v5098_v13 = vpop.f32.mrf.mxu1  ;;  %v424_v11 = vshll.u32 %v423_v4, 16  ;;  %v936_v4 = vld [vmem:[%s6604_s15 + $0xbe0] sm:$0xff] }
 0x33d   : > { %v893_v13 = vld [vmem:[%s6604_s15 + $0xa88] sm:$0xff] }
 0x33e   : > { %5222 = vmatpush3.bf16.xpose.msra.mxu0 %v1106_v10  ;;  %v877_v10 = vld [vmem:[%s6604_s15 + $0xa08] sm:$0xff] }
 0x33f   : > { %5242 = vmatpush3.bf16.xpose.msra.mxu1 %v1114_v12  ;;  %5223 = vmatprep.subr.bf16.mxu0 %v6238_v0  ;;  %v892_v12 = vld [vmem:[%s6604_s15 + $0xa80] sm:$0xff]  ;;  %v1100_v18 = vpack.c.bf16 %v877_v10, %v876_v9 }
 0x340   : > { %5243 = vmatprep.subr.bf16.mxu1 %v6238_v0  ;;  %v1108_v21 = vpack.c.bf16 %v893_v13, %v892_v12  ;;  %v1122_v13 = vpack.c.bf16 %v921_v62, %v920_v61  ;;  %v929_v61 = vld [vmem:[%s6604_s15 + $0xba8] sm:$0xff] }
 0x346   : > { %5224 = vmatpush3.bf16.xpose.msra.mxu0 %v1105_v22  ;;  %v7393_v22 = vadd.s32 %v424_v11, %v422_v17 }
 0x347   : > { %5244 = vmatpush3.bf16.xpose.msra.mxu1 %v1113_v29  ;;  %5225 = vmatprep.subr.bf16.mxu0 %v6238_v0  ;;  %v3695_v29 = vsel %vm3674_vm1, %v3694_v25, %v7213_v43 }
 0x348   : > { %5245 = vmatprep.subr.bf16.mxu1 %v6238_v0  ;;  %v3697_v41 = vsel %vm3677_vm2, %v3696_v23, %v3695_v29  ;;  %v4373_v31 = vadd.s32 4294967295, %v7393_v22  ;;  %vm3629_vm13 = vcmp.gt.s32.totalorder %v7393_v22, 0  ;;  %v919_v23 = vld [vmem:[%s6604_s15 + $0xb58] sm:$0xff]  ;;  %v934_v29 = vld [vmem:[%s6604_s15 + $0xbd0] sm:$0xff] }
 0x349   : > { %v3699_v20 = vsel %vm3680_vm3, %v3698_v24, %v3697_v41  ;;  %v935_v24 = vld [vmem:[%s6604_s15 + $0xbd8] sm:$0xff]  ;;  %v916_v41 = vld [vmem:[%s6604_s15 + $0xb40] sm:$0xff] }
 0x34a   : > { %v3635_v44 = vsel %vm3629_vm13, %v4373_v31, 127  ;;  %v1129_v34 = vpack.c.bf16 %v935_v24, %v934_v29  ;;  %v2107_v29 = vld [vmem:[%s6606_s13 + $0x78] sm:$0xff]  ;;  %v2122_v24 = vld [vmem:[%s6606_s13 + $0xf0] sm:$0xff] }
 0x34b   : > { %vm3647_vm14 = vcmp.eq.s32.totalorder %v6653_v33, %v3635_v44 }
 0x34e   : > { %5226 = vmatpush3.bf16.xpose.msra.mxu0 %v1104_v47  ;;  %v3700_v47 = vrot.slane %v7338_v57, 4 }
 0x34f   : > { %5246 = vmatpush3.bf16.xpose.msra.mxu1 %v1112_v30  ;;  %5227 = vmatprep.subr.bf16.mxu0 %v6238_v0  ;;  %v938_v30 = vld [vmem:[%s6604_s15 + $0xbf0] sm:$0xff] }
 0x350   : > { %5247 = vmatprep.subr.bf16.mxu1 %v6238_v0  ;;  %v3701_v40 = vsel %vm3683_vm4, %v3700_v47, %v3699_v20  ;;  %v917_v47 = vld [vmem:[%s6604_s15 + $0xb48] sm:$0xff]  ;;  %v914_v20 = vld [vmem:[%s6604_s15 + $0xb30] sm:$0xff] }
 0x351   : > { %v1120_v31 = vpack.c.bf16 %v917_v47, %v916_v41 }
 0x356   : > { %5228 = vmatpush3.bf16.xpose.msra.mxu0 %v1103_v52  ;;  %v3702_v52 = vrot.slane %v7341_v32, 3 }
 0x357   : > { %5248 = vmatpush3.bf16.xpose.msra.mxu1 %v1111_v39  ;;  %5229 = vmatprep.subr.bf16.mxu0 %v6238_v0  ;;  %v1131_v39 = vpack.c.bf16 %v939_v28, %v938_v30  ;;  %v932_v30 = vld [vmem:[%s6604_s15 + $0xbc0] sm:$0xff]  ;;  %v933_v28 = vld [vmem:[%s6604_s15 + $0xbc8] sm:$0xff] }
 0x358   : > { %5249 = vmatprep.subr.bf16.mxu1 %v6238_v0  ;;  %v3703_v59 = vsel %vm3686_vm6, %v3702_v52, %v3701_v40  ;;  %v915_v52 = vld [vmem:[%s6604_s15 + $0xb38] sm:$0xff] }
 0x359   : > { %v931_v40 = vld [vmem:[%s6604_s15 + $0xbb8] sm:$0xff]  ;;  %v1119_v44 = vpack.c.bf16 %v915_v52, %v914_v20  ;;  %v2120_v52 = vld [vmem:[%s6606_s13 + $0xe0] sm:$0xff] }
 0x35e   : > { %5230 = vmatpush3.bf16.xpose.msra.mxu0 %v1102_v50 }
 0x35f   : > { %5250 = vmatpush3.bf16.xpose.msra.mxu1 %v1110_v51  ;;  %5231 = vmatprep.subr.bf16.mxu0 %v6238_v0 }
 0x360   : > { %5251 = vmatprep.subr.bf16.mxu1 %v6238_v0 }
 0x366   : > { %5232 = vmatpush3.bf16.xpose.msra.mxu0 %v1101_v2 }
 0x367   : > { %5252 = vmatpush3.bf16.xpose.msra.mxu1 %v1109_v15  ;;  %5233 = vmatprep.subr.bf16.mxu0 %v6238_v0 }
 0x368   : > { %5253 = vmatprep.subr.bf16.mxu1 %v6238_v0 }
 0x36e   : > { %5234 = vmatpush3.bf16.xpose.msra.mxu0 %v1100_v18  ;;  %v1130_v18 = vpack.c.bf16 %v937_v8, %v936_v4  ;;  %v911_v4 = vld [vmem:[%s6604_s15 + $0xb18] sm:$0xff]  ;;  %v926_v8 = vld [vmem:[%s6604_s15 + $0xb90] sm:$0xff] }
 0x36f   : > { %5254 = vmatpush3.bf16.xpose.msra.mxu1 %v1108_v21  ;;  %5259 = vmatprep.subr.bf16.mxu0 %v6238_v0  ;;  %v918_v21 = vld [vmem:[%s6604_s15 + $0xb50] sm:$0xff] }
 0x370   : > { %5279 = vmatprep.subr.bf16.mxu1 %v6238_v0  ;;  %v1121_v26 = vpack.c.bf16 %v919_v23, %v918_v21  ;;  %v2106_v23 = vld [vmem:[%s6606_s13 + $0x70] sm:$0xff] }
 0x375   : > { %v7411_v45 = vpop.f32.mrf.mxu0  ;;  %5236 = vmatmul.mubr.bf16.vlgmr.msra.gmra.mxu0 %v6687_v60 }
 0x376   : > { %v3704_v49 = vrot.slane %v7411_v45, 2  ;;  %v7415_v50 = vpop.f32.mrf.mxu1  ;;  %5256 = vmatmul.mubr.bf16.vlgmr.msra.gmra.mxu1 %v6687_v60  ;;  %5260 = vmatpush3.bf16.xpose.msra.mxu0 %v1123_v35  ;;  %v1128_v35 = vpack.c.bf16 %v933_v28, %v932_v30 }
 0x377   : > { %v3706_v51 = vrot.slane %v7415_v50, 1  ;;  %5280 = vmatpush3.bf16.xpose.msra.mxu1 %v1131_v39  ;;  %v5117_v54 = vpop.f32.mrf.mxu0  ;;  %5261 = vmatprep.subr.bf16.mxu0 %v6238_v0  ;;  %v930_v39 = vld [vmem:[%s6604_s15 + $0xbb0] sm:$0xff] }
 0x378   : > { %v5137_v2 = vpop.f32.mrf.mxu1  ;;  %v3705_v15 = vsel %vm3689_vm7, %v3704_v49, %v3703_v59  ;;  %5281 = vmatprep.subr.bf16.mxu1 %v6238_v0  ;;  %5275 = vmatprep.mubr.msk.bf16.mxu0 %vm6239_vm0, %v6238_v0  ;;  %v1127_v49 = vpack.c.bf16 %v931_v40, %v930_v39  ;;  %v913_v54 = vld [vmem:[%s6604_s15 + $0xb28] sm:$0xff]  ;;  %v928_v59 = vld [vmem:[%s6604_s15 + $0xba0] sm:$0xff] }
 0x379   : > { %v1729_v9 = vpop.f32.mrf.mxu0  ;;  %v3707_v10 = vsel %vm3692_vm8, %v3706_v51, %v3705_v15  ;;  %5295 = vmatprep.mubr.msk.bf16.mxu1 %vm6239_vm0, %v6238_v0  ;;  %v912_v51 = vld [vmem:[%s6604_s15 + $0xb20] sm:$0xff]  ;;  %v1126_v2 = vpack.c.bf16 %v929_v61, %v928_v59  ;;  %v910_v15 = vld [vmem:[%s6604_s15 + $0xb10] sm:$0xff]  ;;  %v2121_v39 = vld [vmem:[%s6606_s13 + $0xe8] sm:$0xff] }
 0x37a   : > { %v1769_v11 = vpop.f32.mrf.mxu1  ;;  %v3726_v12 = vsel %vm3647_vm14, %v3707_v10, 0.0  ;;  %v1118_v62 = vpack.c.bf16 %v913_v54, %v912_v51  ;;  %v927_v9 = vld [vmem:[%s6604_s15 + $0xb98] sm:$0xff]  ;;  %v1117_v10 = vpack.c.bf16 %v911_v4, %v910_v15  ;;  %v2490_v54 = vpack.c.bf16 %v2121_v39, %v2120_v52  ;;  %v2102_v61 = vld [vmem:[%s6606_s13 + $0x50] sm:$0xff] }
 0x37b   : > { %v5118_v17 = vpop.f32.mrf.mxu0  ;;  %3730 = vadd.xlane.f32.xlu0 %v3726_v12  ;;  %v1125_v11 = vpack.c.bf16 %v927_v9, %v926_v8  ;;  %v908_v12 = vld [vmem:[%s6604_s15 + $0xb00] sm:$0xff]  ;;  %v2119_v15 = vld [vmem:[%s6606_s13 + $0xd8] sm:$0xff]  ;;  %v2110_v39 = vld [vmem:[%s6606_s13 + $0x90] sm:$0xff] }
 0x37c   : > { %v5138_v25 = vpop.f32.mrf.mxu1  ;;  %v924_v17 = vld [vmem:[%s6604_s15 + $0xb80] sm:$0xff]  ;;  %v2095_v52 = vld [vmem:[%s6606_s13 + $0x18] sm:$0xff] }
 0x37d   : > { %v2100_v9 = vld [vmem:[%s6606_s13 + $0x40] sm:$0xff] }
 0x37e   : > { %5262 = vmatpush3.bf16.xpose.msra.mxu0 %v1122_v13  ;;  %v909_v13 = vld [vmem:[%s6604_s15 + $0xb08] sm:$0xff] }
 0x37f   : > { %5282 = vmatpush3.bf16.xpose.msra.mxu1 %v1130_v18  ;;  %5263 = vmatprep.subr.bf16.mxu0 %v6238_v0  ;;  %v925_v18 = vld [vmem:[%s6604_s15 + $0xb88] sm:$0xff]  ;;  %v1116_v25 = vpack.c.bf16 %v909_v13, %v908_v12 }
 0x380   : > { %5283 = vmatprep.subr.bf16.mxu1 %v6238_v0  ;;  %v1124_v21 = vpack.c.bf16 %v925_v18, %v924_v17  ;;  %v2117_v12 = vld [vmem:[%s6606_s13 + $0xc8] sm:$0xff]  ;;  %v2098_v18 = vld [vmem:[%s6606_s13 + $0x30] sm:$0xff] }
 0x386   : > { %5264 = vmatpush3.bf16.xpose.msra.mxu0 %v1121_v26  ;;  %v2123_v26 = vld [vmem:[%s6606_s13 + $0xf8] sm:$0xff] }
 0x387   : > { %5284 = vmatpush3.bf16.xpose.msra.mxu1 %v1129_v34  ;;  %5265 = vmatprep.subr.bf16.mxu0 %v6238_v0  ;;  %v2483_v34 = vpack.c.bf16 %v2107_v29, %v2106_v23  ;;  %v2491_v41 = vpack.c.bf16 %v2123_v26, %v2122_v24  ;;  %v2115_v23 = vld [vmem:[%s6606_s13 + $0xb8] sm:$0xff]  ;;  %v2096_v26 = vld [vmem:[%s6606_s13 + $0x20] sm:$0xff] }
 0x388   : > { %5285 = vmatprep.subr.bf16.mxu1 %v6238_v0 }
 0x38e   : > { %5266 = vmatpush3.bf16.xpose.msra.mxu0 %v1120_v31  ;;  %v2104_v31 = vld [vmem:[%s6606_s13 + $0x60] sm:$0xff] }
 0x38f   : > { %5286 = vmatpush3.bf16.xpose.msra.mxu1 %v1128_v35  ;;  %5267 = vmatprep.subr.bf16.mxu0 %v6238_v0  ;;  %v2105_v35 = vld [vmem:[%s6606_s13 + $0x68] sm:$0xff] }
 0x390   : > { %5287 = vmatprep.subr.bf16.mxu1 %v6238_v0 }
 0x396   : > { %5268 = vmatpush3.bf16.xpose.msra.mxu0 %v1119_v44 }
 0x397   : > { %5288 = vmatpush3.bf16.xpose.msra.mxu1 %v1127_v49  ;;  %5269 = vmatprep.subr.bf16.mxu0 %v6238_v0  ;;  %v2482_v49 = vpack.c.bf16 %v2105_v35, %v2104_v31 }
 0x398   : > { %5289 = vmatprep.subr.bf16.mxu1 %v6238_v0 }
 0x39e   : > { %5270 = vmatpush3.bf16.xpose.msra.mxu0 %v1118_v62  ;;  %v2103_v62 = vld [vmem:[%s6606_s13 + $0x58] sm:$0xff] }
 0x39f   : > { %5290 = vmatpush3.bf16.xpose.msra.mxu1 %v1126_v2  ;;  %5271 = vmatprep.subr.bf16.mxu0 %v6238_v0  ;;  %v2118_v2 = vld [vmem:[%s6606_s13 + $0xd0] sm:$0xff]  ;;  %v2481_v4 = vpack.c.bf16 %v2103_v62, %v2102_v61  ;;  %v2109_v61 = vld [vmem:[%s6606_s13 + $0x88] sm:$0xff] }
 0x3a0   : > { %5291 = vmatprep.subr.bf16.mxu1 %v6238_v0  ;;  %v2489_v8 = vpack.c.bf16 %v2119_v15, %v2118_v2  ;;  %v2138_v15 = vld [vmem:[%s6606_s13 + $0x170] sm:$0xff] }
 0x3a6   : > { %5272 = vmatpush3.bf16.xpose.msra.mxu0 %v1117_v10  ;;  %v2101_v10 = vld [vmem:[%s6606_s13 + $0x48] sm:$0xff] }
 0x3a7   : > { %5292 = vmatpush3.bf16.xpose.msra.mxu1 %v1125_v11  ;;  %5273 = vmatprep.subr.bf16.mxu0 %v6238_v0  ;;  %v2116_v11 = vld [vmem:[%s6606_s13 + $0xc0] sm:$0xff]  ;;  %v2480_v13 = vpack.c.bf16 %v2101_v10, %v2100_v9  ;;  %v2155_v9 = vld [vmem:[%s6606_s13 + $0x1f8] sm:$0xff] }
 0x3a8   : > { %5293 = vmatprep.subr.bf16.mxu1 %v6238_v0  ;;  %v2488_v17 = vpack.c.bf16 %v2117_v12, %v2116_v11 }
 0x3ae   : > { %5274 = vmatpush3.bf16.xpose.msra.mxu0 %v1116_v25  ;;  %v2099_v25 = vld [vmem:[%s6606_s13 + $0x38] sm:$0xff] }
 0x3af   : > { %5294 = vmatpush3.bf16.xpose.msra.mxu1 %v1124_v21  ;;  %5299 = vmatprep.subr.bf16.mxu0 %v6238_v0  ;;  %v2114_v21 = vld [vmem:[%s6606_s13 + $0xb0] sm:$0xff]  ;;  %v2479_v29 = vpack.c.bf16 %v2099_v25, %v2098_v18  ;;  %v2136_v18 = vld [vmem:[%s6606_s13 + $0x160] sm:$0xff]  ;;  %v2137_v25 = vld [vmem:[%s6606_s13 + $0x168] sm:$0xff] }
 0x3b0   : > { %5319 = vmatprep.subr.bf16.mxu1 %v6238_v0  ;;  %v2487_v24 = vpack.c.bf16 %v2115_v23, %v2114_v21  ;;  %v2152_v23 = vld [vmem:[%s6606_s13 + $0x1e0] sm:$0xff] }
 0x3b5   : > { %v7475_v47 = vpop.f32.mrf.mxu0  ;;  %5276 = vmatmul.mubr.bf16.vlgmr.msra.gmra.mxu0 %v6687_v60 }
 0x3b6   : > { %v7478_v30 = vpop.f32.mrf.mxu1  ;;  %5296 = vmatmul.mubr.bf16.vlgmr.msra.gmra.mxu1 %v6687_v60  ;;  %5300 = vmatpush3.bf16.xpose.msra.mxu0 %v2483_v34  ;;  %v2097_v34 = vld [vmem:[%s6606_s13 + $0x28] sm:$0xff] }
 0x3b7   : > { %5320 = vmatpush3.bf16.xpose.msra.mxu1 %v2491_v41  ;;  %v5157_v28 = vpop.f32.mrf.mxu0  ;;  %5301 = vmatprep.subr.bf16.mxu0 %v6238_v0  ;;  %v2112_v41 = vld [vmem:[%s6606_s13 + $0xa0] sm:$0xff]  ;;  %v2478_v31 = vpack.c.bf16 %v2097_v34, %v2096_v26  ;;  %v2498_v34 = vpack.c.bf16 %v2137_v25, %v2136_v18  ;;  %v2145_v25 = vld [vmem:[%s6606_s13 + $0x1a8] sm:$0xff] }
 0x3b8   : > { %v5177_v20 = vpop.f32.mrf.mxu1  ;;  %5321 = vmatprep.subr.bf16.mxu1 %v6238_v0  ;;  %5315 = vmatprep.mubr.msk.bf16.mxu0 %vm6239_vm0, %v6238_v0  ;;  %v2113_v28 = vld [vmem:[%s6606_s13 + $0xa8] sm:$0xff]  ;;  %v2144_v18 = vld [vmem:[%s6606_s13 + $0x1a0] sm:$0xff] }
 0x3b9   : > { %v1809_v40 = vpop.f32.mrf.mxu0  ;;  %5335 = vmatprep.mubr.msk.bf16.mxu1 %vm6239_vm0, %v6238_v0  ;;  %v2486_v35 = vpack.c.bf16 %v2113_v28, %v2112_v41  ;;  %v2094_v20 = vld [vmem:[%s6606_s13 + $0x10] sm:$0xff] }
 0x3ba   : > { %v1849_v44 = vpop.f32.mrf.mxu1  ;;  %v2111_v40 = vld [vmem:[%s6606_s13 + $0x98] sm:$0xff] }
 0x3bb   : > { %v5158_v51 = vpop.f32.mrf.mxu0  ;;  %v2477_v44 = vpack.c.bf16 %v2095_v52, %v2094_v20  ;;  %v2135_v20 = vld [vmem:[%s6606_s13 + $0x158] sm:$0xff]  ;;  %v2150_v52 = vld [vmem:[%s6606_s13 + $0x1d0] sm:$0xff] }
 0x3bc   : > { %v5178_v59 = vpop.f32.mrf.mxu1  ;;  %v2092_v51 = vld [vmem:[%s6606_s13] sm:$0xff] }
 0x3bd   : > { %v2108_v59 = vld [vmem:[%s6606_s13 + $0x80] sm:$0xff] }
 0x3be   : > { %5302 = vmatpush3.bf16.xpose.msra.mxu0 %v2482_v49  ;;  %v2485_v49 = vpack.c.bf16 %v2111_v40, %v2110_v39  ;;  %v2484_v2 = vpack.c.bf16 %v2109_v61, %v2108_v59  ;;  %v2151_v39 = vld [vmem:[%s6606_s13 + $0x1d8] sm:$0xff]  ;;  %v2149_v59 = vld [vmem:[%s6606_s13 + $0x1c8] sm:$0xff] }
 0x3bf   : > { %5322 = vmatpush3.bf16.xpose.msra.mxu1 %v2490_v54  ;;  %5303 = vmatprep.subr.bf16.mxu0 %v6238_v0  ;;  %v2093_v54 = vld [vmem:[%s6606_s13 + $0x8] sm:$0xff] }
 0x3c0   : > { %5323 = vmatprep.subr.bf16.mxu1 %v6238_v0  ;;  %v2476_v62 = vpack.c.bf16 %v2093_v54, %v2092_v51  ;;  %v2133_v51 = vld [vmem:[%s6606_s13 + $0x148] sm:$0xff]  ;;  %v2148_v54 = vld [vmem:[%s6606_s13 + $0x1c0] sm:$0xff] }
 0x3c6   : > { %5304 = vmatpush3.bf16.xpose.msra.mxu0 %v2481_v4  ;;  %v2139_v4 = vld [vmem:[%s6606_s13 + $0x178] sm:$0xff] }
 0x3c7   : > { %5324 = vmatpush3.bf16.xpose.msra.mxu1 %v2489_v8  ;;  %5305 = vmatprep.subr.bf16.mxu0 %v6238_v0  ;;  %v2154_v8 = vld [vmem:[%s6606_s13 + $0x1f0] sm:$0xff]  ;;  %v2499_v10 = vpack.c.bf16 %v2139_v4, %v2138_v15  ;;  %v2131_v15 = vld [vmem:[%s6606_s13 + $0x138] sm:$0xff] }
 0x3c8   : > { %5325 = vmatprep.subr.bf16.mxu1 %v6238_v0  ;;  %v2507_v11 = vpack.c.bf16 %v2155_v9, %v2154_v8  ;;  %v2146_v4 = vld [vmem:[%s6606_s13 + $0x1b0] sm:$0xff]  ;;  %v2147_v8 = vld [vmem:[%s6606_s13 + $0x1b8] sm:$0xff] }
 0x3ce   : > { %5306 = vmatpush3.bf16.xpose.msra.mxu0 %v2480_v13 }
 0x3cf   : > { %5326 = vmatpush3.bf16.xpose.msra.mxu1 %v2488_v17  ;;  %5307 = vmatprep.subr.bf16.mxu0 %v6238_v0 }
 0x3d0   : > { %5327 = vmatprep.subr.bf16.mxu1 %v6238_v0 }
 0x3d6   : > { %5308 = vmatpush3.bf16.xpose.msra.mxu0 %v2479_v29  ;;  %v2153_v29 = vld [vmem:[%s6606_s13 + $0x1e8] sm:$0xff] }
 0x3d7   : > { %5328 = vmatpush3.bf16.xpose.msra.mxu1 %v2487_v24  ;;  %5309 = vmatprep.subr.bf16.mxu0 %v6238_v0  ;;  %v2506_v28 = vpack.c.bf16 %v2153_v29, %v2152_v23  ;;  %v2502_v23 = vpack.c.bf16 %v2145_v25, %v2144_v18  ;;  %v2126_v29 = vld [vmem:[%s6606_s13 + $0x110] sm:$0xff] }
 0x3d8   : > { %5329 = vmatprep.subr.bf16.mxu1 %v6238_v0 }
 0x3de   : > { %5310 = vmatpush3.bf16.xpose.msra.mxu0 %v2478_v31 }
 0x3df   : > { %5330 = vmatpush3.bf16.xpose.msra.mxu1 %v2486_v35  ;;  %5311 = vmatprep.subr.bf16.mxu0 %v6238_v0  ;;  %v2134_v35 = vld [vmem:[%s6606_s13 + $0x150] sm:$0xff] }
 0x3e0   : > { %5331 = vmatprep.subr.bf16.mxu1 %v6238_v0  ;;  %v2497_v40 = vpack.c.bf16 %v2135_v20, %v2134_v35  ;;  %v2125_v35 = vld [vmem:[%s6606_s13 + $0x108] sm:$0xff]  ;;  %v2140_v20 = vld [vmem:[%s6606_s13 + $0x180] sm:$0xff] }
 0x3e6   : > { %5312 = vmatpush3.bf16.xpose.msra.mxu0 %v2477_v44  ;;  %v2505_v44 = vpack.c.bf16 %v2151_v39, %v2150_v52  ;;  %v2141_v52 = vld [vmem:[%s6606_s13 + $0x188] sm:$0xff] }
 0x3e7   : > { %5332 = vmatpush3.bf16.xpose.msra.mxu1 %v2485_v49  ;;  %5313 = vmatprep.subr.bf16.mxu0 %v6238_v0  ;;  %v2132_v49 = vld [vmem:[%s6606_s13 + $0x140] sm:$0xff] }
 0x3e8   : > { %5333 = vmatprep.subr.bf16.mxu1 %v6238_v0  ;;  %v2496_v61 = vpack.c.bf16 %v2133_v51, %v2132_v49  ;;  %v2171_v49 = vld [vmem:[%s6606_s13 + $0x278] sm:$0xff]  ;;  %v2186_v51 = vld [vmem:[%s6606_s13 + $0x2f0] sm:$0xff] }
 0x3ee   : > { %5314 = vmatpush3.bf16.xpose.msra.mxu0 %v2476_v62  ;;  %v2504_v62 = vpack.c.bf16 %v2149_v59, %v2148_v54  ;;  %v2187_v54 = vld [vmem:[%s6606_s13 + $0x2f8] sm:$0xff] }
 0x3ef   : > { %5334 = vmatpush3.bf16.xpose.msra.mxu1 %v2484_v2  ;;  %5339 = vmatprep.subr.bf16.mxu0 %v6238_v0  ;;  %v2130_v2 = vld [vmem:[%s6606_s13 + $0x130] sm:$0xff] }
 0x3f0   : > { %5359 = vmatprep.subr.bf16.mxu1 %v6238_v0  ;;  %v2495_v9 = vpack.c.bf16 %v2131_v15, %v2130_v2 }
 0x3f5   : > { %v7533_v12 = vpop.f32.mrf.mxu0  ;;  %5316 = vmatmul.mubr.bf16.vlgmr.msra.gmra.mxu0 %v6687_v60 }
 0x3f6   : > { %v7536_v13 = vpop.f32.mrf.mxu1  ;;  %5336 = vmatmul.mubr.bf16.vlgmr.msra.gmra.mxu1 %v6687_v60  ;;  %5340 = vmatpush3.bf16.xpose.msra.mxu0 %v2499_v10  ;;  %v2503_v10 = vpack.c.bf16 %v2147_v8, %v2146_v4  ;;  %v2168_v4 = vld [vmem:[%s6606_s13 + $0x260] sm:$0xff]  ;;  %v2169_v8 = vld [vmem:[%s6606_s13 + $0x268] sm:$0xff] }
 0x3f7   : > { %5360 = vmatpush3.bf16.xpose.msra.mxu1 %v2507_v11  ;;  %v5197_v17 = vpop.f32.mrf.mxu0  ;;  %5341 = vmatprep.subr.bf16.mxu0 %v6238_v0  ;;  %v2128_v11 = vld [vmem:[%s6606_s13 + $0x120] sm:$0xff]  ;;  %v2514_v25 = vpack.c.bf16 %v2169_v8, %v2168_v4  ;;  %v2161_v8 = vld [vmem:[%s6606_s13 + $0x228] sm:$0xff] }
 0x3f8   : > { %v5217_v21 = vpop.f32.mrf.mxu1  ;;  %5361 = vmatprep.subr.bf16.mxu1 %v6238_v0  ;;  %5355 = vmatprep.mubr.msk.bf16.mxu0 %vm6239_vm0, %v6238_v0  ;;  %v2129_v17 = vld [vmem:[%s6606_s13 + $0x128] sm:$0xff]  ;;  %v2160_v4 = vld [vmem:[%s6606_s13 + $0x220] sm:$0xff] }
 0x3f9   : > { %v1889_v24 = vpop.f32.mrf.mxu0  ;;  %5375 = vmatprep.mubr.msk.bf16.mxu1 %vm6239_vm0, %v6238_v0  ;;  %v2494_v21 = vpack.c.bf16 %v2129_v17, %v2128_v11  ;;  %v2185_v11 = vld [vmem:[%s6606_s13 + $0x2e8] sm:$0xff] }
 0x3fa   : > { %v1929_v26 = vpop.f32.mrf.mxu1  ;;  %v2127_v24 = vld [vmem:[%s6606_s13 + $0x118] sm:$0xff] }
 0x3fb   : > { %v5198_v41 = vpop.f32.mrf.mxu0  ;;  %v2142_v26 = vld [vmem:[%s6606_s13 + $0x190] sm:$0xff] }
 0x3fc   : > { %v5218_v31 = vpop.f32.mrf.mxu1  ;;  %v2493_v41 = vpack.c.bf16 %v2127_v24, %v2126_v29  ;;  %v2166_v24 = vld [vmem:[%s6606_s13 + $0x250] sm:$0xff] }
 0x3fd   : > { %v2124_v31 = vld [vmem:[%s6606_s13 + $0x100] sm:$0xff] }
 0x3fe   : > { %5342 = vmatpush3.bf16.xpose.msra.mxu0 %v2498_v34  ;;  %v2143_v34 = vld [vmem:[%s6606_s13 + $0x198] sm:$0xff]  ;;  %v2492_v39 = vpack.c.bf16 %v2125_v35, %v2124_v31  ;;  %v2164_v35 = vld [vmem:[%s6606_s13 + $0x240] sm:$0xff] }
 0x3ff   : > { %5362 = vmatpush3.bf16.xpose.msra.mxu1 %v2506_v28  ;;  %5343 = vmatprep.subr.bf16.mxu0 %v6238_v0  ;;  %v2501_v28 = vpack.c.bf16 %v2143_v34, %v2142_v26  ;;  %v2167_v26 = vld [vmem:[%s6606_s13 + $0x258] sm:$0xff]  ;;  %v2182_v34 = vld [vmem:[%s6606_s13 + $0x2d0] sm:$0xff] }
 0x400   : > { %5363 = vmatprep.subr.bf16.mxu1 %v6238_v0 }
 0x406   : > { %5344 = vmatpush3.bf16.xpose.msra.mxu0 %v2497_v40  ;;  %v2500_v40 = vpack.c.bf16 %v2141_v52, %v2140_v20  ;;  %v2165_v20 = vld [vmem:[%s6606_s13 + $0x248] sm:$0xff]  ;;  %v2180_v52 = vld [vmem:[%s6606_s13 + $0x2c0] sm:$0xff] }
 0x407   : > { %5364 = vmatpush3.bf16.xpose.msra.mxu1 %v2505_v44  ;;  %5345 = vmatprep.subr.bf16.mxu0 %v6238_v0  ;;  %v2170_v44 = vld [vmem:[%s6606_s13 + $0x270] sm:$0xff] }
 0x408   : > { %5365 = vmatprep.subr.bf16.mxu1 %v6238_v0  ;;  %v2515_v59 = vpack.c.bf16 %v2171_v49, %v2170_v44  ;;  %v2162_v49 = vld [vmem:[%s6606_s13 + $0x230] sm:$0xff] }
 0x40e   : > { %5346 = vmatpush3.bf16.xpose.msra.mxu0 %v2496_v61  ;;  %v2523_v61 = vpack.c.bf16 %v2187_v54, %v2186_v51  ;;  %v2163_v51 = vld [vmem:[%s6606_s13 + $0x238] sm:$0xff]  ;;  %v2178_v54 = vld [vmem:[%s6606_s13 + $0x2b0] sm:$0xff] }
 0x40f   : > { %5366 = vmatpush3.bf16.xpose.msra.mxu1 %v2504_v62  ;;  %5347 = vmatprep.subr.bf16.mxu0 %v6238_v0 }
 0x410   : > { %5367 = vmatprep.subr.bf16.mxu1 %v6238_v0 }
 0x416   : > { %5348 = vmatpush3.bf16.xpose.msra.mxu0 %v2495_v9 }
 0x417   : > { %5368 = vmatpush3.bf16.xpose.msra.mxu1 %v2503_v10  ;;  %5349 = vmatprep.subr.bf16.mxu0 %v6238_v0  ;;  %v2184_v10 = vld [vmem:[%s6606_s13 + $0x2e0] sm:$0xff] }
 0x418   : > { %5369 = vmatprep.subr.bf16.mxu1 %v6238_v0 }
 0x41e   : > { %5350 = vmatpush3.bf16.xpose.msra.mxu0 %v2494_v21 }
 0x41f   : > { %5370 = vmatpush3.bf16.xpose.msra.mxu1 %v2502_v23  ;;  %5351 = vmatprep.subr.bf16.mxu0 %v6238_v0  ;;  %v2522_v23 = vpack.c.bf16 %v2185_v11, %v2184_v10  ;;  %v2177_v10 = vld [vmem:[%s6606_s13 + $0x2a8] sm:$0xff]  ;;  %v2510_v11 = vpack.c.bf16 %v2161_v8, %v2160_v4  ;;  %v2219_v4 = vld [vmem:[%s6606_s13 + $0x3f8] sm:$0xff] }
 0x420   : > { %5371 = vmatprep.subr.bf16.mxu1 %v6238_v0 }
 0x426   : > { %5352 = vmatpush3.bf16.xpose.msra.mxu0 %v2493_v41  ;;  %v2183_v41 = vld [vmem:[%s6606_s13 + $0x2d8] sm:$0xff] }
 0x427   : > { %5372 = vmatpush3.bf16.xpose.msra.mxu1 %v2501_v28  ;;  %5353 = vmatprep.subr.bf16.mxu0 %v6238_v0  ;;  %v2513_v28 = vpack.c.bf16 %v2167_v26, %v2166_v24  ;;  %v2521_v31 = vpack.c.bf16 %v2183_v41, %v2182_v34  ;;  %v437_v26 = vcvt.f32.s32 %v6971_v19  ;;  %v2156_v34 = vld [vmem:[%s6606_s13 + $0x200] sm:$0xff]  ;;  %v2157_v41 = vld [vmem:[%s6606_s13 + $0x208] sm:$0xff]  ;;  %v3708_v19 = vrot.slane %v7478_v30, 7 }
 0x428   : > { %5373 = vmatprep.subr.bf16.mxu1 %v6238_v0 }
 0x42e   : > { %5354 = vmatpush3.bf16.xpose.msra.mxu0 %v2492_v39  ;;  %v2181_v39 = vld [vmem:[%s6606_s13 + $0x2c8] sm:$0xff] }
 0x42f   : > { %5374 = vmatpush3.bf16.xpose.msra.mxu1 %v2500_v40  ;;  %5379 = vmatprep.subr.bf16.mxu0 %v6238_v0  ;;  %v2512_v40 = vpack.c.bf16 %v2165_v20, %v2164_v35  ;;  %v2520_v44 = vpack.c.bf16 %v2181_v39, %v2180_v52  ;;  %v2172_v35 = vld [vmem:[%s6606_s13 + $0x280] sm:$0xff]  ;;  %v2173_v20 = vld [vmem:[%s6606_s13 + $0x288] sm:$0xff]  ;;  %v2508_v52 = vpack.c.bf16 %v2157_v41, %v2156_v34 }
 0x430   : > { %5399 = vmatprep.subr.bf16.mxu1 %v6238_v0  ;;  %v2516_v39 = vpack.c.bf16 %v2173_v20, %v2172_v35  ;;  %v2200_v41 = vld [vmem:[%s6606_s13 + $0x360] sm:$0xff] }
 0x431   : > { %v2216_v20 = vld [vmem:[%s6606_s13 + $0x3e0] sm:$0xff] }
 0x435   : > { %v7591_v62 = vpop.f32.mrf.mxu0  ;;  %5356 = vmatmul.mubr.bf16.vlgmr.msra.gmra.mxu0 %v6687_v60 }
 0x436   : > { %v7594_v2 = vpop.f32.mrf.mxu1  ;;  %5376 = vmatmul.mubr.bf16.vlgmr.msra.gmra.mxu1 %v6687_v60  ;;  %5380 = vmatpush3.bf16.xpose.msra.mxu0 %v2515_v59  ;;  %v2179_v59 = vld [vmem:[%s6606_s13 + $0x2b8] sm:$0xff] }
 0x437   : > { %5400 = vmatpush3.bf16.xpose.msra.mxu1 %v2523_v61  ;;  %v5237_v15 = vpop.f32.mrf.mxu0  ;;  %5381 = vmatprep.subr.bf16.mxu0 %v6238_v0  ;;  %v2511_v61 = vpack.c.bf16 %v2163_v51, %v2162_v49  ;;  %v3709_v49 = vsel %vm3674_vm1, %v3708_v19, %v7475_v47  ;;  %v2202_v51 = vld [vmem:[%s6606_s13 + $0x370] sm:$0xff] }
 0x438   : > { %v5257_v9 = vpop.f32.mrf.mxu1  ;;  %5401 = vmatprep.subr.bf16.mxu1 %v6238_v0  ;;  %5395 = vmatprep.mubr.msk.bf16.mxu0 %vm6239_vm0, %v6238_v0  ;;  %v2519_v15 = vpack.c.bf16 %v2179_v59, %v2178_v54  ;;  %v2203_v54 = vld [vmem:[%s6606_s13 + $0x378] sm:$0xff] }
 0x439   : > { %v1969_v17 = vpop.f32.mrf.mxu0  ;;  %5415 = vmatprep.mubr.msk.bf16.mxu1 %vm6239_vm0, %v6238_v0  ;;  %v2176_v9 = vld [vmem:[%s6606_s13 + $0x2a0] sm:$0xff] }
 0x43a   : > { %v2009_v18 = vpop.f32.mrf.mxu1  ;;  %v2518_v17 = vpack.c.bf16 %v2177_v10, %v2176_v9  ;;  %v2531_v9 = vpack.c.bf16 %v2203_v54, %v2202_v51 }
 0x43b   : > { %v5238_v21 = vpop.f32.mrf.mxu0  ;;  %v2158_v18 = vld [vmem:[%s6606_s13 + $0x210] sm:$0xff] }
 0x43c   : > { %v5258_v29 = vpop.f32.mrf.mxu1  ;;  %v2174_v21 = vld [vmem:[%s6606_s13 + $0x290] sm:$0xff] }
 0x43e   : > { %5382 = vmatpush3.bf16.xpose.msra.mxu0 %v2514_v25  ;;  %v2159_v25 = vld [vmem:[%s6606_s13 + $0x218] sm:$0xff] }
 0x43f   : > { %5402 = vmatpush3.bf16.xpose.msra.mxu1 %v2522_v23  ;;  %5383 = vmatprep.subr.bf16.mxu0 %v6238_v0  ;;  %v2175_v23 = vld [vmem:[%s6606_s13 + $0x298] sm:$0xff]  ;;  %v2509_v29 = vpack.c.bf16 %v2159_v25, %v2158_v18 }
 0x440   : > { %5403 = vmatprep.subr.bf16.mxu1 %v6238_v0  ;;  %v2517_v24 = vpack.c.bf16 %v2175_v23, %v2174_v21 }
 0x446   : > { %5384 = vmatpush3.bf16.xpose.msra.mxu0 %v2513_v28  ;;  %v438_v28 = vshll.u32 %v437_v26, 16 }
 0x447   : > { %5404 = vmatpush3.bf16.xpose.msra.mxu1 %v2521_v31  ;;  %5385 = vmatprep.subr.bf16.mxu0 %v6238_v0  ;;  %v436_v31 = vcvt.f32.s32 %v7146_v3  ;;  %v3712_v3 = vrot.slane %v7536_v13, 5 }
 0x448   : > { %5405 = vmatprep.subr.bf16.mxu1 %v6238_v0 }
 0x44e   : > { %5386 = vmatpush3.bf16.xpose.msra.mxu0 %v2512_v40  ;;  %v7646_v40 = vadd.s32 %v438_v28, %v436_v31  ;;  %v2201_v28 = vld [vmem:[%s6606_s13 + $0x368] sm:$0xff] }
 0x44f   : > { %5406 = vmatpush3.bf16.xpose.msra.mxu1 %v2520_v44  ;;  %5387 = vmatprep.subr.bf16.mxu0 %v6238_v0  ;;  %v3710_v44 = vrot.slane %v7533_v12, 6 }
 0x450   : > { %5407 = vmatprep.subr.bf16.mxu1 %v6238_v0  ;;  %v4374_v8 = vadd.s32 4294967295, %v7646_v40  ;;  %vm3630_vm15 = vcmp.gt.s32.totalorder %v7646_v40, 0 }
 0x451   : > { %v3711_v59 = vsel %vm3677_vm2, %v3710_v44, %v3709_v49 }
 0x452   : > { %v3713_v10 = vsel %vm3680_vm3, %v3712_v3, %v3711_v59  ;;  %v3636_v25 = vsel %vm3630_vm15, %v4374_v8, 127  ;;  %v2530_v3 = vpack.c.bf16 %v2201_v28, %v2200_v41  ;;  %v2215_v8 = vld [vmem:[%s6606_s13 + $0x3d8] sm:$0xff]  ;;  %v2210_v41 = vld [vmem:[%s6606_s13 + $0x3b0] sm:$0xff] }
 0x453   : > { %vm3648_vm5 = vcmp.eq.s32.totalorder %v6653_v33, %v3636_v25  ;;  %v2213_v25 = vld [vmem:[%s6606_s13 + $0x3c8] sm:$0xff]  ;;  %v2211_v28 = vld [vmem:[%s6606_s13 + $0x3b8] sm:$0xff] }
 0x456   : > { %5388 = vmatpush3.bf16.xpose.msra.mxu0 %v2511_v61  ;;  %v3714_v61 = vrot.slane %v7591_v62, 4 }
 0x457   : > { %5408 = vmatpush3.bf16.xpose.msra.mxu1 %v2519_v15  ;;  %5389 = vmatprep.subr.bf16.mxu0 %v6238_v0  ;;  %v2218_v15 = vld [vmem:[%s6606_s13 + $0x3f0] sm:$0xff] }
 0x458   : > { %5409 = vmatprep.subr.bf16.mxu1 %v6238_v0  ;;  %v3715_v18 = vsel %vm3683_vm4, %v3714_v61, %v3713_v10  ;;  %v2198_v61 = vld [vmem:[%s6606_s13 + $0x350] sm:$0xff] }
 0x45e   : > { %5390 = vmatpush3.bf16.xpose.msra.mxu0 %v2510_v11  ;;  %v3716_v11 = vrot.slane %v7594_v2, 3 }
 0x45f   : > { %5410 = vmatpush3.bf16.xpose.msra.mxu1 %v2518_v17  ;;  %5391 = vmatprep.subr.bf16.mxu0 %v6238_v0  ;;  %v2539_v17 = vpack.c.bf16 %v2219_v4, %v2218_v15  ;;  %v2199_v15 = vld [vmem:[%s6606_s13 + $0x358] sm:$0xff]  ;;  %v2214_v4 = vld [vmem:[%s6606_s13 + $0x3d0] sm:$0xff] }
 0x460   : > { %5411 = vmatprep.subr.bf16.mxu1 %v6238_v0  ;;  %v3717_v34 = vsel %vm3686_vm6, %v3716_v11, %v3715_v18  ;;  %v2537_v10 = vpack.c.bf16 %v2215_v8, %v2214_v4  ;;  %v2196_v11 = vld [vmem:[%s6606_s13 + $0x340] sm:$0xff]  ;;  %v2189_v8 = vld [vmem:[%s6606_s13 + $0x308] sm:$0xff] }
 0x461   : > { %v2212_v18 = vld [vmem:[%s6606_s13 + $0x3c0] sm:$0xff] }
 0x462   : > { %v2188_v4 = vld [vmem:[%s6606_s13 + $0x300] sm:$0xff] }
 0x466   : > { %5392 = vmatpush3.bf16.xpose.msra.mxu0 %v2509_v29 }
 0x467   : > { %5412 = vmatpush3.bf16.xpose.msra.mxu1 %v2517_v24  ;;  %5393 = vmatprep.subr.bf16.mxu0 %v6238_v0 }
 0x468   : > { %5413 = vmatprep.subr.bf16.mxu1 %v6238_v0 }
 0x46e   : > { %5394 = vmatpush3.bf16.xpose.msra.mxu0 %v2508_v52  ;;  %v2217_v52 = vld [vmem:[%s6606_s13 + $0x3e8] sm:$0xff] }
 0x46f   : > { %5414 = vmatpush3.bf16.xpose.msra.mxu1 %v2516_v39  ;;  %5419 = vmatprep.subr.bf16.mxu0 %v6238_v0  ;;  %v2538_v54 = vpack.c.bf16 %v2217_v52, %v2216_v20  ;;  %v2192_v20 = vld [vmem:[%s6606_s13 + $0x320] sm:$0xff]  ;;  %v2193_v52 = vld [vmem:[%s6606_s13 + $0x328] sm:$0xff] }
 0x470   : > { %5439 = vmatprep.subr.bf16.mxu1 %v6238_v0 }
 0x475   : > { %v7665_v21 = vpop.f32.mrf.mxu0  ;;  %5396 = vmatmul.mubr.bf16.vlgmr.msra.gmra.mxu0 %v6687_v60 }
 0x476   : > { %v3718_v23 = vrot.slane %v7665_v21, 2  ;;  %v7669_v29 = vpop.f32.mrf.mxu1  ;;  %5416 = vmatmul.mubr.bf16.vlgmr.msra.gmra.mxu1 %v6687_v60  ;;  %5420 = vmatpush3.bf16.xpose.msra.mxu0 %v2531_v9  ;;  %v2529_v9 = vpack.c.bf16 %v2199_v15, %v2198_v61 }
 0x477   : > { %v3720_v24 = vrot.slane %v7669_v29, 1  ;;  %5440 = vmatpush3.bf16.xpose.msra.mxu1 %v2539_v17  ;;  %v5277_v26 = vpop.f32.mrf.mxu0  ;;  %5421 = vmatprep.subr.bf16.mxu0 %v6238_v0  ;;  %v2197_v17 = vld [vmem:[%s6606_s13 + $0x348] sm:$0xff] }
 0x478   : > { %v5297_v31 = vpop.f32.mrf.mxu1  ;;  %v3719_v35 = vsel %vm3689_vm7, %v3718_v23, %v3717_v34  ;;  %5441 = vmatprep.subr.bf16.mxu1 %v6238_v0  ;;  %5435 = vmatprep.mubr.msk.bf16.mxu0 %vm6239_vm0, %v6238_v0  ;;  %v2528_v23 = vpack.c.bf16 %v2197_v17, %v2196_v11  ;;  %v2194_v26 = vld [vmem:[%s6606_s13 + $0x330] sm:$0xff]  ;;  %v2195_v34 = vld [vmem:[%s6606_s13 + $0x338] sm:$0xff]  ;;  %v2524_v11 = vpack.c.bf16 %v2189_v8, %v2188_v4 }
 0x479   : > { %v2049_v19 = vpop.f32.mrf.mxu0  ;;  %v3721_v39 = vsel %vm3692_vm8, %v3720_v24, %v3719_v35  ;;  %5455 = vmatprep.mubr.msk.bf16.mxu1 %vm6239_vm0, %v6238_v0  ;;  %v2536_v24 = vpack.c.bf16 %v2213_v25, %v2212_v18  ;;  %v2527_v31 = vpack.c.bf16 %v2195_v34, %v2194_v26  ;;  %v2535_v35 = vpack.c.bf16 %v2211_v28, %v2210_v41  ;;  %v2234_v18 = vld [vmem:[%s6606_s13 + $0x470] sm:$0xff]  ;;  %v2235_v25 = vld [vmem:[%s6606_s13 + $0x478] sm:$0xff] }
 0x47a   : > { %v2089_v44 = vpop.f32.mrf.mxu1  ;;  %v3727_v49 = vsel %vm3648_vm5, %v3721_v39, 0.0  ;;  %v2208_v19 = vld [vmem:[%s6606_s13 + $0x3a0] sm:$0xff]  ;;  %v2209_v39 = vld [vmem:[%s6606_s13 + $0x3a8] sm:$0xff]  ;;  %v2547_v26 = vpack.c.bf16 %v2235_v25, %v2234_v18  ;;  %v2230_v18 = vld [vmem:[%s6606_s13 + $0x450] sm:$0xff] }
 0x47b   : > { %v5278_v51 = vpop.f32.mrf.mxu0  ;;  %3732 = vadd.xlane.f32.xlu1 %v3727_v49  ;;  %v2526_v44 = vpack.c.bf16 %v2193_v52, %v2192_v20  ;;  %v2534_v49 = vpack.c.bf16 %v2209_v39, %v2208_v19  ;;  %v2232_v19 = vld [vmem:[%s6606_s13 + $0x460] sm:$0xff]  ;;  %v2233_v39 = vld [vmem:[%s6606_s13 + $0x468] sm:$0xff]  ;;  %v2231_v25 = vld [vmem:[%s6606_s13 + $0x458] sm:$0xff] }
 0x47c   : > { %v5298_v59 = vpop.f32.mrf.mxu1  ;;  %v2191_v51 = vld [vmem:[%s6606_s13 + $0x318] sm:$0xff] }
 0x47d   : > { %v2207_v59 = vld [vmem:[%s6606_s13 + $0x398] sm:$0xff] }
 0x47e   : > { %5422 = vmatpush3.bf16.xpose.msra.mxu0 %v2530_v3  ;;  %v2190_v3 = vld [vmem:[%s6606_s13 + $0x310] sm:$0xff] }
 0x47f   : > { %5442 = vmatpush3.bf16.xpose.msra.mxu1 %v2538_v54  ;;  %5423 = vmatprep.subr.bf16.mxu0 %v6238_v0  ;;  %v2206_v54 = vld [vmem:[%s6606_s13 + $0x390] sm:$0xff]  ;;  %v2525_v61 = vpack.c.bf16 %v2191_v51, %v2190_v3  ;;  %v2249_v3 = vld [vmem:[%s6606_s13 + $0x4e8] sm:$0xff] }
 0x480   : > { %5443 = vmatprep.subr.bf16.mxu1 %v6238_v0  ;;  %v2533_v15 = vpack.c.bf16 %v2207_v59, %v2206_v54 }
 0x486   : > { %5424 = vmatpush3.bf16.xpose.msra.mxu0 %v2529_v9  ;;  %v2204_v9 = vld [vmem:[%s6606_s13 + $0x380] sm:$0xff] }
 0x487   : > { %5444 = vmatpush3.bf16.xpose.msra.mxu1 %v2537_v10  ;;  %5425 = vmatprep.subr.bf16.mxu0 %v6238_v0  ;;  %v2205_v10 = vld [vmem:[%s6606_s13 + $0x388] sm:$0xff] }
 0x488   : > { %5445 = vmatprep.subr.bf16.mxu1 %v6238_v0  ;;  %v2532_v17 = vpack.c.bf16 %v2205_v10, %v2204_v9 }
 0x48e   : > { %5426 = vmatpush3.bf16.xpose.msra.mxu0 %v2528_v23  ;;  %v2250_v23 = vld [vmem:[%s6606_s13 + $0x4f0] sm:$0xff] }
 0x48f   : > { %5446 = vmatpush3.bf16.xpose.msra.mxu1 %v2536_v24  ;;  %5427 = vmatprep.subr.bf16.mxu0 %v6238_v0  ;;  %v2251_v24 = vld [vmem:[%s6606_s13 + $0x4f8] sm:$0xff] }
 0x490   : > { %5447 = vmatprep.subr.bf16.mxu1 %v6238_v0  ;;  %v2555_v34 = vpack.c.bf16 %v2251_v24, %v2250_v23  ;;  %v2246_v23 = vld [vmem:[%s6606_s13 + $0x4d0] sm:$0xff]  ;;  %v2247_v24 = vld [vmem:[%s6606_s13 + $0x4d8] sm:$0xff] }
 0x496   : > { %5428 = vmatpush3.bf16.xpose.msra.mxu0 %v2527_v31 }
 0x497   : > { %5448 = vmatpush3.bf16.xpose.msra.mxu1 %v2535_v35  ;;  %5429 = vmatprep.subr.bf16.mxu0 %v6238_v0 }
 0x498   : > { %5449 = vmatprep.subr.bf16.mxu1 %v6238_v0 }
 0x49e   : > { %5430 = vmatpush3.bf16.xpose.msra.mxu0 %v2526_v44 }
 0x49f   : > { %5450 = vmatpush3.bf16.xpose.msra.mxu1 %v2534_v49  ;;  %5431 = vmatprep.subr.bf16.mxu0 %v6238_v0 }
 0x4a0   : > { %5451 = vmatprep.subr.bf16.mxu1 %v6238_v0 }
 0x4a6   : > { %5432 = vmatpush3.bf16.xpose.msra.mxu0 %v2525_v61 }
 0x4a7   : > { %5452 = vmatpush3.bf16.xpose.msra.mxu1 %v2533_v15  ;;  %5433 = vmatprep.subr.bf16.mxu0 %v6238_v0  ;;  %v2546_v15 = vpack.c.bf16 %v2233_v39, %v2232_v19 }
 0x4a8   : > { %5453 = vmatprep.subr.bf16.mxu1 %v6238_v0 }
 0x4ae   : > { %5434 = vmatpush3.bf16.xpose.msra.mxu0 %v2524_v11 }
 0x4af   : > { %5454 = vmatpush3.bf16.xpose.msra.mxu1 %v2532_v17  ;;  %5459 = vmatprep.subr.bf16.mxu0 %v6238_v0 }
 0x4b0   : > { %5479 = vmatprep.subr.bf16.mxu1 %v6238_v0 }
 0x4b5   : > { %v2702_v41 = vpop.f32.mrf.mxu0  ;;  %5436 = vmatmul.mubr.bf16.vlgmr.msra.gmra.mxu0 %v6687_v60 }
 0x4b6   : > { %v7731_v28 = vsub.f32 %v6922_v14, %v2702_v41  ;;  %v2742_v31 = vpop.f32.mrf.mxu1  ;;  %5456 = vmatmul.mubr.bf16.vlgmr.msra.gmra.mxu1 %v6687_v60  ;;  %5460 = vmatpush3.bf16.xpose.msra.mxu0 %v2547_v26  ;;  %v2248_v14 = vld [vmem:[%s6606_s13 + $0x4e0] sm:$0xff]  ;;  %v2545_v26 = vpack.c.bf16 %v2231_v25, %v2230_v18 }
 0x4b7   : > { %v3761_v35 = vrot.slane %v2742_v31, 7  ;;  %v7735_v20 = vsub.f32 %v6925_v16, %v2742_v31  ;;  %5480 = vmatpush3.bf16.xpose.msra.mxu1 %v2555_v34  ;;  %v5317_v52 = vpop.f32.mrf.mxu0  ;;  %5461 = vmatprep.subr.bf16.mxu0 %v6238_v0  ;;  %v2554_v9 = vpack.c.bf16 %v2249_v3, %v2248_v14  ;;  %v2553_v34 = vpack.c.bf16 %v2247_v24, %v2246_v23  ;;  %v2229_v31 = vld [vmem:[%s6606_s13 + $0x448] sm:$0xff] }
 0x4b8   : > { %v3887_v44 = vand.u32 2147483647, %v7731_v28  ;;  %v5337_v49 = vpop.f32.mrf.mxu1  ;;  %5481 = vmatprep.subr.bf16.mxu1 %v6238_v0  ;;  %5475 = vmatprep.mubr.msk.bf16.mxu0 %vm6239_vm0, %v6238_v0  ;;  %v2245_v52 = vld [vmem:[%s6606_s13 + $0x4c8] sm:$0xff]  ;;  %v3839_v23 = vsub.f32 0.0, %v7731_v28  ;;  %v2238_v28 = vld [vmem:[%s6606_s13 + $0x490] sm:$0xff] }
 0x4b9   : > { %v7747_v51 = vsel %vm3674_vm1, %v3761_v35, %v2702_v41  ;;  %v3888_v16 = vand.u32 2147483647, %v7735_v20  ;;  %v2705_v54 = vpop.f32.mrf.mxu0  ;;  %5495 = vmatprep.mubr.msk.bf16.mxu1 %vm6239_vm0, %v6238_v0  ;;  %v2228_v41 = vld [vmem:[%s6606_s13 + $0x440] sm:$0xff] }
 0x4ba   : > { %v3911_v59 = vsub.f32 0.0, %v3887_v44  ;;  %v2745_v61 = vpop.f32.mrf.mxu1  ;;  %v2244_v35 = vld [vmem:[%s6606_s13 + $0x4c0] sm:$0xff]  ;;  %v2544_v19 = vpack.c.bf16 %v2229_v31, %v2228_v41  ;;  %v2227_v54 = vld [vmem:[%s6606_s13 + $0x438] sm:$0xff] }
 0x4bb   : > { %v3912_v4 = vsub.f32 0.0, %v3888_v16  ;;  %v5318_v8 = vpop.f32.mrf.mxu0  ;;  %v2552_v44 = vpack.c.bf16 %v2245_v52, %v2244_v35  ;;  %v2226_v16 = vld [vmem:[%s6606_s13 + $0x430] sm:$0xff]  ;;  %v2243_v61 = vld [vmem:[%s6606_s13 + $0x4b8] sm:$0xff]  ;;  %v3863_v35 = vmax.f32 %v3839_v23, 0.0 }
 0x4bc   : > { %v3935_v10 = vmul.f32 1.442695, %v3911_v59  ;;  %v5338_v11 = vpop.f32.mrf.mxu1  ;;  %v2242_v59 = vld [vmem:[%s6606_s13 + $0x4b0] sm:$0xff]  ;;  %v2224_v8 = vld [vmem:[%s6606_s13 + $0x420] sm:$0xff] }
 0x4bd   : > { %v3937_v17 = vmul.f32 1.442695, %v3912_v4  ;;  %v2551_v4 = vpack.c.bf16 %v2243_v61, %v2242_v59  ;;  %v2241_v11 = vld [vmem:[%s6606_s13 + $0x4a8] sm:$0xff]  ;;  %v2236_v61 = vld [vmem:[%s6606_s13 + $0x480] sm:$0xff] }
 0x4be   : > { %5888 = vpow2.f32 %v3935_v10  ;;  %5462 = vmatpush3.bf16.xpose.msra.mxu0 %v2546_v15  ;;  %v2543_v15 = vpack.c.bf16 %v2227_v54, %v2226_v16  ;;  %v2240_v10 = vld [vmem:[%s6606_s13 + $0x4a0] sm:$0xff]  ;;  %v2221_v59 = vld [vmem:[%s6606_s13 + $0x408] sm:$0xff] }
 0x4bf   : > { %5890 = vpow2.f32 %v3937_v17  ;;  %5482 = vmatpush3.bf16.xpose.msra.mxu1 %v2554_v9  ;;  %5463 = vmatprep.subr.bf16.mxu0 %v6238_v0  ;;  %v2225_v9 = vld [vmem:[%s6606_s13 + $0x428] sm:$0xff]  ;;  %v3840_v17 = vsub.f32 0.0, %v7735_v20  ;;  %v2550_v24 = vpack.c.bf16 %v2241_v11, %v2240_v10  ;;  %v2222_v20 = vld [vmem:[%s6606_s13 + $0x410] sm:$0xff]  ;;  %v2220_v54 = vld [vmem:[%s6606_s13 + $0x400] sm:$0xff] }
 0x4c0   : > { %5483 = vmatprep.subr.bf16.mxu1 %v6238_v0  ;;  %v2542_v18 = vpack.c.bf16 %v2225_v9, %v2224_v8  ;;  %v2266_v9 = vld [vmem:[%s6606_s13 + $0x570] sm:$0xff]  ;;  %v2267_v10 = vld [vmem:[%s6606_s13 + $0x578] sm:$0xff] }
 0x4c1   : > { %v3864_v41 = vmax.f32 %v3840_v17, 0.0  ;;  %v2282_v11 = vld [vmem:[%s6606_s13 + $0x5f0] sm:$0xff]  ;;  %v2283_v17 = vld [vmem:[%s6606_s13 + $0x5f8] sm:$0xff] }
 0x4c6   : > { %5464 = vmatpush3.bf16.xpose.msra.mxu0 %v2545_v26 }
 0x4c7   : > { %5484 = vmatpush3.bf16.xpose.msra.mxu1 %v2553_v34  ;;  %5465 = vmatprep.subr.bf16.mxu0 %v6238_v0 }
 0x4c8   : > { %5485 = vmatprep.subr.bf16.mxu1 %v6238_v0 }
 0x4cb   : > { %v5889_v39 = vpop.eup %5888 }
 0x4cc   : > { %v5891_v49 = vpop.eup %5890  ;;  %v3983_v14 = vadd.f32 1.0, %v5889_v39  ;;  %v2239_v39 = vld [vmem:[%s6606_s13 + $0x498] sm:$0xff] }
 0x4cd   : > { %v3984_v3 = vadd.f32 1.0, %v5891_v49  ;;  %v2549_v16 = vpack.c.bf16 %v2239_v39, %v2238_v28  ;;  %v2280_v39 = vld [vmem:[%s6606_s13 + $0x5e0] sm:$0xff] }
 0x4ce   : > { %5892 = vlog2.f32 %v3983_v14  ;;  %5466 = vmatpush3.bf16.xpose.msra.mxu0 %v2544_v19  ;;  %v2223_v19 = vld [vmem:[%s6606_s13 + $0x418] sm:$0xff] }
 0x4cf   : > { %5894 = vlog2.f32 %v3984_v3  ;;  %5486 = vmatpush3.bf16.xpose.msra.mxu1 %v2552_v44  ;;  %5467 = vmatprep.subr.bf16.mxu0 %v6238_v0  ;;  %v2541_v14 = vpack.c.bf16 %v2223_v19, %v2222_v20  ;;  %v2265_v20 = vld [vmem:[%s6606_s13 + $0x568] sm:$0xff] }
 0x4d0   : > { %5487 = vmatprep.subr.bf16.mxu1 %v6238_v0 }
 0x4d6   : > { %5468 = vmatpush3.bf16.xpose.msra.mxu0 %v2543_v15  ;;  %v2237_v15 = vld [vmem:[%s6606_s13 + $0x488] sm:$0xff] }
 0x4d7   : > { %5488 = vmatpush3.bf16.xpose.msra.mxu1 %v2551_v4  ;;  %5469 = vmatprep.subr.bf16.mxu0 %v6238_v0  ;;  %v2540_v4 = vpack.c.bf16 %v2221_v59, %v2220_v54  ;;  %v2548_v8 = vpack.c.bf16 %v2237_v15, %v2236_v61 }
 0x4d8   : > { %5489 = vmatprep.subr.bf16.mxu1 %v6238_v0 }
 0x4db   : > { %v5893_v25 = vpop.eup %5892 }
 0x4dc   : > { %v5895_v26 = vpop.eup %5894  ;;  %v4008_v34 = vmul.f32 0.6931472, %v5893_v25  ;;  %v2571_v25 = vpack.c.bf16 %v2283_v17, %v2282_v11  ;;  %v2263_v11 = vld [vmem:[%s6606_s13 + $0x558] sm:$0xff]  ;;  %v2278_v17 = vld [vmem:[%s6606_s13 + $0x5d0] sm:$0xff] }
 0x4dd   : > { %v4010_v31 = vmul.f32 0.6931472, %v5895_v26 }
 0x4de   : > { %5470 = vmatpush3.bf16.xpose.msra.mxu0 %v2542_v18  ;;  %v4055_v44 = vadd.f32 %v4008_v34, %v3863_v35  ;;  %v2563_v18 = vpack.c.bf16 %v2267_v10, %v2266_v9  ;;  %v2262_v10 = vld [vmem:[%s6606_s13 + $0x550] sm:$0xff] }
 0x4df   : > { %v4056_v52 = vadd.f32 %v4010_v31, %v3864_v41  ;;  %5490 = vmatpush3.bf16.xpose.msra.mxu1 %v2550_v24  ;;  %5471 = vmatprep.subr.bf16.mxu0 %v6238_v0 }
 0x4e0   : > { %5491 = vmatprep.subr.bf16.mxu1 %v6238_v0 }
 0x4e1   : > { %v4124_v49 = vrot.slane %v4056_v52, 7  ;;  %v2264_v52 = vld [vmem:[%s6606_s13 + $0x560] sm:$0xff] }
 0x4e2   : > { %v2562_v54 = vpack.c.bf16 %v2265_v20, %v2264_v52 }
 0x4e3   : > { %v7785_v3 = vsel %vm3674_vm1, %v4124_v49, %v4055_v44  ;;  %v2281_v44 = vld [vmem:[%s6606_s13 + $0x5e8] sm:$0xff] }
 0x4e4   : > { %v2570_v15 = vpack.c.bf16 %v2281_v44, %v2280_v39  ;;  %v2258_v44 = vld [vmem:[%s6606_s13 + $0x530] sm:$0xff] }
 0x4e6   : > { %5472 = vmatpush3.bf16.xpose.msra.mxu0 %v2541_v14 }
 0x4e7   : > { %5492 = vmatpush3.bf16.xpose.msra.mxu1 %v2549_v16  ;;  %5473 = vmatprep.subr.bf16.mxu0 %v6238_v0 }
 0x4e8   : > { %5493 = vmatprep.subr.bf16.mxu1 %v6238_v0 }
 0x4ee   : > { %5474 = vmatpush3.bf16.xpose.msra.mxu0 %v2540_v4 }
 0x4ef   : > { %5494 = vmatpush3.bf16.xpose.msra.mxu1 %v2548_v8  ;;  %5499 = vmatprep.subr.bf16.mxu0 %v6238_v0 }
 0x4f0   : > { %5519 = vmatprep.subr.bf16.mxu1 %v6238_v0 }
 0x4f5   : > { %v2782_v23 = vpop.f32.mrf.mxu0  ;;  %5476 = vmatmul.mubr.bf16.vlgmr.msra.gmra.mxu0 %v6687_v60 }
 0x4f6   : > { %v3763_v24 = vrot.slane %v2782_v23, 6  ;;  %v7801_v26 = vsub.f32 %v6998_v53, %v2782_v23  ;;  %v2822_v34 = vpop.f32.mrf.mxu1  ;;  %5496 = vmatmul.mubr.bf16.vlgmr.msra.gmra.mxu1 %v6687_v60  ;;  %5500 = vmatpush3.bf16.xpose.msra.mxu0 %v2563_v18  ;;  %v2279_v18 = vld [vmem:[%s6606_s13 + $0x5d8] sm:$0xff] }
 0x4f7   : > { %v3765_v41 = vrot.slane %v2822_v34, 5  ;;  %v7805_v31 = vsub.f32 %v7003_v58, %v2822_v34  ;;  %5520 = vmatpush3.bf16.xpose.msra.mxu1 %v2571_v25  ;;  %v5357_v35 = vpop.f32.mrf.mxu0  ;;  %5501 = vmatprep.subr.bf16.mxu0 %v6238_v0  ;;  %v2561_v25 = vpack.c.bf16 %v2263_v11, %v2262_v10  ;;  %v2569_v23 = vpack.c.bf16 %v2279_v18, %v2278_v17  ;;  %v2261_v34 = vld [vmem:[%s6606_s13 + $0x548] sm:$0xff]  ;;  %v2272_v10 = vld [vmem:[%s6606_s13 + $0x5a0] sm:$0xff] }
 0x4f8   : > { %v3764_v19 = vsel %vm3677_vm2, %v3763_v24, %v7747_v51  ;;  %v3889_v53 = vand.u32 2147483647, %v7801_v26  ;;  %v5377_v28 = vpop.f32.mrf.mxu1  ;;  %5521 = vmatprep.subr.bf16.mxu1 %v6238_v0  ;;  %5515 = vmatprep.mubr.msk.bf16.mxu0 %vm6239_vm0, %v6238_v0  ;;  %v2260_v24 = vld [vmem:[%s6606_s13 + $0x540] sm:$0xff]  ;;  %v2277_v35 = vld [vmem:[%s6606_s13 + $0x5c8] sm:$0xff] }
 0x4f9   : > { %v7819_v58 = vsel %vm3680_vm3, %v3765_v41, %v3764_v19  ;;  %v3890_v49 = vand.u32 2147483647, %v7805_v31  ;;  %v2785_v14 = vpop.f32.mrf.mxu0  ;;  %5535 = vmatprep.mubr.msk.bf16.mxu1 %vm6239_vm0, %v6238_v0  ;;  %v2276_v41 = vld [vmem:[%s6606_s13 + $0x5c0] sm:$0xff]  ;;  %v2560_v52 = vpack.c.bf16 %v2261_v34, %v2260_v24  ;;  %v2273_v11 = vld [vmem:[%s6606_s13 + $0x5a8] sm:$0xff] }
 0x4fa   : > { %v3913_v51 = vsub.f32 0.0, %v3889_v53  ;;  %v2825_v16 = vpop.f32.mrf.mxu1  ;;  %v2568_v19 = vpack.c.bf16 %v2277_v35, %v2276_v41  ;;  %v2274_v14 = vld [vmem:[%s6606_s13 + $0x5b0] sm:$0xff]  ;;  %v2566_v41 = vpack.c.bf16 %v2273_v11, %v2272_v10 }
 0x4fb   : > { %v3914_v59 = vsub.f32 0.0, %v3890_v49  ;;  %v5358_v61 = vpop.f32.mrf.mxu0  ;;  %v2259_v49 = vld [vmem:[%s6606_s13 + $0x538] sm:$0xff] }
 0x4fc   : > { %v3939_v4 = vmul.f32 1.442695, %v3913_v51  ;;  %v5378_v8 = vpop.f32.mrf.mxu1  ;;  %v2275_v51 = vld [vmem:[%s6606_s13 + $0x5b8] sm:$0xff]  ;;  %v2559_v16 = vpack.c.bf16 %v2259_v49, %v2258_v44  ;;  %v457_v61 = vcvt.f32.s32 %v7094_v38  ;;  %v2254_v44 = vld [vmem:[%s6606_s13 + $0x510] sm:$0xff] }
 0x4fd   : > { %v3941_v9 = vmul.f32 1.442695, %v3914_v59  ;;  %v505_v59 = vcvt.f32.s32 %v6993_v46  ;;  %v503_v8 = vpop.xlane.xlu1 %502  ;;  %v3842_v46 = vsub.f32 0.0, %v7805_v31  ;;  %v2255_v49 = vld [vmem:[%s6606_s13 + $0x518] sm:$0xff] }
 0x4fe   : > { %5896 = vpow2.f32 %v3939_v4  ;;  %5502 = vmatpush3.bf16.xpose.msra.mxu0 %v2562_v54  ;;  %v2567_v54 = vpack.c.bf16 %v2275_v51, %v2274_v14  ;;  %v2257_v4 = vld [vmem:[%s6606_s13 + $0x528] sm:$0xff]  ;;  %v504_v18 = vcvt.f32.s32 %v503_v8  ;;  %v2270_v51 = vld [vmem:[%s6606_s13 + $0x590] sm:$0xff] }
 0x4ff   : > { %5898 = vpow2.f32 %v3941_v9  ;;  %5522 = vmatpush3.bf16.xpose.msra.mxu1 %v2570_v15  ;;  %5503 = vmatprep.subr.bf16.mxu0 %v6238_v0  ;;  %v2256_v15 = vld [vmem:[%s6606_s13 + $0x520] sm:$0xff]  ;;  %v3841_v9 = vsub.f32 0.0, %v7801_v26  ;;  %v506_v17 = vshll.u32 %v505_v59, 16 }
 0x500   : > { %5523 = vmatprep.subr.bf16.mxu1 %v6238_v0  ;;  %v2558_v24 = vpack.c.bf16 %v2257_v4, %v2256_v15  ;;  %v2557_v15 = vpack.c.bf16 %v2255_v49, %v2254_v44  ;;  %v2312_v49 = vld [vmem:[%s6606_s13 + $0x6e0] sm:$0xff] }
 0x506   : > { %5504 = vmatpush3.bf16.xpose.msra.mxu0 %v2561_v25  ;;  %v455_v25 = vpop.xlane.xlu0 %454 }
 0x507   : > { %5524 = vmatpush3.bf16.xpose.msra.mxu1 %v2569_v23  ;;  %5505 = vmatprep.subr.bf16.mxu0 %v6238_v0  ;;  %v458_v23 = vshll.u32 %v457_v61, 16  ;;  %v456_v38 = vcvt.f32.s32 %v455_v25  ;;  %v2269_v25 = vld [vmem:[%s6606_s13 + $0x588] sm:$0xff] }
 0x508   : > { %5525 = vmatprep.subr.bf16.mxu1 %v6238_v0 }
 0x50b   : > { %v5897_v20 = vpop.eup %5896 }
 0x50c   : > { %v5899_v53 = vpop.eup %5898  ;;  %v3985_v28 = vadd.f32 1.0, %v5897_v20  ;;  %v7852_v20 = vadd.s32 %v506_v17, %v504_v18  ;;  %v2253_v17 = vld [vmem:[%s6606_s13 + $0x508] sm:$0xff]  ;;  %v2268_v18 = vld [vmem:[%s6606_s13 + $0x580] sm:$0xff] }
 0x50d   : > { %v3986_v39 = vadd.f32 1.0, %v5899_v53 }
 0x50e   : > { %5900 = vlog2.f32 %v3985_v28  ;;  %5506 = vmatpush3.bf16.xpose.msra.mxu0 %v2560_v52  ;;  %v3865_v52 = vmax.f32 %v3841_v9, 0.0  ;;  %v7854_v28 = vadd.s32 %v458_v23, %v456_v38  ;;  %vm536_vm10 = vcmp.lt.s32.totalorder %v7852_v20, 128  ;;  %v2298_v38 = vld [vmem:[%s6606_s13 + $0x670] sm:$0xff] }
 0x50f   : > { %5902 = vlog2.f32 %v3986_v39  ;;  %5526 = vmatpush3.bf16.xpose.msra.mxu1 %v2568_v19  ;;  %5507 = vmatprep.subr.bf16.mxu0 %v6238_v0  ;;  %v3866_v19 = vmax.f32 %v3842_v46, 0.0  ;;  %v7876_v8 = vsel %vm536_vm10, %v7852_v20, 127  ;;  %v2564_v23 = vpack.c.bf16 %v2269_v25, %v2268_v18  ;;  %v2311_v18 = vld [vmem:[%s6606_s13 + $0x6d8] sm:$0xff] }
 0x510   : > { %5527 = vmatprep.subr.bf16.mxu1 %v6238_v0  ;;  %vm539_vm9 = vcmp.gt.s32.totalorder %v7124_v37, %v7854_v28  ;;  %vm4079_vm13 = vcmp.ge.s32.totalorder %v6653_v33, %v7876_v8 }
 0x511   : > { %v540_v59 = vsel %vm539_vm9, %v7124_v37, %v7854_v28  ;;  %vm541_vm9 = vcmp.gt.s32.totalorder %v7393_v22, %v7169_v36 }
 0x512   : > { %v7871_v4 = vsel %vm536_vm10, %v540_v59, 128 }
 0x513   : > { %v7880_v10 = vsub.s32 %v7871_v4, %v7876_v8  ;;  %vm4082_vm14 = vcmp.lt.s32.totalorder %v6653_v33, %v7871_v4 }
 0x514   : > { %vm4085_vm15 = vmand %vm4079_vm13, %vm4082_vm14  ;;  %vm4192_vm13 = vcmp.eq.s32.totalorder %v6653_v33, 2 }
 0x515   : > { %vm4091_vm5 = vcmp.gt.s32.totalorder %v7880_v10, 1 }
 0x516   : > { %5508 = vmatpush3.bf16.xpose.msra.mxu0 %v2559_v16  ;;  %v2271_v16 = vld [vmem:[%s6606_s13 + $0x598] sm:$0xff] }
 0x517   : > { %5528 = vmatpush3.bf16.xpose.msra.mxu1 %v2567_v54  ;;  %5509 = vmatprep.subr.bf16.mxu0 %v6238_v0  ;;  %v2565_v9 = vpack.c.bf16 %v2271_v16, %v2270_v51 }
 0x518   : > { %5529 = vmatprep.subr.bf16.mxu1 %v6238_v0 }
 0x51b   : > { %v5901_v34 = vpop.eup %5900 }
 0x51c   : > { %v5903_v35 = vpop.eup %5902  ;;  %v4012_v26 = vmul.f32 0.6931472, %v5901_v34  ;;  %v2314_v34 = vld [vmem:[%s6606_s13 + $0x6f0] sm:$0xff] }
 0x51d   : > { %v4014_v53 = vmul.f32 0.6931472, %v5903_v35 }
 0x51e   : > { %v4057_v39 = vadd.f32 %v4012_v26, %v3865_v52  ;;  %5510 = vmatpush3.bf16.xpose.msra.mxu0 %v2558_v24  ;;  %v2299_v24 = vld [vmem:[%s6606_s13 + $0x678] sm:$0xff] }
 0x51f   : > { %v4058_v31 = vadd.f32 %v4014_v53, %v3866_v19  ;;  %5530 = vmatpush3.bf16.xpose.msra.mxu1 %v2566_v41  ;;  %5511 = vmatprep.subr.bf16.mxu0 %v6238_v0  ;;  %v2315_v41 = vld [vmem:[%s6606_s13 + $0x6f8] sm:$0xff]  ;;  %v2579_v35 = vpack.c.bf16 %v2299_v24, %v2298_v38  ;;  %v2293_v38 = vld [vmem:[%s6606_s13 + $0x648] sm:$0xff]  ;;  %v2308_v24 = vld [vmem:[%s6606_s13 + $0x6c0] sm:$0xff] }
 0x520   : > { %v4126_v14 = vrot.slane %v4057_v39, 6  ;;  %5531 = vmatprep.subr.bf16.mxu1 %v6238_v0  ;;  %v2587_v52 = vpack.c.bf16 %v2315_v41, %v2314_v34  ;;  %v2296_v39 = vld [vmem:[%s6606_s13 + $0x660] sm:$0xff]  ;;  %v2309_v34 = vld [vmem:[%s6606_s13 + $0x6c8] sm:$0xff] }
 0x521   : > { %v4128_v54 = vrot.slane %v4058_v31, 5  ;;  %v2297_v31 = vld [vmem:[%s6606_s13 + $0x668] sm:$0xff] }
 0x522   : > { %v4127_v61 = vsel %vm3677_vm2, %v4126_v14, %v7785_v3  ;;  %v2252_v3 = vld [vmem:[%s6606_s13 + $0x500] sm:$0xff]  ;;  %v2313_v14 = vld [vmem:[%s6606_s13 + $0x6e8] sm:$0xff] }
 0x523   : > { %v7883_v11 = vsel %vm3680_vm3, %v4128_v54, %v4127_v61  ;;  %v2556_v46 = vpack.c.bf16 %v2253_v17, %v2252_v3  ;;  %v2578_v54 = vpack.c.bf16 %v2297_v31, %v2296_v39  ;;  %v2586_v61 = vpack.c.bf16 %v2313_v14, %v2312_v49  ;;  %v2295_v3 = vld [vmem:[%s6606_s13 + $0x658] sm:$0xff]  ;;  %v2310_v17 = vld [vmem:[%s6606_s13 + $0x6d0] sm:$0xff]  ;;  %v2288_v14 = vld [vmem:[%s6606_s13 + $0x620] sm:$0xff] }
 0x524   : > { %v2306_v39 = vld [vmem:[%s6606_s13 + $0x6b0] sm:$0xff]  ;;  %v2307_v31 = vld [vmem:[%s6606_s13 + $0x6b8] sm:$0xff] }
 0x525   : > { %v2583_v49 = vpack.c.bf16 %v2307_v31, %v2306_v39 }
 0x526   : > { %5512 = vmatpush3.bf16.xpose.msra.mxu0 %v2557_v15 }
 0x527   : > { %5532 = vmatpush3.bf16.xpose.msra.mxu1 %v2565_v9  ;;  %5513 = vmatprep.subr.bf16.mxu0 %v6238_v0  ;;  %v2294_v9 = vld [vmem:[%s6606_s13 + $0x650] sm:$0xff] }
 0x528   : > { %5533 = vmatprep.subr.bf16.mxu1 %v6238_v0  ;;  %v2577_v25 = vpack.c.bf16 %v2295_v3, %v2294_v9  ;;  %v2286_v9 = vld [vmem:[%s6606_s13 + $0x610] sm:$0xff]  ;;  %v2287_v3 = vld [vmem:[%s6606_s13 + $0x618] sm:$0xff] }
 0x52e   : > { %5514 = vmatpush3.bf16.xpose.msra.mxu0 %v2556_v46  ;;  %v2585_v46 = vpack.c.bf16 %v2311_v18, %v2310_v17  ;;  %v2302_v17 = vld [vmem:[%s6606_s13 + $0x690] sm:$0xff]  ;;  %v2303_v18 = vld [vmem:[%s6606_s13 + $0x698] sm:$0xff] }
 0x52f   : > { %5534 = vmatpush3.bf16.xpose.msra.mxu1 %v2564_v23  ;;  %5539 = vmatprep.subr.bf16.mxu0 %v6238_v0  ;;  %v2292_v23 = vld [vmem:[%s6606_s13 + $0x640] sm:$0xff] }
 0x530   : > { %5559 = vmatprep.subr.bf16.mxu1 %v6238_v0  ;;  %v2576_v41 = vpack.c.bf16 %v2293_v38, %v2292_v23  ;;  %v2581_v23 = vpack.c.bf16 %v2303_v18, %v2302_v17 }
 0x535   : > { %v7897_v26 = vpop.f32.mrf.mxu0  ;;  %5516 = vmatmul.mubr.bf16.vlgmr.msra.gmra.mxu0 %v6687_v60 }
 0x536   : > { %v7900_v19 = vpop.f32.mrf.mxu1  ;;  %5536 = vmatmul.mubr.bf16.vlgmr.msra.gmra.mxu1 %v6687_v60  ;;  %5540 = vmatpush3.bf16.xpose.msra.mxu0 %v2579_v35  ;;  %v2584_v35 = vpack.c.bf16 %v2309_v34, %v2308_v24  ;;  %v2284_v34 = vld [vmem:[%s6606_s13 + $0x600] sm:$0xff] }
 0x537   : > { %5560 = vmatpush3.bf16.xpose.msra.mxu1 %v2587_v52  ;;  %v5397_v53 = vpop.f32.mrf.mxu0  ;;  %5541 = vmatprep.subr.bf16.mxu0 %v6238_v0  ;;  %v2290_v52 = vld [vmem:[%s6606_s13 + $0x630] sm:$0xff]  ;;  %v3769_v20 = vrot.slane %v7900_v19, 3 }
 0x538   : > { %v5417_v44 = vpop.f32.mrf.mxu1  ;;  %5561 = vmatprep.subr.bf16.mxu1 %v6238_v0  ;;  %5555 = vmatprep.mubr.msk.bf16.mxu0 %vm6239_vm0, %v6238_v0  ;;  %v2291_v53 = vld [vmem:[%s6606_s13 + $0x638] sm:$0xff] }
 0x539   : > { %v2865_v51 = vpop.f32.mrf.mxu0  ;;  %5575 = vmatprep.mubr.msk.bf16.mxu1 %vm6239_vm0, %v6238_v0  ;;  %v2575_v44 = vpack.c.bf16 %v2291_v53, %v2290_v52 }
 0x53a   : > { %v2905_v16 = vpop.f32.mrf.mxu1  ;;  %v2289_v51 = vld [vmem:[%s6606_s13 + $0x628] sm:$0xff] }
 0x53b   : > { %v5398_v59 = vpop.f32.mrf.mxu0  ;;  %v2304_v16 = vld [vmem:[%s6606_s13 + $0x6a0] sm:$0xff] }
 0x53c   : > { %v5418_v15 = vpop.f32.mrf.mxu1  ;;  %v2574_v59 = vpack.c.bf16 %v2289_v51, %v2288_v14  ;;  %v2330_v14 = vld [vmem:[%s6606_s13 + $0x770] sm:$0xff]  ;;  %v2331_v51 = vld [vmem:[%s6606_s13 + $0x778] sm:$0xff] }
 0x53d   : > { %v7939_v15 = vsub.f32 %v7060_v6, %v7897_v26 }
 0x53e   : > { %5542 = vmatpush3.bf16.xpose.msra.mxu0 %v2578_v54  ;;  %v2305_v54 = vld [vmem:[%s6606_s13 + $0x6a8] sm:$0xff] }
 0x53f   : > { %5562 = vmatpush3.bf16.xpose.msra.mxu1 %v2586_v61  ;;  %5543 = vmatprep.subr.bf16.mxu0 %v6238_v0  ;;  %v2582_v61 = vpack.c.bf16 %v2305_v54, %v2304_v16  ;;  %v3891_v6 = vand.u32 2147483647, %v7939_v15  ;;  %v3767_v16 = vrot.slane %v7897_v26, 4  ;;  %v2346_v54 = vld [vmem:[%s6606_s13 + $0x7f0] sm:$0xff] }
 0x540   : > { %5563 = vmatprep.subr.bf16.mxu1 %v6238_v0 }
 0x541   : > { %v3915_v24 = vsub.f32 0.0, %v3891_v6 }
 0x543   : > { %v3943_v53 = vmul.f32 1.442695, %v3915_v24 }
 0x545   : > { %5904 = vpow2.f32 %v3943_v53 }
 0x546   : > { %5544 = vmatpush3.bf16.xpose.msra.mxu0 %v2577_v25  ;;  %v7949_v25 = vsub.f32 %v7063_v7, %v7900_v19  ;;  %v2301_v7 = vld [vmem:[%s6606_s13 + $0x688] sm:$0xff] }
 0x547   : > { %5564 = vmatpush3.bf16.xpose.msra.mxu1 %v2585_v46  ;;  %5545 = vmatprep.subr.bf16.mxu0 %v6238_v0  ;;  %v2573_v46 = vpack.c.bf16 %v2287_v3, %v2286_v9  ;;  %v2595_v9 = vpack.c.bf16 %v2331_v51, %v2330_v14 }
 0x548   : > { %5565 = vmatprep.subr.bf16.mxu1 %v6238_v0  ;;  %v3892_v38 = vand.u32 2147483647, %v7949_v25 }
 0x54a   : > { %v3916_v52 = vsub.f32 0.0, %v3892_v38  ;;  %v2329_v38 = vld [vmem:[%s6606_s13 + $0x768] sm:$0xff] }
 0x54e   : > { %5546 = vmatpush3.bf16.xpose.msra.mxu0 %v2576_v41  ;;  %v2285_v41 = vld [vmem:[%s6606_s13 + $0x608] sm:$0xff] }
 0x54f   : > { %5566 = vmatpush3.bf16.xpose.msra.mxu1 %v2584_v35  ;;  %5547 = vmatprep.subr.bf16.mxu0 %v6238_v0  ;;  %v2300_v35 = vld [vmem:[%s6606_s13 + $0x680] sm:$0xff]  ;;  %v2572_v39 = vpack.c.bf16 %v2285_v41, %v2284_v34 }
 0x550   : > { %5567 = vmatprep.subr.bf16.mxu1 %v6238_v0  ;;  %v2580_v31 = vpack.c.bf16 %v2301_v7, %v2300_v35  ;;  %v2344_v35 = vld [vmem:[%s6606_s13 + $0x7e0] sm:$0xff] }
 0x552   : > { %v5905_v14 = vpop.eup %5904 }
 0x556   : > { %5548 = vmatpush3.bf16.xpose.msra.mxu0 %v2575_v44  ;;  %v3945_v44 = vmul.f32 1.442695, %v3916_v52 }
 0x557   : > { %5568 = vmatpush3.bf16.xpose.msra.mxu1 %v2583_v49  ;;  %5549 = vmatprep.subr.bf16.mxu0 %v6238_v0  ;;  %v551_v49 = vsel %vm536_vm10, %v7854_v28, %v7124_v37  ;;  %v3768_v28 = vsel %vm3683_vm4, %v3767_v16, %v7819_v58 }
 0x558   : > { %5569 = vmatprep.subr.bf16.mxu1 %v6238_v0  ;;  %5906 = vpow2.f32 %v3945_v44  ;;  %vm3637_vm11 = vcmp.gt.s32.totalorder %v551_v49, 0 }
 0x55e   : > { %5550 = vmatpush3.bf16.xpose.msra.mxu0 %v2574_v59  ;;  %v2347_v59 = vld [vmem:[%s6606_s13 + $0x7f8] sm:$0xff] }
 0x55f   : > { %5570 = vmatpush3.bf16.xpose.msra.mxu1 %v2582_v61  ;;  %5551 = vmatprep.subr.bf16.mxu0 %v6238_v0  ;;  %v4375_v61 = vadd.s32 4294967295, %v551_v49  ;;  %v2603_v37 = vpack.c.bf16 %v2347_v59, %v2346_v54 }
 0x560   : > { %5571 = vmatprep.subr.bf16.mxu1 %v6238_v0 }
 0x561   : > { %v3643_v3 = vsel %vm3637_vm11, %v4375_v61, 127  ;;  %vm4184_vm11 = vcmp.eq.s32.totalorder %v6653_v33, 0 }
 0x562   : > { %vm3734_vm12 = vcmp.eq.s32.totalorder %v6653_v33, %v3643_v3  ;;  %v2327_v3 = vld [vmem:[%s6606_s13 + $0x758] sm:$0xff] }
 0x566   : > { %5552 = vmatpush3.bf16.xpose.msra.mxu0 %v2573_v46 }
 0x567   : > { %5572 = vmatpush3.bf16.xpose.msra.mxu1 %v2581_v23  ;;  %5553 = vmatprep.subr.bf16.mxu0 %v6238_v0  ;;  %v3770_v23 = vsel %vm3686_vm6, %v3769_v20, %v3768_v28  ;;  %v5907_v20 = vpop.eup %5906  ;;  %v2326_v28 = vld [vmem:[%s6606_s13 + $0x750] sm:$0xff] }
 0x568   : > { %5573 = vmatprep.subr.bf16.mxu1 %v6238_v0 }
 0x56e   : > { %5554 = vmatpush3.bf16.xpose.msra.mxu0 %v2572_v39 }
 0x56f   : > { %5574 = vmatpush3.bf16.xpose.msra.mxu1 %v2580_v31  ;;  %5579 = vmatprep.subr.bf16.mxu0 %v6238_v0 }
 0x570   : > { %5599 = vmatprep.subr.bf16.mxu1 %v6238_v0 }
 0x575   : > { %v2942_v17 = vpop.f32.mrf.mxu0  ;;  %5556 = vmatmul.mubr.bf16.vlgmr.msra.gmra.mxu0 %v6687_v60 }
 0x576   : > { %v3771_v26 = vrot.slane %v2942_v17, 2  ;;  %v7975_v18 = vsub.f32 %v7143_v63, %v2942_v17  ;;  %v2982_v6 = vpop.f32.mrf.mxu1  ;;  %5576 = vmatmul.mubr.bf16.vlgmr.msra.gmra.mxu1 %v6687_v60  ;;  %5580 = vmatpush3.bf16.xpose.msra.mxu0 %v2595_v9  ;;  %v2328_v63 = vld [vmem:[%s6606_s13 + $0x760] sm:$0xff]  ;;  %v2342_v17 = vld [vmem:[%s6606_s13 + $0x7d0] sm:$0xff] }
 0x577   : > { %v3773_v19 = vrot.slane %v2982_v6, 1  ;;  %v7979_v46 = vsub.f32 %v7149_v42, %v2982_v6  ;;  %5600 = vmatpush3.bf16.xpose.msra.mxu1 %v2603_v37  ;;  %v5437_v58 = vpop.f32.mrf.mxu0  ;;  %5581 = vmatprep.subr.bf16.mxu0 %v6238_v0  ;;  %v2345_v42 = vld [vmem:[%s6606_s13 + $0x7e8] sm:$0xff]  ;;  %v2594_v49 = vpack.c.bf16 %v2329_v38, %v2328_v63  ;;  %v3987_v37 = vadd.f32 1.0, %v5905_v14  ;;  %v2340_v38 = vld [vmem:[%s6606_s13 + $0x7c0] sm:$0xff]  ;;  %v2339_v14 = vld [vmem:[%s6606_s13 + $0x7b8] sm:$0xff] }
 0x578   : > { %v3893_v24 = vand.u32 2147483647, %v7975_v18  ;;  %v5457_v34 = vpop.f32.mrf.mxu1  ;;  %v3772_v41 = vsel %vm3689_vm7, %v3771_v26, %v3770_v23  ;;  %5601 = vmatprep.subr.bf16.mxu1 %v6238_v0  ;;  %5595 = vmatprep.mubr.msk.bf16.mxu0 %vm6239_vm0, %v6238_v0  ;;  %v2602_v54 = vpack.c.bf16 %v2345_v42, %v2344_v35  ;;  %v2343_v26 = vld [vmem:[%s6606_s13 + $0x7d8] sm:$0xff]  ;;  %v3988_v6 = vadd.f32 1.0, %v5907_v20  ;;  %v2324_v23 = vld [vmem:[%s6606_s13 + $0x740] sm:$0xff]  ;;  %v2325_v63 = vld [vmem:[%s6606_s13 + $0x748] sm:$0xff] }
 0x579   : > { %v3894_v7 = vand.u32 2147483647, %v7979_v46  ;;  %v2945_v52 = vpop.f32.mrf.mxu0  ;;  %v3774_v53 = vsel %vm3692_vm8, %v3773_v19, %v3772_v41  ;;  %5615 = vmatprep.mubr.msk.bf16.mxu1 %vm6239_vm0, %v6238_v0  ;;  %v2593_v19 = vpack.c.bf16 %v2327_v3, %v2326_v28  ;;  %v2601_v58 = vpack.c.bf16 %v2343_v26, %v2342_v17  ;;  %v2321_v3 = vld [vmem:[%s6606_s13 + $0x728] sm:$0xff]  ;;  %v2336_v26 = vld [vmem:[%s6606_s13 + $0x7a0] sm:$0xff] }
 0x57a   : > { %v3917_v39 = vsub.f32 0.0, %v3893_v24  ;;  %v2985_v31 = vpop.f32.mrf.mxu1  ;;  %v3806_v44 = vsel %vm3734_vm12, %v3774_v53, 0.0  ;;  %v2341_v24 = vld [vmem:[%s6606_s13 + $0x7c8] sm:$0xff]  ;;  %v2592_v34 = vpack.c.bf16 %v2325_v63, %v2324_v23  ;;  %v3845_v17 = vsub.f32 0.0, %v7975_v18 }
 0x57b   : > { %v3918_v51 = vsub.f32 0.0, %v3894_v7  ;;  %v5438_v16 = vpop.f32.mrf.mxu0  ;;  %3809 = vadd.xlane.f32.xlu0 %v3806_v44  ;;  %v2600_v35 = vpack.c.bf16 %v2341_v24, %v2340_v38  ;;  %v2323_v31 = vld [vmem:[%s6606_s13 + $0x738] sm:$0xff]  ;;  %v3843_v44 = vsub.f32 0.0, %v7939_v15  ;;  %v2320_v15 = vld [vmem:[%s6606_s13 + $0x720] sm:$0xff]  ;;  %vm4188_vm12 = vcmp.eq.s32.totalorder %v6653_v33, 1 }
 0x57c   : > { %v3947_v59 = vmul.f32 1.442695, %v3917_v39  ;;  %v5458_v61 = vpop.f32.mrf.mxu1  ;;  %v2322_v39 = vld [vmem:[%s6606_s13 + $0x730] sm:$0xff]  ;;  %v2590_v23 = vpack.c.bf16 %v2321_v3, %v2320_v15  ;;  %v2363_v3 = vld [vmem:[%s6606_s13 + $0x878] sm:$0xff] }
 0x57d   : > { %v3949_v9 = vmul.f32 1.442695, %v3918_v51  ;;  %v2362_v15 = vld [vmem:[%s6606_s13 + $0x870] sm:$0xff] }
 0x57e   : > { %5908 = vpow2.f32 %v3947_v59  ;;  %5582 = vmatpush3.bf16.xpose.msra.mxu0 %v2594_v49  ;;  %v2338_v49 = vld [vmem:[%s6606_s13 + $0x7b0] sm:$0xff]  ;;  %v3844_v59 = vsub.f32 0.0, %v7949_v25  ;;  %v3846_v25 = vsub.f32 0.0, %v7979_v46 }
 0x57f   : > { %5910 = vpow2.f32 %v3949_v9  ;;  %5602 = vmatpush3.bf16.xpose.msra.mxu1 %v2602_v54  ;;  %5583 = vmatprep.subr.bf16.mxu0 %v6238_v0  ;;  %v2591_v54 = vpack.c.bf16 %v2323_v31, %v2322_v39  ;;  %v2599_v61 = vpack.c.bf16 %v2339_v14, %v2338_v49  ;;  %v3867_v9 = vmax.f32 %v3843_v44, 0.0  ;;  %v2319_v39 = vld [vmem:[%s6606_s13 + $0x718] sm:$0xff]  ;;  %v2334_v44 = vld [vmem:[%s6606_s13 + $0x790] sm:$0xff] }
 0x580   : > { %5603 = vmatprep.subr.bf16.mxu1 %v6238_v0  ;;  %5912 = vlog2.f32 %v3987_v37  ;;  %v3868_v28 = vmax.f32 %v3844_v59, 0.0  ;;  %v3870_v18 = vmax.f32 %v3846_v25, 0.0  ;;  %v2335_v49 = vld [vmem:[%s6606_s13 + $0x798] sm:$0xff]  ;;  %v2316_v59 = vld [vmem:[%s6606_s13 + $0x700] sm:$0xff] }
 0x581   : > { %5914 = vlog2.f32 %v3988_v6  ;;  %v2337_v6 = vld [vmem:[%s6606_s13 + $0x7a8] sm:$0xff] }
 0x582   : > { %v2598_v38 = vpack.c.bf16 %v2337_v6, %v2336_v26  ;;  %v2379_v26 = vld [vmem:[%s6606_s13 + $0x8f8] sm:$0xff]  ;;  %v2611_v6 = vpack.c.bf16 %v2363_v3, %v2362_v15 }
 0x586   : > { %5584 = vmatpush3.bf16.xpose.msra.mxu0 %v2593_v19 }
 0x587   : > { %5604 = vmatpush3.bf16.xpose.msra.mxu1 %v2601_v58  ;;  %5585 = vmatprep.subr.bf16.mxu0 %v6238_v0 }
 0x588   : > { %5605 = vmatprep.subr.bf16.mxu1 %v6238_v0 }
 0x58b   : > { %v5909_v41 = vpop.eup %5908 }
 0x58c   : > { %v5911_v42 = vpop.eup %5910  ;;  %v3989_v7 = vadd.f32 1.0, %v5909_v41 }
 0x58d   : > { %v3990_v52 = vadd.f32 1.0, %v5911_v42  ;;  %v5913_v53 = vpop.eup %5912 }
 0x58e   : > { %5916 = vlog2.f32 %v3989_v7  ;;  %5586 = vmatpush3.bf16.xpose.msra.mxu0 %v2592_v34  ;;  %v5915_v51 = vpop.eup %5914  ;;  %v4016_v16 = vmul.f32 0.6931472, %v5913_v53  ;;  %v3869_v34 = vmax.f32 %v3845_v17, 0.0  ;;  %v2318_v53 = vld [vmem:[%s6606_s13 + $0x710] sm:$0xff] }
 0x58f   : > { %5918 = vlog2.f32 %v3990_v52  ;;  %5606 = vmatpush3.bf16.xpose.msra.mxu1 %v2600_v35  ;;  %5587 = vmatprep.subr.bf16.mxu0 %v6238_v0  ;;  %v4018_v20 = vmul.f32 0.6931472, %v5915_v51  ;;  %v2589_v14 = vpack.c.bf16 %v2319_v39, %v2318_v53  ;;  %v2378_v17 = vld [vmem:[%s6606_s13 + $0x8f0] sm:$0xff] }
 0x590   : > { %5607 = vmatprep.subr.bf16.mxu1 %v6238_v0  ;;  %v4059_v37 = vadd.f32 %v4016_v16, %v3867_v9  ;;  %v2597_v16 = vpack.c.bf16 %v2335_v49, %v2334_v44  ;;  %v2332_v9 = vld [vmem:[%s6606_s13 + $0x780] sm:$0xff] }
 0x591   : > { %v4060_v19 = vadd.f32 %v4018_v20, %v3868_v28  ;;  %v2333_v20 = vld [vmem:[%s6606_s13 + $0x788] sm:$0xff] }
 0x592   : > { %v4130_v58 = vrot.slane %v4059_v37, 4  ;;  %v2596_v28 = vpack.c.bf16 %v2333_v20, %v2332_v9  ;;  %v2356_v9 = vld [vmem:[%s6606_s13 + $0x840] sm:$0xff]  ;;  %v2357_v20 = vld [vmem:[%s6606_s13 + $0x848] sm:$0xff] }
 0x593   : > { %v4132_v35 = vrot.slane %v4060_v19, 3  ;;  %v2619_v19 = vpack.c.bf16 %v2379_v26, %v2378_v17  ;;  %v2608_v15 = vpack.c.bf16 %v2357_v20, %v2356_v9  ;;  %v2348_v20 = vld [vmem:[%s6606_s13 + $0x800] sm:$0xff] }
 0x594   : > { %v4131_v46 = vsel %vm3683_vm4, %v4130_v58, %v7883_v11 }
 0x595   : > { %v4133_v4 = vsel %vm3686_vm6, %v4132_v35, %v4131_v46 }
 0x596   : > { %5588 = vmatpush3.bf16.xpose.msra.mxu0 %v2591_v54 }
 0x597   : > { %5608 = vmatpush3.bf16.xpose.msra.mxu1 %v2599_v61  ;;  %5589 = vmatprep.subr.bf16.mxu0 %v6238_v0  ;;  %v2317_v61 = vld [vmem:[%s6606_s13 + $0x708] sm:$0xff] }
 0x598   : > { %5609 = vmatprep.subr.bf16.mxu1 %v6238_v0  ;;  %v2588_v37 = vpack.c.bf16 %v2317_v61, %v2316_v59 }
 0x59b   : > { %v5917_v63 = vpop.eup %5916 }
 0x59c   : > { %v5919_v24 = vpop.eup %5918  ;;  %v4020_v41 = vmul.f32 0.6931472, %v5917_v63 }
 0x59d   : > { %v4022_v42 = vmul.f32 0.6931472, %v5919_v24 }
 0x59e   : > { %v4061_v7 = vadd.f32 %v4020_v41, %v3869_v34  ;;  %5590 = vmatpush3.bf16.xpose.msra.mxu0 %v2590_v23  ;;  %v2360_v34 = vld [vmem:[%s6606_s13 + $0x860] sm:$0xff]  ;;  %v2361_v41 = vld [vmem:[%s6606_s13 + $0x868] sm:$0xff] }
 0x59f   : > { %v4062_v52 = vadd.f32 %v4022_v42, %v3870_v18  ;;  %5610 = vmatpush3.bf16.xpose.msra.mxu1 %v2598_v38  ;;  %5591 = vmatprep.subr.bf16.mxu0 %v6238_v0  ;;  %v2377_v42 = vld [vmem:[%s6606_s13 + $0x8e8] sm:$0xff]  ;;  %v2610_v39 = vpack.c.bf16 %v2361_v41, %v2360_v34 }
 0x5a0   : > { %v4134_v31 = vrot.slane %v4061_v7, 2  ;;  %5611 = vmatprep.subr.bf16.mxu1 %v6238_v0 }
 0x5a1   : > { %v4136_v8 = vrot.slane %v4062_v52, 1 }
 0x5a2   : > { %v4135_v11 = vsel %vm3689_vm7, %v4134_v31, %v4133_v4 }
 0x5a3   : > { %v4137_v51 = vsel %vm3692_vm8, %v4136_v8, %v4135_v11 }
 0x5a4   : > { %v4169_v54 = vsel %vm4085_vm15, %v4137_v51, 0.0  ;;  %v2359_v51 = vld [vmem:[%s6606_s13 + $0x858] sm:$0xff] }
 0x5a5   : > { %4172 = vadd.xlane.f32.xlu0 %v4169_v54  ;;  %v2375_v54 = vld [vmem:[%s6606_s13 + $0x8d8] sm:$0xff] }
 0x5a6   : > { %5592 = vmatpush3.bf16.xpose.msra.mxu0 %v2589_v14  ;;  %v2358_v14 = vld [vmem:[%s6606_s13 + $0x850] sm:$0xff] }
 0x5a7   : > { %5612 = vmatpush3.bf16.xpose.msra.mxu1 %v2597_v16  ;;  %5593 = vmatprep.subr.bf16.mxu0 %v6238_v0  ;;  %v2374_v16 = vld [vmem:[%s6606_s13 + $0x8d0] sm:$0xff]  ;;  %v2609_v59 = vpack.c.bf16 %v2359_v51, %v2358_v14  ;;  %v2351_v14 = vld [vmem:[%s6606_s13 + $0x818] sm:$0xff] }
 0x5a8   : > { %5613 = vmatprep.subr.bf16.mxu1 %v6238_v0  ;;  %v2617_v61 = vpack.c.bf16 %v2375_v54, %v2374_v16  ;;  %v2367_v51 = vld [vmem:[%s6606_s13 + $0x898] sm:$0xff] }
 0x5ae   : > { %5594 = vmatpush3.bf16.xpose.msra.mxu0 %v2588_v37  ;;  %v2372_v37 = vld [vmem:[%s6606_s13 + $0x8c0] sm:$0xff] }
 0x5af   : > { %5614 = vmatpush3.bf16.xpose.msra.mxu1 %v2596_v28  ;;  %5619 = vmatprep.subr.bf16.mxu0 %v6238_v0  ;;  %v2373_v28 = vld [vmem:[%s6606_s13 + $0x8c8] sm:$0xff] }
 0x5b0   : > { %5639 = vmatprep.subr.bf16.mxu1 %v6238_v0  ;;  %v2616_v17 = vpack.c.bf16 %v2373_v28, %v2372_v37  ;;  %v2349_v37 = vld [vmem:[%s6606_s13 + $0x808] sm:$0xff]  ;;  %v2364_v28 = vld [vmem:[%s6606_s13 + $0x880] sm:$0xff] }
 0x5b5   : > { %v3022_v25 = vpop.f32.mrf.mxu0  ;;  %5596 = vmatmul.mubr.bf16.vlgmr.msra.gmra.mxu0 %v6687_v60 }
 0x5b6   : > { %v8056_v58 = vsub.f32 %v7213_v43, %v3022_v25  ;;  %v3062_v23 = vpop.f32.mrf.mxu1  ;;  %5616 = vmatmul.mubr.bf16.vlgmr.msra.gmra.mxu1 %v6687_v60  ;;  %5620 = vmatpush3.bf16.xpose.msra.mxu0 %v2611_v6  ;;  %v2376_v43 = vld [vmem:[%s6606_s13 + $0x8e0] sm:$0xff] }
 0x5b7   : > { %v3775_v63 = vrot.slane %v3062_v23, 7  ;;  %v8060_v38 = vsub.f32 %v7216_v48, %v3062_v23  ;;  %5640 = vmatpush3.bf16.xpose.msra.mxu1 %v2619_v19  ;;  %v5477_v24 = vpop.f32.mrf.mxu0  ;;  %5621 = vmatprep.subr.bf16.mxu0 %v6238_v0  ;;  %v2618_v49 = vpack.c.bf16 %v2377_v42, %v2376_v43  ;;  %v2355_v23 = vld [vmem:[%s6606_s13 + $0x838] sm:$0xff]  ;;  %v2368_v43 = vld [vmem:[%s6606_s13 + $0x8a0] sm:$0xff]  ;;  %v2369_v42 = vld [vmem:[%s6606_s13 + $0x8a8] sm:$0xff] }
 0x5b8   : > { %v3895_v35 = vand.u32 2147483647, %v8056_v58  ;;  %v5497_v18 = vpop.f32.mrf.mxu1  ;;  %5641 = vmatprep.subr.bf16.mxu1 %v6238_v0  ;;  %5635 = vmatprep.mubr.msk.bf16.mxu0 %vm6239_vm0, %v6238_v0  ;;  %v2371_v24 = vld [vmem:[%s6606_s13 + $0x8b8] sm:$0xff] }
 0x5b9   : > { %v8072_v7 = vsel %vm3674_vm1, %v3775_v63, %v3022_v25  ;;  %v3896_v48 = vand.u32 2147483647, %v8060_v38  ;;  %v3025_v46 = vpop.f32.mrf.mxu0  ;;  %5655 = vmatprep.mubr.msk.bf16.mxu1 %vm6239_vm0, %v6238_v0  ;;  %v2354_v25 = vld [vmem:[%s6606_s13 + $0x830] sm:$0xff]  ;;  %v2353_v18 = vld [vmem:[%s6606_s13 + $0x828] sm:$0xff] }
 0x5ba   : > { %v3919_v52 = vsub.f32 0.0, %v3895_v35  ;;  %v3065_v53 = vpop.f32.mrf.mxu1  ;;  %v2370_v63 = vld [vmem:[%s6606_s13 + $0x8b0] sm:$0xff]  ;;  %v2607_v34 = vpack.c.bf16 %v2355_v23, %v2354_v25  ;;  %v2352_v35 = vld [vmem:[%s6606_s13 + $0x820] sm:$0xff]  ;;  %v2411_v25 = vld [vmem:[%s6606_s13 + $0x9f8] sm:$0xff] }
 0x5bb   : > { %v3920_v31 = vsub.f32 0.0, %v3896_v48  ;;  %v5478_v44 = vpop.f32.mrf.mxu0  ;;  %v2615_v41 = vpack.c.bf16 %v2371_v24, %v2370_v63  ;;  %v3848_v48 = vsub.f32 0.0, %v8060_v38  ;;  %v2606_v46 = vpack.c.bf16 %v2353_v18, %v2352_v35  ;;  %v2350_v38 = vld [vmem:[%s6606_s13 + $0x810] sm:$0xff] }
 0x5bc   : > { %v3951_v4 = vmul.f32 1.442695, %v3919_v52  ;;  %v5498_v8 = vpop.f32.mrf.mxu1  ;;  %v3847_v53 = vsub.f32 0.0, %v8056_v58  ;;  %v2366_v58 = vld [vmem:[%s6606_s13 + $0x890] sm:$0xff] }
 0x5bd   : > { %v3953_v11 = vmul.f32 1.442695, %v3920_v31  ;;  %v2613_v9 = vpack.c.bf16 %v2367_v51, %v2366_v58 }
 0x5be   : > { %5920 = vpow2.f32 %v3951_v4  ;;  %5622 = vmatpush3.bf16.xpose.msra.mxu0 %v2610_v39  ;;  %v2614_v39 = vpack.c.bf16 %v2369_v42, %v2368_v43  ;;  %v3871_v8 = vmax.f32 %v3847_v53, 0.0 }
 0x5bf   : > { %5922 = vpow2.f32 %v3953_v11  ;;  %5642 = vmatpush3.bf16.xpose.msra.mxu1 %v2618_v49  ;;  %5623 = vmatprep.subr.bf16.mxu0 %v6238_v0  ;;  %v3872_v49 = vmax.f32 %v3848_v48, 0.0  ;;  %v2392_v48 = vld [vmem:[%s6606_s13 + $0x960] sm:$0xff] }
 0x5c0   : > { %5643 = vmatprep.subr.bf16.mxu1 %v6238_v0 }
 0x5c6   : > { %5624 = vmatpush3.bf16.xpose.msra.mxu0 %v2609_v59  ;;  %v2605_v59 = vpack.c.bf16 %v2351_v14, %v2350_v38 }
 0x5c7   : > { %5644 = vmatpush3.bf16.xpose.msra.mxu1 %v2617_v61  ;;  %5625 = vmatprep.subr.bf16.mxu0 %v6238_v0 }
 0x5c8   : > { %5645 = vmatprep.subr.bf16.mxu1 %v6238_v0 }
 0x5cb   : > { %v5921_v3 = vpop.eup %5920 }
 0x5cc   : > { %v5923_v26 = vpop.eup %5922  ;;  %v3991_v6 = vadd.f32 1.0, %v5921_v3  ;;  %v2604_v3 = vpack.c.bf16 %v2349_v37, %v2348_v20  ;;  %v2407_v20 = vld [vmem:[%s6606_s13 + $0x9d8] sm:$0xff] }
 0x5cd   : > { %v3992_v19 = vadd.f32 1.0, %v5923_v26  ;;  %v2394_v26 = vld [vmem:[%s6606_s13 + $0x970] sm:$0xff] }
 0x5ce   : > { %5924 = vlog2.f32 %v3991_v6  ;;  %5626 = vmatpush3.bf16.xpose.msra.mxu0 %v2608_v15  ;;  %v2365_v15 = vld [vmem:[%s6606_s13 + $0x888] sm:$0xff]  ;;  %v2395_v6 = vld [vmem:[%s6606_s13 + $0x978] sm:$0xff] }
 0x5cf   : > { %5926 = vlog2.f32 %v3992_v19  ;;  %5646 = vmatpush3.bf16.xpose.msra.mxu1 %v2616_v17  ;;  %5627 = vmatprep.subr.bf16.mxu0 %v6238_v0  ;;  %v2612_v17 = vpack.c.bf16 %v2365_v15, %v2364_v28  ;;  %v2410_v19 = vld [vmem:[%s6606_s13 + $0x9f0] sm:$0xff]  ;;  %v2627_v23 = vpack.c.bf16 %v2395_v6, %v2394_v26  ;;  %v2388_v15 = vld [vmem:[%s6606_s13 + $0x940] sm:$0xff]  ;;  %v2405_v26 = vld [vmem:[%s6606_s13 + $0x9c8] sm:$0xff] }
 0x5d0   : > { %5647 = vmatprep.subr.bf16.mxu1 %v6238_v0  ;;  %v2635_v63 = vpack.c.bf16 %v2411_v25, %v2410_v19 }
 0x5d6   : > { %5628 = vmatpush3.bf16.xpose.msra.mxu0 %v2607_v34 }
 0x5d7   : > { %5648 = vmatpush3.bf16.xpose.msra.mxu1 %v2615_v41  ;;  %5629 = vmatprep.subr.bf16.mxu0 %v6238_v0 }
 0x5d8   : > { %5649 = vmatprep.subr.bf16.mxu1 %v6238_v0 }
 0x5db   : > { %v5925_v52 = vpop.eup %5924 }
 0x5dc   : > { %v5927_v31 = vpop.eup %5926  ;;  %v4024_v44 = vmul.f32 0.6931472, %v5925_v52 }
 0x5dd   : > { %v4026_v4 = vmul.f32 0.6931472, %v5927_v31  ;;  %v2409_v31 = vld [vmem:[%s6606_s13 + $0x9e8] sm:$0xff] }
 0x5de   : > { %5630 = vmatpush3.bf16.xpose.msra.mxu0 %v2606_v46  ;;  %v4063_v16 = vadd.f32 %v4024_v44, %v3871_v8  ;;  %v2393_v46 = vld [vmem:[%s6606_s13 + $0x968] sm:$0xff] }
 0x5df   : > { %v4064_v11 = vadd.f32 %v4026_v4, %v3872_v49  ;;  %5650 = vmatpush3.bf16.xpose.msra.mxu1 %v2614_v39  ;;  %5631 = vmatprep.subr.bf16.mxu0 %v6238_v0  ;;  %v2408_v39 = vld [vmem:[%s6606_s13 + $0x9e0] sm:$0xff]  ;;  %v2626_v8 = vpack.c.bf16 %v2393_v46, %v2392_v48  ;;  %v8167_v48 = vpop.xlane.xlu0 %482 }
 0x5e0   : > { %5651 = vmatprep.subr.bf16.mxu1 %v6238_v0  ;;  %v2634_v14 = vpack.c.bf16 %v2409_v31, %v2408_v39  ;;  %v2385_v39 = vld [vmem:[%s6606_s13 + $0x928] sm:$0xff] }
 0x5e1   : > { %v4138_v54 = vrot.slane %v4064_v11, 7 }
 0x5e3   : > { %v8110_v61 = vsel %vm3674_vm1, %v4138_v54, %v4063_v16  ;;  %v2390_v54 = vld [vmem:[%s6606_s13 + $0x950] sm:$0xff]  ;;  %v517_v31 = vpop.xlane.xlu0 %516 }
 0x5e6   : > { %5632 = vmatpush3.bf16.xpose.msra.mxu0 %v2605_v59  ;;  %v2391_v59 = vld [vmem:[%s6606_s13 + $0x958] sm:$0xff] }
 0x5e7   : > { %5652 = vmatpush3.bf16.xpose.msra.mxu1 %v2613_v9  ;;  %5633 = vmatprep.subr.bf16.mxu0 %v6238_v0  ;;  %v2406_v9 = vld [vmem:[%s6606_s13 + $0x9d0] sm:$0xff]  ;;  %v2625_v37 = vpack.c.bf16 %v2391_v59, %v2390_v54 }
 0x5e8   : > { %5653 = vmatprep.subr.bf16.mxu1 %v6238_v0  ;;  %v2633_v28 = vpack.c.bf16 %v2407_v20, %v2406_v9 }
 0x5ee   : > { %5634 = vmatpush3.bf16.xpose.msra.mxu0 %v2604_v3  ;;  %v2389_v3 = vld [vmem:[%s6606_s13 + $0x948] sm:$0xff] }
 0x5ef   : > { %5654 = vmatpush3.bf16.xpose.msra.mxu1 %v2612_v17  ;;  %5659 = vmatprep.subr.bf16.mxu0 %v6238_v0  ;;  %v2404_v17 = vld [vmem:[%s6606_s13 + $0x9c0] sm:$0xff]  ;;  %v2624_v6 = vpack.c.bf16 %v2389_v3, %v2388_v15  ;;  %v2398_v3 = vld [vmem:[%s6606_s13 + $0x990] sm:$0xff] }
 0x5f0   : > { %5679 = vmatprep.subr.bf16.mxu1 %v6238_v0  ;;  %v2632_v25 = vpack.c.bf16 %v2405_v26, %v2404_v17  ;;  %v2399_v17 = vld [vmem:[%s6606_s13 + $0x998] sm:$0xff] }
 0x5f5   : > { %v3102_v24 = vpop.f32.mrf.mxu0  ;;  %5636 = vmatmul.mubr.bf16.vlgmr.msra.gmra.mxu0 %v6687_v60 }
 0x5f6   : > { %v3777_v34 = vrot.slane %v3102_v24, 6  ;;  %v8126_v41 = vsub.f32 %v7278_v27, %v3102_v24  ;;  %v3142_v35 = vpop.f32.mrf.mxu1  ;;  %5656 = vmatmul.mubr.bf16.vlgmr.msra.gmra.mxu1 %v6687_v60  ;;  %5660 = vmatpush3.bf16.xpose.msra.mxu0 %v2627_v23 }
 0x5f7   : > { %v3779_v18 = vrot.slane %v3142_v35, 5  ;;  %v8130_v43 = vsub.f32 %v7281_v56, %v3142_v35  ;;  %5680 = vmatpush3.bf16.xpose.msra.mxu1 %v2635_v63  ;;  %v5517_v42 = vpop.f32.mrf.mxu0  ;;  %5661 = vmatprep.subr.bf16.mxu0 %v6238_v0  ;;  %v2387_v35 = vld [vmem:[%s6606_s13 + $0x938] sm:$0xff] }
 0x5f8   : > { %v3778_v52 = vsel %vm3677_vm2, %v3777_v34, %v8072_v7  ;;  %v3897_v27 = vand.u32 2147483647, %v8126_v41  ;;  %v5537_v53 = vpop.f32.mrf.mxu1  ;;  %5681 = vmatprep.subr.bf16.mxu1 %v6238_v0  ;;  %5675 = vmatprep.mubr.msk.bf16.mxu0 %vm6239_vm0, %v6238_v0  ;;  %v2386_v34 = vld [vmem:[%s6606_s13 + $0x930] sm:$0xff]  ;;  %v2403_v42 = vld [vmem:[%s6606_s13 + $0x9b8] sm:$0xff] }
 0x5f9   : > { %v8144_v56 = vsel %vm3680_vm3, %v3779_v18, %v3778_v52  ;;  %v3898_v44 = vand.u32 2147483647, %v8130_v43  ;;  %v3105_v49 = vpop.f32.mrf.mxu0  ;;  %5695 = vmatprep.mubr.msk.bf16.mxu1 %vm6239_vm0, %v6238_v0  ;;  %v2402_v18 = vld [vmem:[%s6606_s13 + $0x9b0] sm:$0xff]  ;;  %v2623_v46 = vpack.c.bf16 %v2387_v35, %v2386_v34  ;;  %v2384_v53 = vld [vmem:[%s6606_s13 + $0x920] sm:$0xff] }
 0x5fa   : > { %v3921_v7 = vsub.f32 0.0, %v3897_v27  ;;  %v3145_v4 = vpop.f32.mrf.mxu1  ;;  %v2631_v52 = vpack.c.bf16 %v2403_v42, %v2402_v18  ;;  %v519_v27 = vcvt.f32.s32 %v7107_v5  ;;  %v3849_v49 = vsub.f32 0.0, %v8126_v41  ;;  %v8211_v18 = vpop.xlane.xlu0 %3730  ;;  %v2381_v42 = vld [vmem:[%s6606_s13 + $0x908] sm:$0xff] }
 0x5fb   : > { %v3922_v11 = vsub.f32 0.0, %v3898_v44  ;;  %v5518_v38 = vpop.f32.mrf.mxu0  ;;  %v4092_v44 = vsel %vm4091_vm5, %v7880_v10, 1  ;;  %v2401_v4 = vld [vmem:[%s6606_s13 + $0x9a8] sm:$0xff]  ;;  %v3850_v5 = vsub.f32 0.0, %v8130_v43  ;;  %v2382_v43 = vld [vmem:[%s6606_s13 + $0x910] sm:$0xff] }
 0x5fc   : > { %v3955_v58 = vmul.f32 1.442695, %v3921_v7  ;;  %v5538_v51 = vpop.f32.mrf.mxu1  ;;  %v2400_v7 = vld [vmem:[%s6606_s13 + $0x9a0] sm:$0xff]  ;;  %v2622_v38 = vpack.c.bf16 %v2385_v39, %v2384_v53  ;;  %v3873_v54 = vmax.f32 %v3849_v49, 0.0  ;;  %v8219_v39 = vpop.xlane.xlu1 %530 }
 0x5fd   : > { %v3957_v16 = vmul.f32 1.442695, %v3922_v11  ;;  %v518_v11 = vcvt.f32.s32 %v517_v31  ;;  %v2630_v51 = vpack.c.bf16 %v2401_v4, %v2400_v7  ;;  %v3874_v59 = vmax.f32 %v3850_v5, 0.0  ;;  %v2426_v4 = vld [vmem:[%s6606_s13 + $0xa70] sm:$0xff]  ;;  %v2443_v5 = vld [vmem:[%s6606_s13 + $0xaf8] sm:$0xff] }
 0x5fe   : > { %5928 = vpow2.f32 %v3955_v58  ;;  %5662 = vmatpush3.bf16.xpose.msra.mxu0 %v2626_v8  ;;  %v520_v8 = vshll.u32 %v519_v27, 16  ;;  %v4097_v58 = vcvt.s32.f32 %v4092_v44 }
 0x5ff   : > { %5930 = vpow2.f32 %v3957_v16  ;;  %5682 = vmatpush3.bf16.xpose.msra.mxu1 %v2634_v14  ;;  %5663 = vmatprep.subr.bf16.mxu0 %v6238_v0 }
 0x600   : > { %5683 = vmatprep.subr.bf16.mxu1 %v6238_v0  ;;  %v8180_v41 = vadd.s32 %v520_v8, %v518_v11  ;;  %v2427_v8 = vld [vmem:[%s6606_s13 + $0xa78] sm:$0xff]  ;;  %v2442_v11 = vld [vmem:[%s6606_s13 + $0xaf0] sm:$0xff] }
 0x602   : > { %vm537_vm10 = vcmp.lt.s32.totalorder %v8180_v41, 128 }
 0x604   : > { %v3810_v27 = vpop.xlane.xlu0 %3809 }
 0x606   : > { %5664 = vmatpush3.bf16.xpose.msra.mxu0 %v2625_v37 }
 0x607   : > { %5684 = vmatpush3.bf16.xpose.msra.mxu1 %v2633_v28  ;;  %5665 = vmatprep.subr.bf16.mxu0 %v6238_v0  ;;  %v2383_v28 = vld [vmem:[%s6606_s13 + $0x918] sm:$0xff] }
 0x608   : > { %5685 = vmatprep.subr.bf16.mxu1 %v6238_v0 }
 0x60b   : > { %v5929_v19 = vpop.eup %5928 }
 0x60c   : > { %v5931_v23 = vpop.eup %5930  ;;  %v3993_v63 = vadd.f32 1.0, %v5929_v19 }
 0x60d   : > { %v3994_v24 = vadd.f32 1.0, %v5931_v23 }
 0x60e   : > { %5932 = vlog2.f32 %v3993_v63  ;;  %5666 = vmatpush3.bf16.xpose.msra.mxu0 %v2624_v6  ;;  %v542_v6 = vsel %vm541_vm9, %v7393_v22, %v7169_v36  ;;  %v8202_v63 = vsel %vm537_vm10, %v8180_v41, 127 }
 0x60f   : > { %5934 = vlog2.f32 %v3994_v24  ;;  %5686 = vmatpush3.bf16.xpose.msra.mxu1 %v2632_v25  ;;  %5667 = vmatprep.subr.bf16.mxu0 %v6238_v0  ;;  %v2621_v25 = vpack.c.bf16 %v2383_v28, %v2382_v43  ;;  %v8197_v23 = vsel %vm537_vm10, %v542_v6, 128  ;;  %v2629_v24 = vpack.c.bf16 %v2399_v17, %v2398_v3  ;;  %v2424_v43 = vld [vmem:[%s6606_s13 + $0xa60] sm:$0xff]  ;;  %v2425_v28 = vld [vmem:[%s6606_s13 + $0xa68] sm:$0xff] }
 0x610   : > { %5687 = vmatprep.subr.bf16.mxu1 %v6238_v0  ;;  %5936 = vrcp.f32 %v4097_v58  ;;  %v8206_v34 = vsub.s32 %v8197_v23, %v8202_v63  ;;  %v2440_v17 = vld [vmem:[%s6606_s13 + $0xae0] sm:$0xff]  ;;  %vm4080_vm9 = vcmp.ge.s32.totalorder %v6653_v33, %v8202_v63 }
 0x616   : > { %5668 = vmatpush3.bf16.xpose.msra.mxu0 %v2623_v46  ;;  %v2396_v46 = vld [vmem:[%s6606_s13 + $0x980] sm:$0xff] }
 0x617   : > { %5688 = vmatpush3.bf16.xpose.msra.mxu1 %v2631_v52  ;;  %5669 = vmatprep.subr.bf16.mxu0 %v6238_v0  ;;  %v2397_v52 = vld [vmem:[%s6606_s13 + $0x988] sm:$0xff] }
 0x618   : > { %5689 = vmatprep.subr.bf16.mxu1 %v6238_v0  ;;  %v2628_v31 = vpack.c.bf16 %v2397_v52, %v2396_v46  ;;  %v2422_v46 = vld [vmem:[%s6606_s13 + $0xa50] sm:$0xff]  ;;  %v2423_v52 = vld [vmem:[%s6606_s13 + $0xa58] sm:$0xff] }
 0x61b   : > { %v5933_v14 = vpop.eup %5932 }
 0x61c   : > { %v5935_v16 = vpop.eup %5934  ;;  %v4028_v10 = vmul.f32 0.6931472, %v5933_v14 }
 0x61d   : > { %v4030_v9 = vmul.f32 0.6931472, %v5935_v16  ;;  %v5937_v44 = vpop.eup %5936  ;;  %v2651_v16 = vpack.c.bf16 %v2443_v5, %v2442_v11 }
 0x61e   : > { %v4065_v20 = vadd.f32 %v4028_v10, %v3873_v54  ;;  %5670 = vmatpush3.bf16.xpose.msra.mxu0 %v2622_v38  ;;  %v3729_v38 = vpop.xlane.xlu1 %3728 }
 0x61f   : > { %v4066_v37 = vadd.f32 %v4030_v9, %v3874_v59  ;;  %5690 = vmatpush3.bf16.xpose.msra.mxu1 %v2630_v51  ;;  %5671 = vmatprep.subr.bf16.mxu0 %v6238_v0  ;;  %v2643_v51 = vpack.c.bf16 %v2427_v8, %v2426_v4  ;;  %v2436_v4 = vld [vmem:[%s6606_s13 + $0xac0] sm:$0xff]  ;;  %v2437_v8 = vld [vmem:[%s6606_s13 + $0xac8] sm:$0xff] }
 0x620   : > { %v4140_v15 = vrot.slane %v4065_v20, 6  ;;  %5691 = vmatprep.subr.bf16.mxu1 %v6238_v0  ;;  %v2648_v5 = vpack.c.bf16 %v2437_v8, %v2436_v4  ;;  %v2458_v4 = vld [vmem:[%s6606_s13 + $0xb70] sm:$0xff]  ;;  %v2459_v8 = vld [vmem:[%s6606_s13 + $0xb78] sm:$0xff] }
 0x621   : > { %v4142_v26 = vrot.slane %v4066_v37, 5 }
 0x622   : > { %v4141_v19 = vsel %vm3677_vm2, %v4140_v15, %v8110_v61  ;;  %v2380_v61 = vld [vmem:[%s6606_s13 + $0x900] sm:$0xff] }
 0x623   : > { %v8209_v35 = vsel %vm3680_vm3, %v4142_v26, %v4141_v19  ;;  %v2620_v53 = vpack.c.bf16 %v2381_v42, %v2380_v61  ;;  %v2441_v26 = vld [vmem:[%s6606_s13 + $0xae8] sm:$0xff] }
 0x624   : > { %v2650_v61 = vpack.c.bf16 %v2441_v26, %v2440_v17  ;;  %v2414_v17 = vld [vmem:[%s6606_s13 + $0xa10] sm:$0xff]  ;;  %v2415_v26 = vld [vmem:[%s6606_s13 + $0xa18] sm:$0xff] }
 0x626   : > { %5672 = vmatpush3.bf16.xpose.msra.mxu0 %v2621_v25  ;;  %v2642_v25 = vpack.c.bf16 %v2425_v28, %v2424_v43  ;;  %v2433_v43 = vld [vmem:[%s6606_s13 + $0xaa8] sm:$0xff] }
 0x627   : > { %5692 = vmatpush3.bf16.xpose.msra.mxu1 %v2629_v24  ;;  %5673 = vmatprep.subr.bf16.mxu0 %v6238_v0 }
 0x628   : > { %5693 = vmatprep.subr.bf16.mxu1 %v6238_v0 }
 0x62e   : > { %5674 = vmatpush3.bf16.xpose.msra.mxu0 %v2620_v53  ;;  %v4173_v49 = vpop.xlane.xlu0 %4172  ;;  %v2439_v53 = vld [vmem:[%s6606_s13 + $0xad8] sm:$0xff] }
 0x62f   : > { %5694 = vmatpush3.bf16.xpose.msra.mxu1 %v2628_v31  ;;  %v4179_v7 = vmul.f32 %v5937_v44, %v4173_v49  ;;  %5699 = vmatprep.subr.bf16.mxu0 %v6238_v0  ;;  %v2641_v31 = vpack.c.bf16 %v2423_v52, %v2422_v46  ;;  %v2420_v49 = vld [vmem:[%s6606_s13 + $0xa40] sm:$0xff]  ;;  %v2413_v52 = vld [vmem:[%s6606_s13 + $0xa08] sm:$0xff] }
 0x630   : > { %5719 = vmatprep.subr.bf16.mxu1 %v6238_v0  ;;  %v2412_v46 = vld [vmem:[%s6606_s13 + $0xa00] sm:$0xff] }
 0x631   : > { %v4185_v14 = vsel %vm4184_vm11, %v4179_v7, 0.0  ;;  %v2421_v7 = vld [vmem:[%s6606_s13 + $0xa48] sm:$0xff] }
 0x632   : > { %v4189_v58 = vsel %vm4188_vm12, %v3729_v38, %v4185_v14  ;;  %v2640_v11 = vpack.c.bf16 %v2421_v7, %v2420_v49  ;;  %v2418_v38 = vld [vmem:[%s6606_s13 + $0xa30] sm:$0xff]  ;;  %v2419_v14 = vld [vmem:[%s6606_s13 + $0xa38] sm:$0xff]  ;;  %v552_v7 = vsel %vm537_vm10, %v7169_v36, %v7393_v22  ;;  %v533_v36 = vcvt.f32.s32 %v7001_v55 }
 0x633   : > { %v4193_v54 = vsel %vm4192_vm13, %v3810_v27, %v4189_v58  ;;  %v2438_v27 = vld [vmem:[%s6606_s13 + $0xad0] sm:$0xff]  ;;  %vm3638_vm14 = vcmp.gt.s32.totalorder %v552_v7, 0  ;;  %vm4083_vm10 = vcmp.lt.s32.totalorder %v6653_v33, %v8197_v23 }
 0x634   : > { %4196 = vst [vmem:[%s8237_s7] sm:$0xff] %v4193_v54  ;;  %v2649_v44 = vpack.c.bf16 %v2439_v53, %v2438_v27  ;;  %v2434_v58 = vld [vmem:[%s6606_s13 + $0xab0] sm:$0xff] }
 0x635   : > { %v8240_v10 = vpop.f32.mrf.mxu0  ;;  %5676 = vmatmul.mubr.bf16.vlgmr.msra.gmra.mxu0 %v6687_v60 }
 0x636   : > { %v3781_v59 = vrot.slane %v8240_v10, 4  ;;  %v8244_v9 = vpop.f32.mrf.mxu1  ;;  %5696 = vmatmul.mubr.bf16.vlgmr.msra.gmra.mxu1 %v6687_v60  ;;  %5700 = vmatpush3.bf16.xpose.msra.mxu0 %v2643_v51  ;;  %v2435_v51 = vld [vmem:[%s6606_s13 + $0xab8] sm:$0xff] }
 0x637   : > { %v3783_v20 = vrot.slane %v8244_v9, 3  ;;  %5720 = vmatpush3.bf16.xpose.msra.mxu1 %v2651_v16  ;;  %v5557_v37 = vpop.f32.mrf.mxu0  ;;  %5701 = vmatprep.subr.bf16.mxu0 %v6238_v0  ;;  %v2639_v16 = vpack.c.bf16 %v2419_v14, %v2418_v38  ;;  %v2647_v54 = vpack.c.bf16 %v2435_v51, %v2434_v58  ;;  %v4376_v38 = vadd.s32 4294967295, %v552_v7 }
 0x638   : > { %v3782_v15 = vsel %vm3683_vm4, %v3781_v59, %v8144_v56  ;;  %v5577_v3 = vpop.f32.mrf.mxu1  ;;  %5721 = vmatprep.subr.bf16.mxu1 %v6238_v0  ;;  %5715 = vmatprep.mubr.msk.bf16.mxu0 %vm6239_vm0, %v6238_v0  ;;  %v2416_v59 = vld [vmem:[%s6606_s13 + $0xa20] sm:$0xff]  ;;  %v2659_v14 = vpack.c.bf16 %v2459_v8, %v2458_v4 }
 0x639   : > { %v3185_v6 = vpop.f32.mrf.mxu0  ;;  %5735 = vmatprep.mubr.msk.bf16.mxu1 %vm6239_vm0, %v6238_v0  ;;  %v8261_v19 = vsel %vm3686_vm6, %v3783_v20, %v3782_v15  ;;  %v2417_v20 = vld [vmem:[%s6606_s13 + $0xa28] sm:$0xff]  ;;  %v2432_v37 = vld [vmem:[%s6606_s13 + $0xaa0] sm:$0xff]  ;;  %v8289_v3 = vsub.f32 %v7338_v57, %v8240_v10  ;;  %v2637_v10 = vpack.c.bf16 %v2415_v26, %v2414_v17  ;;  %v3644_v51 = vsel %vm3638_vm14, %v4376_v38, 127  ;;  %v2471_v38 = vld [vmem:[%s6606_s13 + $0xbd8] sm:$0xff] }
 0x63a   : > { %v3225_v56 = vpop.f32.mrf.mxu1  ;;  %v2638_v28 = vpack.c.bf16 %v2417_v20, %v2416_v59  ;;  %v2646_v15 = vpack.c.bf16 %v2433_v43, %v2432_v37  ;;  %v2430_v6 = vld [vmem:[%s6606_s13 + $0xa90] sm:$0xff]  ;;  %v485_v59 = vcvt.f32.s32 %v7102_v1  ;;  %v2456_v43 = vld [vmem:[%s6606_s13 + $0xb60] sm:$0xff]  ;;  %vm3735_vm15 = vcmp.eq.s32.totalorder %v6653_v33, %v3644_v51  ;;  %v2473_v26 = vld [vmem:[%s6606_s13 + $0xbe8] sm:$0xff] }
 0x63b   : > { %v5558_v24 = vpop.f32.mrf.mxu0  ;;  %v2431_v56 = vld [vmem:[%s6606_s13 + $0xa98] sm:$0xff]  ;;  %v3899_v57 = vand.u32 2147483647, %v8289_v3  ;;  %v2472_v17 = vld [vmem:[%s6606_s13 + $0xbe0] sm:$0xff]  ;;  %vm4086_vm14 = vmand %vm4080_vm9, %vm4083_vm10 }
 0x63c   : > { %v5578_v42 = vpop.f32.mrf.mxu1  ;;  %v2645_v24 = vpack.c.bf16 %v2431_v56, %v2430_v6 }
 0x63d   : > { %v3923_v42 = vsub.f32 0.0, %v3899_v57 }
 0x63e   : > { %5702 = vmatpush3.bf16.xpose.msra.mxu0 %v2642_v25  ;;  %v8299_v25 = vsub.f32 %v7341_v32, %v8244_v9  ;;  %v2428_v32 = vld [vmem:[%s6606_s13 + $0xa80] sm:$0xff]  ;;  %v2429_v9 = vld [vmem:[%s6606_s13 + $0xa88] sm:$0xff] }
 0x63f   : > { %5722 = vmatpush3.bf16.xpose.msra.mxu1 %v2650_v61  ;;  %5703 = vmatprep.subr.bf16.mxu0 %v6238_v0  ;;  %v3959_v53 = vmul.f32 1.442695, %v3923_v42 }
 0x640   : > { %5723 = vmatprep.subr.bf16.mxu1 %v6238_v0  ;;  %v3900_v61 = vand.u32 2147483647, %v8299_v25 }
 0x641   : > { %5938 = vpow2.f32 %v3959_v53  ;;  %v2666_v53 = vpack.c.bf16 %v2473_v26, %v2472_v17 }
 0x642   : > { %v3924_v27 = vsub.f32 0.0, %v3900_v61 }
 0x644   : > { %v3961_v49 = vmul.f32 1.442695, %v3924_v27 }
 0x646   : > { %5704 = vmatpush3.bf16.xpose.msra.mxu0 %v2641_v31  ;;  %v2636_v31 = vpack.c.bf16 %v2413_v52, %v2412_v46  ;;  %5940 = vpow2.f32 %v3961_v49  ;;  %v486_v52 = vshll.u32 %v485_v59, 16  ;;  %v2452_v59 = vld [vmem:[%s6606_s13 + $0xb40] sm:$0xff] }
 0x647   : > { %5724 = vmatpush3.bf16.xpose.msra.mxu1 %v2649_v44  ;;  %5705 = vmatprep.subr.bf16.mxu0 %v6238_v0  ;;  %v2644_v44 = vpack.c.bf16 %v2429_v9, %v2428_v32  ;;  %v484_v32 = vcvt.f32.s32 %v8167_v48  ;;  %v2454_v48 = vld [vmem:[%s6606_s13 + $0xb50] sm:$0xff] }
 0x648   : > { %5725 = vmatprep.subr.bf16.mxu1 %v6238_v0 }
 0x649   : > { %v8353_v8 = vadd.s32 %v486_v52, %v484_v32  ;;  %v3852_v52 = vsub.f32 0.0, %v8299_v25 }
 0x64b   : > { %vm543_vm5 = vcmp.gt.s32.totalorder %v7646_v40, %v8353_v8 }
 0x64e   : > { %5706 = vmatpush3.bf16.xpose.msra.mxu0 %v2640_v11  ;;  %v2474_v11 = vld [vmem:[%s6606_s13 + $0xbf0] sm:$0xff]  ;;  %v5939_v46 = vpop.eup %5938 }
 0x64f   : > { %5726 = vmatpush3.bf16.xpose.msra.mxu1 %v2648_v5  ;;  %5707 = vmatprep.subr.bf16.mxu0 %v6238_v0  ;;  %v2475_v5 = vld [vmem:[%s6606_s13 + $0xbf8] sm:$0xff]  ;;  %v3995_v4 = vadd.f32 1.0, %v5939_v46 }
 0x650   : > { %5727 = vmatprep.subr.bf16.mxu1 %v6238_v0  ;;  %v2667_v58 = vpack.c.bf16 %v2475_v5, %v2474_v11  ;;  %v2455_v11 = vld [vmem:[%s6606_s13 + $0xb58] sm:$0xff]  ;;  %v2470_v5 = vld [vmem:[%s6606_s13 + $0xbd0] sm:$0xff] }
 0x651   : > { %v2665_v51 = vpack.c.bf16 %v2471_v38, %v2470_v5 }
 0x653   : > { %v5941_v49 = vpop.eup %5940 }
 0x656   : > { %5708 = vmatpush3.bf16.xpose.msra.mxu0 %v2639_v16 }
 0x657   : > { %5728 = vmatpush3.bf16.xpose.msra.mxu1 %v2647_v54  ;;  %5709 = vmatprep.subr.bf16.mxu0 %v6238_v0 }
 0x658   : > { %5729 = vmatprep.subr.bf16.mxu1 %v6238_v0 }
 0x65e   : > { %5710 = vmatpush3.bf16.xpose.msra.mxu0 %v2638_v28  ;;  %v2457_v28 = vld [vmem:[%s6606_s13 + $0xb68] sm:$0xff] }
 0x65f   : > { %5730 = vmatpush3.bf16.xpose.msra.mxu1 %v2646_v15  ;;  %5711 = vmatprep.subr.bf16.mxu0 %v6238_v0  ;;  %v2658_v42 = vpack.c.bf16 %v2457_v28, %v2456_v43  ;;  %v2469_v43 = vld [vmem:[%s6606_s13 + $0xbc8] sm:$0xff] }
 0x660   : > { %5731 = vmatprep.subr.bf16.mxu1 %v6238_v0 }
 0x666   : > { %5712 = vmatpush3.bf16.xpose.msra.mxu0 %v2637_v10  ;;  %v532_v10 = vcvt.f32.s32 %v8219_v39 }
 0x667   : > { %5732 = vmatpush3.bf16.xpose.msra.mxu1 %v2645_v24  ;;  %5713 = vmatprep.subr.bf16.mxu0 %v6238_v0 }
 0x668   : > { %5733 = vmatprep.subr.bf16.mxu1 %v6238_v0 }
 0x66e   : > { %5714 = vmatpush3.bf16.xpose.msra.mxu0 %v2636_v31 }
 0x66f   : > { %5734 = vmatpush3.bf16.xpose.msra.mxu1 %v2644_v44  ;;  %5739 = vmatprep.subr.bf16.mxu0 %v6238_v0 }
 0x670   : > { %5759 = vmatprep.subr.bf16.mxu1 %v6238_v0 }
 0x675   : > { %v3262_v22 = vpop.f32.mrf.mxu0  ;;  %5716 = vmatmul.mubr.bf16.vlgmr.msra.gmra.mxu0 %v6687_v60 }
 0x676   : > { %v3785_v41 = vrot.slane %v3262_v22, 2  ;;  %v8322_v16 = vsub.f32 %v7411_v45, %v3262_v22  ;;  %v3302_v54 = vpop.f32.mrf.mxu1  ;;  %5736 = vmatmul.mubr.bf16.vlgmr.msra.gmra.mxu1 %v6687_v60  ;;  %5740 = vmatpush3.bf16.xpose.msra.mxu0 %v2659_v14  ;;  %v3996_v14 = vadd.f32 1.0, %v5941_v49  ;;  %v2464_v49 = vld [vmem:[%s6606_s13 + $0xba0] sm:$0xff] }
 0x677   : > { %v3787_v20 = vrot.slane %v3302_v54, 1  ;;  %v8327_v37 = vsub.f32 %v7415_v50, %v3302_v54  ;;  %5760 = vmatpush3.bf16.xpose.msra.mxu1 %v2667_v58  ;;  %v5597_v55 = vpop.f32.mrf.mxu0  ;;  %5741 = vmatprep.subr.bf16.mxu0 %v6238_v0  ;;  %v534_v50 = vshll.u32 %v533_v36, 16  ;;  %v2657_v58 = vpack.c.bf16 %v2455_v11, %v2454_v48 }
 0x678   : > { %v3901_v45 = vand.u32 2147483647, %v8322_v16  ;;  %v5617_v15 = vpop.f32.mrf.mxu1  ;;  %5761 = vmatprep.subr.bf16.mxu1 %v6238_v0  ;;  %v3786_v1 = vsel %vm3689_vm7, %v3785_v41, %v8261_v19  ;;  %5755 = vmatprep.mubr.msk.bf16.mxu0 %vm6239_vm0, %v6238_v0  ;;  %v544_v36 = vsel %vm543_vm5, %v7646_v40, %v8353_v8  ;;  %v2468_v55 = vld [vmem:[%s6606_s13 + $0xbc0] sm:$0xff] }
 0x679   : > { %v3902_v6 = vand.u32 2147483647, %v8327_v37  ;;  %v3265_v56 = vpop.f32.mrf.mxu0  ;;  %v3788_v57 = vsel %vm3692_vm8, %v3787_v20, %v3786_v1  ;;  %5775 = vmatprep.mubr.msk.bf16.mxu1 %vm6239_vm0, %v6238_v0  ;;  %v8351_v7 = vadd.s32 %v534_v50, %v532_v10  ;;  %v2453_v20 = vld [vmem:[%s6606_s13 + $0xb48] sm:$0xff]  ;;  %v2664_v15 = vpack.c.bf16 %v2469_v43, %v2468_v55  ;;  %v2466_v10 = vld [vmem:[%s6606_s13 + $0xbb0] sm:$0xff] }
 0x67a   : > { %v3925_v24 = vsub.f32 0.0, %v3901_v45  ;;  %v3305_v61 = vpop.f32.mrf.mxu1  ;;  %v8348_v19 = vsel %vm3735_vm15, %v3788_v57, 0.0  ;;  %v2656_v28 = vpack.c.bf16 %v2453_v20, %v2452_v59  ;;  %v2451_v56 = vld [vmem:[%s6606_s13 + $0xb38] sm:$0xff]  ;;  %v3851_v57 = vsub.f32 0.0, %v8289_v3  ;;  %v2448_v3 = vld [vmem:[%s6606_s13 + $0xb20] sm:$0xff] }
 0x67b   : > { %v3926_v9 = vsub.f32 0.0, %v3902_v6  ;;  %v5598_v27 = vpop.f32.mrf.mxu0  ;;  %vm538_vm0 = vcmp.lt.s32.totalorder %v8351_v7, 128  ;;  %v2450_v6 = vld [vmem:[%s6606_s13 + $0xb30] sm:$0xff]  ;;  %v3854_v25 = vsub.f32 0.0, %v8327_v37 }
 0x67c   : > { %v3963_v31 = vmul.f32 1.442695, %v3925_v24  ;;  %v5618_v39 = vpop.f32.mrf.mxu1  ;;  %v8368_v22 = vsel %vm538_vm0, %v544_v36, 128  ;;  %v8373_v41 = vsel %vm538_vm0, %v8351_v7, 127  ;;  %v2467_v24 = vld [vmem:[%s6606_s13 + $0xbb8] sm:$0xff]  ;;  %v2655_v46 = vpack.c.bf16 %v2451_v56, %v2450_v6 }
 0x67d   : > { %v3965_v44 = vmul.f32 1.442695, %v3926_v9  ;;  %v8377_v54 = vsub.s32 %v8368_v22, %v8373_v41  ;;  %v2663_v32 = vpack.c.bf16 %v2467_v24, %v2466_v10  ;;  %v3875_v9 = vmax.f32 %v3851_v57, 0.0  ;;  %v2449_v39 = vld [vmem:[%s6606_s13 + $0xb28] sm:$0xff]  ;;  %v2444_v57 = vld [vmem:[%s6606_s13 + $0xb00] sm:$0xff] }
 0x67e   : > { %5942 = vpow2.f32 %v3963_v31  ;;  %5742 = vmatpush3.bf16.xpose.msra.mxu0 %v2658_v42  ;;  %v3876_v31 = vmax.f32 %v3852_v52, 0.0  ;;  %v2654_v5 = vpack.c.bf16 %v2449_v39, %v2448_v3  ;;  %v2445_v10 = vld [vmem:[%s6606_s13 + $0xb08] sm:$0xff]  ;;  %v2460_v24 = vld [vmem:[%s6606_s13 + $0xb80] sm:$0xff]  ;;  %vm4081_vm15 = vcmp.ge.s32.totalorder %v6653_v33, %v8373_v41 }
 0x67f   : > { %5944 = vpow2.f32 %v3965_v44  ;;  %5762 = vmatpush3.bf16.xpose.msra.mxu1 %v2666_v53  ;;  %5743 = vmatprep.subr.bf16.mxu0 %v6238_v0  ;;  %v3853_v44 = vsub.f32 0.0, %v8322_v16  ;;  %v3878_v16 = vmax.f32 %v3854_v25, 0.0 }
 0x680   : > { %5763 = vmatprep.subr.bf16.mxu1 %v6238_v0  ;;  %5946 = vlog2.f32 %v3995_v4  ;;  %v2465_v4 = vld [vmem:[%s6606_s13 + $0xba8] sm:$0xff] }
 0x681   : > { %5948 = vlog2.f32 %v3996_v14  ;;  %v2662_v14 = vpack.c.bf16 %v2465_v4, %v2464_v49 }
 0x686   : > { %5744 = vmatpush3.bf16.xpose.msra.mxu0 %v2657_v58 }
 0x687   : > { %5764 = vmatpush3.bf16.xpose.msra.mxu1 %v2665_v51  ;;  %5745 = vmatprep.subr.bf16.mxu0 %v6238_v0  ;;  %v3877_v51 = vmax.f32 %v3853_v44, 0.0 }
 0x688   : > { %5765 = vmatprep.subr.bf16.mxu1 %v6238_v0 }
 0x68b   : > { %v5943_v45 = vpop.eup %5942 }
 0x68c   : > { %v5945_v17 = vpop.eup %5944  ;;  %v3997_v26 = vadd.f32 1.0, %v5943_v45  ;;  %v2447_v45 = vld [vmem:[%s6606_s13 + $0xb18] sm:$0xff] }
 0x68d   : > { %v3998_v1 = vadd.f32 1.0, %v5945_v17  ;;  %v5947_v50 = vpop.eup %5946  ;;  %v2462_v17 = vld [vmem:[%s6606_s13 + $0xb90] sm:$0xff] }
 0x68e   : > { %5950 = vlog2.f32 %v3997_v26  ;;  %5746 = vmatpush3.bf16.xpose.msra.mxu0 %v2656_v28  ;;  %v5949_v61 = vpop.eup %5948  ;;  %v4032_v42 = vmul.f32 0.6931472, %v5947_v50  ;;  %v2446_v28 = vld [vmem:[%s6606_s13 + $0xb10] sm:$0xff]  ;;  %v2463_v26 = vld [vmem:[%s6606_s13 + $0xb98] sm:$0xff] }
 0x68f   : > { %5952 = vlog2.f32 %v3998_v1  ;;  %5766 = vmatpush3.bf16.xpose.msra.mxu1 %v2664_v15  ;;  %5747 = vmatprep.subr.bf16.mxu0 %v6238_v0  ;;  %v4034_v27 = vmul.f32 0.6931472, %v5949_v61  ;;  %v2653_v1 = vpack.c.bf16 %v2447_v45, %v2446_v28  ;;  %v2661_v6 = vpack.c.bf16 %v2463_v26, %v2462_v17  ;;  %v2461_v61 = vld [vmem:[%s6606_s13 + $0xb88] sm:$0xff] }
 0x690   : > { %5767 = vmatprep.subr.bf16.mxu1 %v6238_v0  ;;  %v4067_v53 = vadd.f32 %v4032_v42, %v3875_v9  ;;  %v2652_v42 = vpack.c.bf16 %v2445_v10, %v2444_v57 }
 0x691   : > { %v4068_v48 = vadd.f32 %v4034_v27, %v3876_v31 }
 0x692   : > { %v4144_v11 = vrot.slane %v4067_v53, 4 }
 0x693   : > { %v4146_v59 = vrot.slane %v4068_v48, 3 }
 0x694   : > { %v4145_v37 = vsel %vm3683_vm4, %v4144_v11, %v8209_v35 }
 0x695   : > { %v4147_v23 = vsel %vm3686_vm6, %v4146_v59, %v4145_v37 }
 0x696   : > { %5748 = vmatpush3.bf16.xpose.msra.mxu0 %v2655_v46  ;;  %v2660_v46 = vpack.c.bf16 %v2461_v61, %v2460_v24 }
 0x697   : > { %5768 = vmatpush3.bf16.xpose.msra.mxu1 %v2663_v32  ;;  %5749 = vmatprep.subr.bf16.mxu0 %v6238_v0 }
 0x698   : > { %5769 = vmatprep.subr.bf16.mxu1 %v6238_v0 }
 0x69b   : > { %v5951_v38 = vpop.eup %5950 }
 0x69c   : > { %v5953_v58 = vpop.eup %5952  ;;  %v4036_v36 = vmul.f32 0.6931472, %v5951_v38 }
 0x69d   : > { %v4038_v20 = vmul.f32 0.6931472, %v5953_v58 }
 0x69e   : > { %v4069_v55 = vadd.f32 %v4036_v36, %v3877_v51  ;;  %5750 = vmatpush3.bf16.xpose.msra.mxu0 %v2654_v5 }
 0x69f   : > { %v4070_v43 = vadd.f32 %v4038_v20, %v3878_v16  ;;  %5770 = vmatpush3.bf16.xpose.msra.mxu1 %v2662_v14  ;;  %5751 = vmatprep.subr.bf16.mxu0 %v6238_v0 }
 0x6a0   : > { %v4148_v15 = vrot.slane %v4069_v55, 2  ;;  %5771 = vmatprep.subr.bf16.mxu1 %v6238_v0 }
 0x6a1   : > { %v4150_v63 = vrot.slane %v4070_v43, 1 }
 0x6a2   : > { %v4149_v35 = vsel %vm3689_vm7, %v4148_v15, %v4147_v23 }
 0x6a3   : > { %v4151_v50 = vsel %vm3692_vm8, %v4150_v63, %v4149_v35 }
 0x6a4   : > { %v4170_v56 = vsel %vm4086_vm14, %v4151_v50, 0.0 }
 0x6a5   : > { %4174 = vadd.xlane.f32.xlu1 %v4170_v56 }
 0x6a6   : > { %5752 = vmatpush3.bf16.xpose.msra.mxu0 %v2653_v1 }
 0x6a7   : > { %5772 = vmatpush3.bf16.xpose.msra.mxu1 %v2661_v6  ;;  %5753 = vmatprep.subr.bf16.mxu0 %v6238_v0 }
 0x6a8   : > { %5773 = vmatprep.subr.bf16.mxu1 %v6238_v0 }
 0x6a9   : > { %3811 = vadd.xlane.f32.xlu1 %v8348_v19 }
 0x6ae   : > { %5754 = vmatpush3.bf16.xpose.msra.mxu0 %v2652_v42 }
 0x6af   : > { %5774 = vmatpush3.bf16.xpose.msra.mxu1 %v2660_v46 }
 0x6b5   : > { %v3342_v52 = vpop.f32.mrf.mxu0  ;;  %5756 = vmatmul.mubr.bf16.vlgmr.msra.gmra.mxu0 %v6687_v60 }
 0x6b6   : > { %v3831_v32 = vsub.f32 %v7475_v47, %v3342_v52  ;;  %v3382_v9 = vpop.f32.mrf.mxu1  ;;  %5776 = vmatmul.mubr.bf16.vlgmr.msra.gmra.mxu1 %v6687_v60 }
 0x6b7   : > { %v3789_v27 = vrot.slane %v3382_v9, 7  ;;  %v3832_v53 = vsub.f32 %v7478_v30, %v3382_v9  ;;  %v5637_v0 = vpop.f32.mrf.mxu0 }
 0x6b8   : > { %v3903_v31 = vand.u32 2147483647, %v3831_v32  ;;  %v5657_v3 = vpop.f32.mrf.mxu1  ;;  %v3855_v36 = vsub.f32 0.0, %v3831_v32 }
 0x6b9   : > { %v3790_v19 = vsel %vm3674_vm1, %v3789_v27, %v3342_v52  ;;  %v3904_v39 = vand.u32 2147483647, %v3832_v53  ;;  %v3345_v44 = vpop.f32.mrf.mxu0  ;;  %v3856_v58 = vsub.f32 0.0, %v3832_v53 }
 0x6ba   : > { %v3927_v49 = vsub.f32 0.0, %v3903_v31  ;;  %v3385_v4 = vpop.f32.mrf.mxu1  ;;  %v3879_v37 = vmax.f32 %v3855_v36, 0.0 }
 0x6bb   : > { %v3928_v48 = vsub.f32 0.0, %v3904_v39  ;;  %v5638_v25 = vpop.f32.mrf.mxu0  ;;  %v3880_v20 = vmax.f32 %v3856_v58, 0.0 }
 0x6bc   : > { %v3967_v11 = vmul.f32 1.442695, %v3927_v49  ;;  %v5658_v5 = vpop.f32.mrf.mxu1 }
 0x6bd   : > { %v3969_v47 = vmul.f32 1.442695, %v3928_v48 }
 0x6be   : > { %5954 = vpow2.f32 %v3967_v11 }
 0x6bf   : > { %5956 = vpow2.f32 %v3969_v47 }
 0x6cb   : > { %v5955_v60 = vpop.eup %5954 }
 0x6cc   : > { %v5957_v38 = vpop.eup %5956  ;;  %v3999_v14 = vadd.f32 1.0, %v5955_v60 }
 0x6cd   : > { %v4000_v30 = vadd.f32 1.0, %v5957_v38 }
 0x6ce   : > { %5958 = vlog2.f32 %v3999_v14 }
 0x6cf   : > { %5960 = vlog2.f32 %v4000_v30 }
 0x6db   : > { %v5959_v51 = vpop.eup %5958 }
 0x6dc   : > { %v5961_v59 = vpop.eup %5960  ;;  %v4040_v16 = vmul.f32 0.6931472, %v5959_v51  ;;  %v8439_v51 = vpop.xlane.xlu1 %3732 }
 0x6dd   : > { %v4042_v55 = vmul.f32 0.6931472, %v5961_v59 }
 0x6de   : > { %v4071_v28 = vadd.f32 %v4040_v16, %v3879_v37 }
 0x6df   : > { %v4072_v43 = vadd.f32 %v4042_v55, %v3880_v20 }
 0x6e1   : > { %v4152_v45 = vrot.slane %v4072_v43, 7 }
 0x6e3   : > { %v4153_v15 = vsel %vm3674_vm1, %v4152_v45, %v4071_v28  ;;  %vm4093_vm1 = vcmp.gt.s32.totalorder %v8206_v34, 1 }
 0x6e4   : > { %v4094_v39 = vsel %vm4093_vm1, %v8206_v34, 1 }
 0x6e5   : > { %v4098_v25 = vcvt.s32.f32 %v4094_v39 }
 0x6f5   : > { %v3422_v17 = vpop.f32.mrf.mxu0 }
 0x6f6   : > { %v3791_v26 = vrot.slane %v3422_v17, 6  ;;  %v3833_v23 = vsub.f32 %v7533_v12, %v3422_v17  ;;  %v3462_v63 = vpop.f32.mrf.mxu1 }
 0x6f7   : > { %v3793_v35 = vrot.slane %v3462_v63, 5  ;;  %v3834_v1 = vsub.f32 %v7536_v13, %v3462_v63  ;;  %v5677_v50 = vpop.f32.mrf.mxu0 }
 0x6f8   : > { %v3792_v6 = vsel %vm3677_vm2, %v3791_v26, %v3790_v19  ;;  %v3905_v56 = vand.u32 2147483647, %v3833_v23  ;;  %v5697_v57 = vpop.f32.mrf.mxu1  ;;  %v3857_v3 = vsub.f32 0.0, %v3833_v23 }
 0x6f9   : > { %v3794_v10 = vsel %vm3680_vm3, %v3793_v35, %v3792_v6  ;;  %v3906_v24 = vand.u32 2147483647, %v3834_v1  ;;  %v3425_v61 = vpop.f32.mrf.mxu0  ;;  %v3858_v19 = vsub.f32 0.0, %v3834_v1 }
 0x6fa   : > { %v3929_v42 = vsub.f32 0.0, %v3905_v56  ;;  %v3465_v46 = vpop.f32.mrf.mxu1  ;;  %v3881_v4 = vmax.f32 %v3857_v3, 0.0 }
 0x6fb   : > { %v3930_v52 = vsub.f32 0.0, %v3906_v24  ;;  %v5678_v32 = vpop.f32.mrf.mxu0  ;;  %v3882_v11 = vmax.f32 %v3858_v19, 0.0 }
 0x6fc   : > { %v3971_v9 = vmul.f32 1.442695, %v3929_v42  ;;  %v5698_v27 = vpop.f32.mrf.mxu1 }
 0x6fd   : > { %v3973_v12 = vmul.f32 1.442695, %v3930_v52 }
 0x6fe   : > { %5962 = vpow2.f32 %v3971_v9 }
 0x6ff   : > { %5964 = vpow2.f32 %v3973_v12 }
 0x70b   : > { %v5963_v53 = vpop.eup %5962 }
 0x70c   : > { %v5965_v13 = vpop.eup %5964  ;;  %v4001_v0 = vadd.f32 1.0, %v5963_v53 }
 0x70d   : > { %v4002_v31 = vadd.f32 1.0, %v5965_v13 }
 0x70e   : > { %5966 = vlog2.f32 %v4001_v0 }
 0x70f   : > { %5968 = vlog2.f32 %v4002_v31 }
 0x710   : > { %5970 = vrcp.f32 %v4098_v25 }
 0x71b   : > { %v5967_v44 = vpop.eup %5966 }
 0x71c   : > { %v5969_v49 = vpop.eup %5968  ;;  %v4044_v48 = vmul.f32 0.6931472, %v5967_v44 }
 0x71d   : > { %v4046_v5 = vmul.f32 0.6931472, %v5969_v49  ;;  %v5971_v34 = vpop.eup %5970 }
 0x71e   : > { %v4073_v47 = vadd.f32 %v4044_v48, %v3881_v4 }
 0x71f   : > { %v4074_v60 = vadd.f32 %v4046_v5, %v3882_v11 }
 0x720   : > { %v4154_v38 = vrot.slane %v4073_v47, 6 }
 0x721   : > { %v4156_v14 = vrot.slane %v4074_v60, 5 }
 0x722   : > { %v4155_v30 = vsel %vm3677_vm2, %v4154_v38, %v4153_v15 }
 0x723   : > { %v8437_v58 = vsel %vm3680_vm3, %v4156_v14, %v4155_v30 }
 0x72e   : > { %v4175_v36 = vpop.xlane.xlu1 %4174 }
 0x72f   : > { %v4181_v59 = vmul.f32 %v5971_v34, %v4175_v36 }
 0x731   : > { %v4186_v16 = vsel %vm4184_vm11, %v4181_v59, 0.0 }
 0x732   : > { %v4190_v20 = vsel %vm4188_vm12, %v8211_v18, %v4186_v16  ;;  %v3812_v55 = vpop.xlane.xlu1 %3811 }
 0x733   : > { %v4194_v37 = vsel %vm4192_vm13, %v3812_v55, %v4190_v20 }
 0x734   : > { %4197 = vst [vmem:[%s8237_s7 + $0x8] sm:$0xff] %v4194_v37 }
 0x735   : > { %v3502_v43 = vpop.f32.mrf.mxu0 }
 0x736   : > { %v3795_v28 = vrot.slane %v3502_v43, 4  ;;  %v3542_v45 = vpop.f32.mrf.mxu1  ;;  %v3835_v18 = vsub.f32 %v7591_v62, %v3502_v43 }
 0x737   : > { %v3797_v15 = vrot.slane %v3542_v45, 3  ;;  %v5717_v17 = vpop.f32.mrf.mxu0  ;;  %v3836_v56 = vsub.f32 %v7594_v2, %v3542_v45 }
 0x738   : > { %v3796_v26 = vsel %vm3683_vm4, %v3795_v28, %v3794_v10  ;;  %v5737_v23 = vpop.f32.mrf.mxu1  ;;  %v3907_v57 = vand.u32 2147483647, %v3835_v18  ;;  %v553_v10 = vsel %vm538_vm0, %v8353_v8, %v7646_v40  ;;  %v3859_v59 = vsub.f32 0.0, %v3835_v18 }
 0x739   : > { %v3505_v63 = vpop.f32.mrf.mxu0  ;;  %v3798_v35 = vsel %vm3686_vm6, %v3797_v15, %v3796_v26  ;;  %v3908_v24 = vand.u32 2147483647, %v3836_v56  ;;  %v4377_v32 = vadd.s32 4294967295, %v553_v10  ;;  %vm3639_vm2 = vcmp.gt.s32.totalorder %v553_v10, 0 }
 0x73a   : > { %v3545_v1 = vpop.f32.mrf.mxu1  ;;  %v3931_v61 = vsub.f32 0.0, %v3907_v57  ;;  %v3860_v55 = vsub.f32 0.0, %v3836_v56  ;;  %v3883_v37 = vmax.f32 %v3859_v59, 0.0  ;;  %vm4084_vm0 = vcmp.lt.s32.totalorder %v6653_v33, %v8368_v22 }
 0x73b   : > { %v5718_v50 = vpop.f32.mrf.mxu0  ;;  %v3932_v42 = vsub.f32 0.0, %v3908_v24  ;;  %v3645_v12 = vsel %vm3639_vm2, %v4377_v32, 127  ;;  %vm4087_vm5 = vmand %vm4081_vm15, %vm4084_vm0 }
 0x73c   : > { %v5738_v6 = vpop.f32.mrf.mxu1  ;;  %v3975_v46 = vmul.f32 1.442695, %v3931_v61  ;;  %vm3736_vm3 = vcmp.eq.s32.totalorder %v6653_v33, %v3645_v12  ;;  %v3884_v45 = vmax.f32 %v3860_v55, 0.0 }
 0x73d   : > { %v3977_v52 = vmul.f32 1.442695, %v3932_v42 }
 0x73e   : > { %5972 = vpow2.f32 %v3975_v46 }
 0x73f   : > { %5974 = vpow2.f32 %v3977_v52 }
 0x775   : > { %v3582_v9 = vpop.f32.mrf.mxu0 }
 0x776   : > { %v3799_v27 = vrot.slane %v3582_v9, 2  ;;  %v3837_v62 = vsub.f32 %v7665_v21, %v3582_v9  ;;  %v3622_v2 = vpop.f32.mrf.mxu1  ;;  %v5973_v21 = vpop.eup %5972 }
 0x777   : > { %v3801_v53 = vrot.slane %v3622_v2, 1  ;;  %v3838_v13 = vsub.f32 %v7669_v29, %v3622_v2  ;;  %v5757_v0 = vpop.f32.mrf.mxu0  ;;  %v5975_v5 = vpop.eup %5974  ;;  %v4003_v47 = vadd.f32 1.0, %v5973_v21 }
 0x778   : > { %v3909_v31 = vand.u32 2147483647, %v3837_v62  ;;  %v5777_v3 = vpop.f32.mrf.mxu1  ;;  %v3800_v19 = vsel %vm3689_vm7, %v3799_v27, %v3798_v35  ;;  %v4004_v60 = vadd.f32 1.0, %v5975_v5  ;;  %v3861_v15 = vsub.f32 0.0, %v3837_v62 }
 0x779   : > { %v3910_v39 = vand.u32 2147483647, %v3838_v13  ;;  %v3585_v7 = vpop.f32.mrf.mxu0  ;;  %v3802_v40 = vsel %vm3692_vm8, %v3801_v53, %v3800_v19  ;;  %v3862_v26 = vsub.f32 0.0, %v3838_v13 }
 0x77a   : > { %v3933_v8 = vsub.f32 0.0, %v3909_v31  ;;  %v3625_v44 = vpop.f32.mrf.mxu1  ;;  %v3808_v49 = vsel %vm3736_vm3, %v3802_v40, 0.0  ;;  %v3885_v1 = vmax.f32 %v3861_v15, 0.0 }
 0x77b   : > { %v3934_v4 = vsub.f32 0.0, %v3910_v39  ;;  %v5758_v48 = vpop.f32.mrf.mxu0  ;;  %v3886_v57 = vmax.f32 %v3862_v26, 0.0 }
 0x77c   : > { %v3979_v25 = vmul.f32 1.442695, %v3933_v8  ;;  %v5778_v11 = vpop.f32.mrf.mxu1 }
 0x77d   : > { %v3981_v29 = vmul.f32 1.442695, %v3934_v4 }
 0x77e   : > { %5976 = vpow2.f32 %v3979_v25 }
 0x77f   : > { %5978 = vpow2.f32 %v3981_v29 }
 0x780   : > { %5980 = vlog2.f32 %v4003_v47 }
 0x781   : > { %5982 = vlog2.f32 %v4004_v60 }
 0x78b   : > { %v5977_v38 = vpop.eup %5976 }
 0x78c   : > { %v5979_v14 = vpop.eup %5978  ;;  %v4005_v30 = vadd.f32 1.0, %v5977_v38 }
 0x78d   : > { %v4006_v34 = vadd.f32 1.0, %v5979_v14  ;;  %v5981_v36 = vpop.eup %5980 }
 0x78e   : > { %5984 = vlog2.f32 %v4005_v30  ;;  %v5983_v16 = vpop.eup %5982  ;;  %v4048_v20 = vmul.f32 0.6931472, %v5981_v36 }
 0x78f   : > { %5986 = vlog2.f32 %v4006_v34  ;;  %v4050_v43 = vmul.f32 0.6931472, %v5983_v16 }
 0x790   : > { %v4075_v28 = vadd.f32 %v4048_v20, %v3883_v37 }
 0x791   : > { %v4076_v17 = vadd.f32 %v4050_v43, %v3884_v45 }
 0x792   : > { %v4158_v23 = vrot.slane %v4075_v28, 4 }
 0x793   : > { %v4160_v6 = vrot.slane %v4076_v17, 3 }
 0x794   : > { %v4159_v18 = vsel %vm3683_vm4, %v4158_v23, %v8437_v58  ;;  %vm4095_vm4 = vcmp.gt.s32.totalorder %v8377_v54, 1 }
 0x795   : > { %v4161_v46 = vsel %vm3686_vm6, %v4160_v6, %v4159_v18  ;;  %v4096_v41 = vsel %vm4095_vm4, %v8377_v54, 1 }
 0x796   : > { %v4099_v58 = vcvt.s32.f32 %v4096_v41 }
 0x798   : > { %5988 = vrcp.f32 %v4099_v58 }
 0x79b   : > { %v5985_v63 = vpop.eup %5984 }
 0x79c   : > { %v5987_v35 = vpop.eup %5986  ;;  %v4052_v50 = vmul.f32 0.6931472, %v5985_v63 }
 0x79d   : > { %v4054_v24 = vmul.f32 0.6931472, %v5987_v35 }
 0x79e   : > { %v4077_v61 = vadd.f32 %v4052_v50, %v3885_v1 }
 0x79f   : > { %v4078_v56 = vadd.f32 %v4054_v24, %v3886_v57 }
 0x7a0   : > { %v4162_v42 = vrot.slane %v4077_v61, 2 }
 0x7a1   : > { %v4164_v52 = vrot.slane %v4078_v56, 1 }
 0x7a2   : > { %v4163_v10 = vsel %vm3689_vm7, %v4162_v42, %v4161_v46 }
 0x7a3   : > { %v4165_v32 = vsel %vm3692_vm8, %v4164_v52, %v4163_v10 }
 0x7a4   : > { %v4171_v9 = vsel %vm4087_vm5, %v4165_v32, 0.0 }
 0x7a5   : > { %4176 = vadd.xlane.f32.xlu0 %v4171_v9  ;;  %v5989_v22 = vpop.eup %5988 }
 0x7a9   : > { %3813 = vadd.xlane.f32.xlu0 %v3808_v49 }
 0x82e   : > { %v4177_v27 = vpop.xlane.xlu0 %4176 }
 0x82f   : > { %v4183_v62 = vmul.f32 %v5989_v22, %v4177_v27 }
 0x831   : > { %v4187_v2 = vsel %vm4184_vm11, %v4183_v62, 0.0 }
 0x832   : > { %v3814_v12 = vpop.xlane.xlu0 %3813  ;;  %v4191_v54 = vsel %vm4188_vm12, %v8439_v51, %v4187_v2 }
 0x833   : > { %v4195_v53 = vsel %vm4192_vm13, %v3814_v12, %v4191_v54 }
 0x834   : > { %4198 = vst [vmem:[%s8237_s7 + $0x10] sm:$0xff] %v4195_v53 }
 0x835   : > { %6142 = shalt.err (!%p6139_p5)
}
 0x836   : > { %s6143_s11 = scalar_lea.hbm %s8485_s18, 384  ;;  %s6147_s6 = scalar_lea.hbm %s8599_s27, 768 }
 0x837   : > { %p6144_p1 = scmp.ne.s32.totalorder %s8485_s18, %s6143_s11  ;;  %p6148_p0 = scmp.lt.s32.totalorder %s8485_s18, %s8599_s27 }
 0x838   : > { %p6149_p13 = scmp.lt.s32.totalorder %s6147_s6, %s6143_s11 }
 0x839   : > { %p6145_p7 = pnand %p6144_p1, %p8600_p4 }
 0x83a   : > { %p6150_p10 = por %p6149_p13, %p6148_p0 }
 0x83b   : > { %p6146_p2 = pneg %p6145_p7 }
 0x83d   : > { %p6151_p11 = pnand %p6150_p10, %p6146_p2 }
 0x83f   : > { %6154 = shalt.err (!%p6151_p11)
}
 0x840   : > { %s6241_s26 = smov 128   ;;  %s6242_s15 = smov 8  }
 0x841   : > { %5798 = dma.vmem_to_hbm [thread:$0]  (%p8600_p4), %s8475_s8, 384, %s8485_s18, %s4200_s25, %s6241_s26, %s6241_s26, %s6242_s15  }
 0x842 PF: > { %s8601_s16 = sld [smem:[#allocation17_spill]]  ;;  %p8604_p9 = scmp.ge.s32.totalorder %s6229_s24, 2 }
 0x843   : > { %s8602_s13 = sld [smem:[#allocation23_spill]] }
 0x848   : > { %s4228_s7 = sand.u32 1, %s8601_s16  }
 0x849   : > { %p8603_p6 = scmp.ne.s32.totalorder %s8602_s13, 0  ;;  %s4229_s21 = scalar_lea.sflag [#allocation4], %s4228_s7 }
 0x84b   : > { %p5818_p3 = pnand %p8604_p9, %p8603_p6 }
 0x84d   : > { %p5819_p12 = pneg %p5818_p3 }
 0x84f   : > { %6200 = dma.done.wait (%p5819_p12), %s4229_s21, 384  }
 0x850   : > { %6202 = vsyncadd (%p5819_p12), %s4229_s21, 4294966912  ;;  %s8605_s24 = sld [smem:[#allocation19_spill]]  ;;  %s8609_s18 = smov %s6209_s19 }
 0x851   : > { %s8606_s23 = sld [smem:[#allocation21_spill]]  ;;  %s8610_s19 = smov %s6213_s20 }
 0x852   : > { %s8607_s14 = sld [smem:[#allocation18_spill]]  ;;  %s8612_s21 = smov %s6221_s22 }
 0x853   : > { %s8608_s30 = sld [smem:[#allocation20_spill]] }
 0x856   : > { %p24_p4 = scmp.ge.s32.totalorder %s8605_s24, 4  }
 0x857   : > { %s8611_s20 = smov %s8606_s23 }
 0x858   : > { %s8613_s22 = smov %s8607_s14  ;;  %26 = sbr.rel (!%p24_p4) target bundleno = 15 (0xf), region = 126 }
 0x859   : > { %s8614_s23 = smov %s8608_s30 }
 0x85d   :  { %4234 = vsyncpa [#allocation3], 1 }
 0x85e   :  { %4236 = vsyncpa [#allocation3 + $0x1], 1 }
 0x85f   :  { %4237 = vsyncpa [#allocation6], 1 }
 0x860   :  { %4239 = vsyncpa [#allocation6 + $0x1], 1 }
 0x861   :  { %4240 = vsyncpa [#allocation9], 1 }
 0x862   :  { %4242 = vsyncpa [#allocation9 + $0x1], 1 }
 0x863   :  { %4243 = vsyncpa [#allocation4], 1 }
 0x864   :  { %4245 = vsyncpa [#allocation4 + $0x1], 1 }

</bundles_post_ra>
